<compile_context>
chip_gen: v6e
topology: v6e:2x2x1
jax: 0.10.0
libtpu: 0.0.40
codegen_flags: <defaults>
</compile_context>

<pallas_src>
import functools

import numpy as np
import jax
import jax.numpy as jnp
from jax.experimental import pallas as pl
from jax.experimental.pallas import tpu as pltpu

BASIS_ORDER = 3
BASIS_RANGE = (-1.0, 1.0)
N_INTERVALS = 5
LANE = 128
SUBLANE = 8


def _grid_points():
    """Knot vector: torch.linspace(range[0], range[1], n_intervals + 2*order + 1)."""
    padding = 2 * BASIS_ORDER + 1
    return np.linspace(BASIS_RANGE[0], BASIS_RANGE[1],
                       N_INTERVALS + padding).astype(np.float32)


def _round_up(n, m):
    return ((n + m - 1) // m) * m


# ----------------------------------------------------------------------------
# In-kernel single Splines layer.  Layout: x is (in_p, TB) f32 (features on
# sublanes, batch on lanes); weight ref is (out_p, (C+1)*in_p) where the first
# C in_p-wide column chunks are the spline coefficients (coefficient-major) and
# the last chunk is the SiLU branch weights.
# ----------------------------------------------------------------------------
def _splines_layer(x, w_ref, slab_ref, g, order, in_p):
    n0 = len(g) - 1                     # number of degree-0 basis functions
    C = n0 - order                      # final number of spline coefficients

    # ---- SiLU branch value (folded into the spline matmul as one extra chunk).
    #      Divide goes to the EUP via approximate reciprocal.
    silu = x * pl.reciprocal(1.0 + jnp.exp(-x), approx=True)

    # ---- degree-0 basis from shared comparisons: b0_j = [x>=g_j] - [x>=g_{j+1}]
    c_prev = (x >= g[0]).astype(jnp.float32)
    basis = []
    for j in range(n0):
        c_next = (x >= g[j + 1]).astype(jnp.float32)
        basis.append(c_prev - c_next)   # == 1[g_j <= x < g_{j+1}]
        c_prev = c_next

    # ---- hoist (x - g_j): computed once, reused by every recursion level.
    d = [x - g[j] for j in range(n0)]

    # ---- Cox-de Boor recursion.  The right term of entry j-1 equals
    #      (1 - t_j) with t_j = (x - g_j)/(g_{j+k} - g_j), so t_j is shared
    #      between neighbours.  The knot spans use the exact fp32 grid values
    #      (compile-time scalars), so no uniform-knot approximation is made.
    for k in range(1, order + 1):
        t = [d[j] * (1.0 / (g[j + k] - g[j])) for j in range(len(basis))]
        basis = [t[j] * basis[j] + (1.0 - t[j + 1]) * basis[j + 1]
                 for j in range(len(basis) - 1)]
    # len(basis) == C

    # ---- assemble the ((C+1)*in_p, TB) slab in VMEM scratch (basis + silu).
    for j in range(C):
        slab_ref[pl.ds(j * in_p, in_p), :] = basis[j]
    slab_ref[pl.ds(C * in_p, in_p), :] = silu

    K = (C + 1) * in_p
    slab = slab_ref[pl.ds(0, K), :]
    w = w_ref[...]                      # bf16 (prepared offline, no per-step cast)
    return jnp.dot(w, slab.astype(w.dtype), preferred_element_type=jnp.float32)


# ----------------------------------------------------------------------------
# Fused KAN kernel: all layers on one batch tile, activations stay in VMEM/vregs.
# ----------------------------------------------------------------------------
def kan_kernel(x_ref, *refs, grid_pts, basis_order, layer_dims):
    n_layers = len(layer_dims)
    w_refs = refs[:n_layers]
    out_ref = refs[n_layers]
    slab_ref = refs[n_layers + 1]

    g = [float(v) for v in grid_pts]                 # static knots
    act = x_ref[...].astype(jnp.float32)             # (in0_p, TB)
    for l, (in_p, _out_p) in enumerate(layer_dims):
        act = _splines_layer(act, w_refs[l], slab_ref, g, basis_order, in_p)
    out_ref[...] = act.astype(out_ref.dtype)


def kan_forward_pallas(x, kernel_params, *, layer_sizes, batch_tile=128,
                       single_buffer_weights=False):
    """x: (B, layer_sizes[0]).  kernel_params: one fused weight per layer, shape
    (out_pad8, (C+1)*in_pad8), already transposed/flattened/padded/cast."""
    B = x.shape[0]
    C = N_INTERVALS + BASIS_ORDER
    layer_dims = []
    for w in kernel_params:
        out_p = w.shape[0]
        in_p = w.shape[1] // (C + 1)
        layer_dims.append((in_p, out_p))
    in0_p = layer_dims[0][0]
    out_last_p = layer_dims[-1][1]
    max_K = max((C + 1) * in_p for in_p, _ in layer_dims)

    # Batch lives on the lane axis.  TB=128 keeps per-array vreg footprint small
    # in this VALU-bound kernel; raise batch_tile (256/512) for very large
    # batches while keeping B_pad // TB >= 2 so both v7x TensorCores get work.
    TB = min(batch_tile, _round_up(B, LANE))
    B_pad = _round_up(B, TB)

    # Transposed, zero-padded input (padded features/batch hit zero weights or
    # are sliced off at the end).
    x_pad = jnp.zeros((in0_p, B_pad), jnp.float32)
    x_pad = x_pad.at[:x.shape[1], :B].set(jnp.transpose(x.astype(jnp.float32)))

    kernel = functools.partial(
        kan_kernel,
        grid_pts=tuple(float(v) for v in _grid_points()),
        basis_order=BASIS_ORDER,
        layer_dims=tuple(layer_dims),
    )

    # Weight blocks are constant across the grid; optionally single-buffer them
    # to halve weight-resident VMEM on v7x (64 MiB) for wide layers.
    w_kwargs = {"pipeline_mode": pl.Buffered(1)} if single_buffer_weights else {}
    in_specs = [pl.BlockSpec((in0_p, TB), lambda b: (0, b))]
    for w in kernel_params:
        in_specs.append(pl.BlockSpec(w.shape, lambda b: (0, 0), **w_kwargs))

    # vmem limit from the actual resident set (double-buffered blocks + weights
    # + scratch) with headroom, instead of a flat constant.
    weight_bytes = sum(int(np.prod(w.shape)) * jnp.dtype(w.dtype).itemsize
                       for w in kernel_params)
    block_bytes = (in0_p * TB + out_last_p * TB) * 4
    scratch_bytes = max_K * TB * 4
    resident = 2 * (weight_bytes + block_bytes) + scratch_bytes
    vmem_limit = int(min(100 * 2**20, max(32 * 2**20, resident + 8 * 2**20)))

    out_pad = pl.pallas_call(
        kernel,
        out_shape=jax.ShapeDtypeStruct((out_last_p, B_pad), jnp.float32),
        grid=(B_pad // TB,),
        in_specs=in_specs,
        out_specs=pl.BlockSpec((out_last_p, TB), lambda b: (0, b)),
        scratch_shapes=[pltpu.VMEM((max_K, TB), jnp.float32)],
        compiler_params=pltpu.CompilerParams(
            dimension_semantics=("parallel",),       # split batch tiles over TCs
            vmem_limit_bytes=vmem_limit,
        ),
    )(x_pad, *kernel_params)

    return jnp.transpose(out_pad[:layer_sizes[-1], :B])


# ----------------------------------------------------------------------------
# Parameter init (PyTorch layouts) and one-time kernel-layout preparation.
# ----------------------------------------------------------------------------
def init_kan_params(key, layers):
    """Deterministic init of (basis_weights, splines_weights) per layer in the
    PyTorch layouts (Out, In) and (Out, In, C)."""
    C = N_INTERVALS + BASIS_ORDER
    params = []
    for in_sz, out_sz in zip(layers, layers[1:]):
        key, k1, k2 = jax.random.split(key, 3)
        bw = 0.1 * jax.random.normal(k1, (out_sz, in_sz), jnp.float32)
        sw = 0.1 * jax.random.normal(k2, (out_sz, in_sz, C), jnp.float32)
        params.append((bw, sw))
    return params


def prepare_kan_params(params, weight_dtype=jnp.bfloat16):
    """Hoisted out of the forward path: per layer, build ONE fused weight
    (out_pad8, (C+1)*in_pad8) = [spline coeffs (coefficient-major) | SiLU weights],
    matching the kernel's (feature-on-sublane) slab layout, zero-padded to
    multiples of 8 and cast to bf16 (MXU dtype) once."""
    C = N_INTERVALS + BASIS_ORDER
    prepared = []
    for bw, sw in params:
        out_sz, in_sz = bw.shape
        in_p = _round_up(in_sz, SUBLANE)
        out_p = _round_up(out_sz, SUBLANE)
        sw_t = jnp.transpose(sw, (0, 2, 1))                        # (Out, C, In)
        sw_t = jnp.pad(sw_t, ((0, 0), (0, 0), (0, in_p - in_sz)))  # (Out, C, In_p)
        sw_flat = sw_t.reshape(out_sz, C * in_p)
        w = jnp.zeros((out_p, (C + 1) * in_p), jnp.float32)
        w = w.at[:out_sz, :C * in_p].set(sw_flat)                  # spline chunks
        w = w.at[:out_sz, C * in_p:C * in_p + in_sz].set(bw)       # SiLU chunk
        prepared.append(w.astype(weight_dtype))
    return prepared


# ----------------------------------------------------------------------------
# Pure-JAX reference (mirrors the PyTorch code literally) for validation.
# ----------------------------------------------------------------------------
def splines_ref(x, bw, sw):
    grid_row = jnp.asarray(_grid_points())
    grid = jnp.broadcast_to(grid_row[None, :], (x.shape[1], grid_row.shape[0]))
    silu = x * jax.nn.sigmoid(x)
    basis_out = silu @ bw.T
    xe = x[:, :, None]
    basis = ((xe >= grid[None, :, :-1]) & (xe < grid[None, :, 1:])).astype(jnp.float32)
    for k in range(1, BASIS_ORDER + 1):
        basis = ((xe - grid[None, :, :-(k + 1)])
                 / (grid[None, :, k:-1] - grid[None, :, :-(k + 1)]) * basis[:, :, :-1]
                 + (grid[None, :, k + 1:] - xe)
                 / (grid[None, :, k + 1:] - grid[None, :, 1:-k]) * basis[:, :, 1:])
    spline_out = basis.reshape(x.shape[0], -1) @ sw.reshape(sw.shape[0], -1).T
    return basis_out + spline_out


def kan_ref(x, params):
    for bw, sw in params:
        x = splines_ref(x, bw, sw)
    return x


if __name__ == "__main__":
    layers = [16, 32, 8]           # KAN(layers=[16, 32, 8])
    batch = 256                    # 2 batch tiles of 128 -> both v7x TCs busy

    key = jax.random.PRNGKey(0)
    key, kx = jax.random.split(key)
    x = 0.5 * jax.random.normal(kx, (batch, layers[0]), jnp.float32)
    params = init_kan_params(key, layers)
    kparams = prepare_kan_params(params)            # bf16 kernel-layout weights

    fwd = jax.jit(lambda xx, pp: kan_forward_pallas(xx, pp, layer_sizes=tuple(layers)))

    out = jax.block_until_ready(fwd(x, kparams))
    ref = jax.block_until_ready(kan_ref(x, params))

    assert out.shape == (batch, layers[-1])
    out_np, ref_np = np.asarray(out, np.float64), np.asarray(ref, np.float64)
    max_err = float(np.max(np.abs(out_np - ref_np)))
    scale = max(float(np.max(np.abs(ref_np))), 1.0)
    # bf16 MXU inputs + approx reciprocal -> tolerance at bf16 level.
    if max_err > 3e-2 * scale:
        raise AssertionError(f"Pallas KAN kernel mismatch: max_err={max_err}, scale={scale}")

    print("KERNEL_OK")
</pallas_src>

<mosaic_0001>
module attributes {stable_mosaic.version = 11 : i64} {
  func.func @kan_kernel(%arg0: i32, %arg1: memref<16x128xf32, #tpu.memory_space<vmem>>, %arg2: memref<32x144xbf16, #tpu.memory_space<vmem>>, %arg3: memref<8x288xbf16, #tpu.memory_space<vmem>>, %arg4: memref<8x128xf32, #tpu.memory_space<vmem>>, %arg5: memref<288x128xf32, #tpu.memory_space<vmem>>) attributes {dimension_semantics = [#tpu.dimension_semantics<parallel>], iteration_bounds = array<i64: 2>, scalar_prefetch = 0 : i64, scratch_operands = 1 : i64, tpu.core_type = #tpu.core_type<tc>, window_params = [{transform_indices = @transform_0, window_bounds = array<i64: 16, 128>}, {pipeline_mode = #tpu.pipeline_mode<synchronous>, transform_indices = @transform_1, window_bounds = array<i64: 32, 144>}, {pipeline_mode = #tpu.pipeline_mode<synchronous>, transform_indices = @transform_2, window_bounds = array<i64: 8, 288>}, {transform_indices = @transform_3, window_bounds = array<i64: 8, 128>}]} {
    %c0 = arith.constant 0 : index
    %c0_0 = arith.constant 0 : index
    %0 = vector.load %arg1[%c0, %c0_0] : memref<16x128xf32, #tpu.memory_space<vmem>>, vector<16x128xf32>
    %cst = arith.constant 0.000000e+00 : f32
    %1 = vector.broadcast %cst : f32 to vector<16x128xf32>
    %2 = arith.subf %1, %0 : vector<16x128xf32>
    %3 = math.exp %2 : vector<16x128xf32>
    %cst_1 = arith.constant 1.000000e+00 : f32
    %4 = vector.broadcast %cst_1 : f32 to vector<16x128xf32>
    %5 = arith.addf %4, %3 : vector<16x128xf32>
    %6 = tpu.reciprocal %5 {approx = true} : vector<16x128xf32> -> vector<16x128xf32>
    %7 = arith.mulf %0, %6 : vector<16x128xf32>
    %cst_2 = arith.constant -1.000000e+00 : f32
    %8 = vector.broadcast %cst_2 : f32 to vector<16x128xf32>
    %9 = arith.cmpf oge, %0, %8 : vector<16x128xf32>
    %10 = arith.extui %9 : vector<16x128xi1> to vector<16x128xi32>
    %11 = arith.sitofp %10 : vector<16x128xi32> to vector<16x128xf32>
    %cst_3 = arith.constant -0.818181812 : f32
    %12 = vector.broadcast %cst_3 : f32 to vector<16x128xf32>
    %13 = arith.cmpf oge, %0, %12 : vector<16x128xf32>
    %14 = arith.extui %13 : vector<16x128xi1> to vector<16x128xi32>
    %15 = arith.sitofp %14 : vector<16x128xi32> to vector<16x128xf32>
    %16 = arith.subf %11, %15 : vector<16x128xf32>
    %cst_4 = arith.constant -0.636363626 : f32
    %17 = vector.broadcast %cst_4 : f32 to vector<16x128xf32>
    %18 = arith.cmpf oge, %0, %17 : vector<16x128xf32>
    %19 = arith.extui %18 : vector<16x128xi1> to vector<16x128xi32>
    %20 = arith.sitofp %19 : vector<16x128xi32> to vector<16x128xf32>
    %21 = arith.subf %15, %20 : vector<16x128xf32>
    %cst_5 = arith.constant -0.454545468 : f32
    %22 = vector.broadcast %cst_5 : f32 to vector<16x128xf32>
    %23 = arith.cmpf oge, %0, %22 : vector<16x128xf32>
    %24 = arith.extui %23 : vector<16x128xi1> to vector<16x128xi32>
    %25 = arith.sitofp %24 : vector<16x128xi32> to vector<16x128xf32>
    %26 = arith.subf %20, %25 : vector<16x128xf32>
    %cst_6 = arith.constant -0.272727281 : f32
    %27 = vector.broadcast %cst_6 : f32 to vector<16x128xf32>
    %28 = arith.cmpf oge, %0, %27 : vector<16x128xf32>
    %29 = arith.extui %28 : vector<16x128xi1> to vector<16x128xi32>
    %30 = arith.sitofp %29 : vector<16x128xi32> to vector<16x128xf32>
    %31 = arith.subf %25, %30 : vector<16x128xf32>
    %cst_7 = arith.constant -0.0909090936 : f32
    %32 = vector.broadcast %cst_7 : f32 to vector<16x128xf32>
    %33 = arith.cmpf oge, %0, %32 : vector<16x128xf32>
    %34 = arith.extui %33 : vector<16x128xi1> to vector<16x128xi32>
    %35 = arith.sitofp %34 : vector<16x128xi32> to vector<16x128xf32>
    %36 = arith.subf %30, %35 : vector<16x128xf32>
    %cst_8 = arith.constant 0.0909090936 : f32
    %37 = vector.broadcast %cst_8 : f32 to vector<16x128xf32>
    %38 = arith.cmpf oge, %0, %37 : vector<16x128xf32>
    %39 = arith.extui %38 : vector<16x128xi1> to vector<16x128xi32>
    %40 = arith.sitofp %39 : vector<16x128xi32> to vector<16x128xf32>
    %41 = arith.subf %35, %40 : vector<16x128xf32>
    %cst_9 = arith.constant 0.272727281 : f32
    %42 = vector.broadcast %cst_9 : f32 to vector<16x128xf32>
    %43 = arith.cmpf oge, %0, %42 : vector<16x128xf32>
    %44 = arith.extui %43 : vector<16x128xi1> to vector<16x128xi32>
    %45 = arith.sitofp %44 : vector<16x128xi32> to vector<16x128xf32>
    %46 = arith.subf %40, %45 : vector<16x128xf32>
    %cst_10 = arith.constant 0.454545468 : f32
    %47 = vector.broadcast %cst_10 : f32 to vector<16x128xf32>
    %48 = arith.cmpf oge, %0, %47 : vector<16x128xf32>
    %49 = arith.extui %48 : vector<16x128xi1> to vector<16x128xi32>
    %50 = arith.sitofp %49 : vector<16x128xi32> to vector<16x128xf32>
    %51 = arith.subf %45, %50 : vector<16x128xf32>
    %cst_11 = arith.constant 0.636363626 : f32
    %52 = vector.broadcast %cst_11 : f32 to vector<16x128xf32>
    %53 = arith.cmpf oge, %0, %52 : vector<16x128xf32>
    %54 = arith.extui %53 : vector<16x128xi1> to vector<16x128xi32>
    %55 = arith.sitofp %54 : vector<16x128xi32> to vector<16x128xf32>
    %56 = arith.subf %50, %55 : vector<16x128xf32>
    %cst_12 = arith.constant 0.818181812 : f32
    %57 = vector.broadcast %cst_12 : f32 to vector<16x128xf32>
    %58 = arith.cmpf oge, %0, %57 : vector<16x128xf32>
    %59 = arith.extui %58 : vector<16x128xi1> to vector<16x128xi32>
    %60 = arith.sitofp %59 : vector<16x128xi32> to vector<16x128xf32>
    %61 = arith.subf %55, %60 : vector<16x128xf32>
    %cst_13 = arith.constant 1.000000e+00 : f32
    %62 = vector.broadcast %cst_13 : f32 to vector<16x128xf32>
    %63 = arith.cmpf oge, %0, %62 : vector<16x128xf32>
    %64 = arith.extui %63 : vector<16x128xi1> to vector<16x128xi32>
    %65 = arith.sitofp %64 : vector<16x128xi32> to vector<16x128xf32>
    %66 = arith.subf %60, %65 : vector<16x128xf32>
    %cst_14 = arith.constant -1.000000e+00 : f32
    %67 = vector.broadcast %cst_14 : f32 to vector<16x128xf32>
    %68 = arith.subf %0, %67 : vector<16x128xf32>
    %cst_15 = arith.constant -0.818181812 : f32
    %69 = vector.broadcast %cst_15 : f32 to vector<16x128xf32>
    %70 = arith.subf %0, %69 : vector<16x128xf32>
    %cst_16 = arith.constant -0.636363626 : f32
    %71 = vector.broadcast %cst_16 : f32 to vector<16x128xf32>
    %72 = arith.subf %0, %71 : vector<16x128xf32>
    %cst_17 = arith.constant -0.454545468 : f32
    %73 = vector.broadcast %cst_17 : f32 to vector<16x128xf32>
    %74 = arith.subf %0, %73 : vector<16x128xf32>
    %cst_18 = arith.constant -0.272727281 : f32
    %75 = vector.broadcast %cst_18 : f32 to vector<16x128xf32>
    %76 = arith.subf %0, %75 : vector<16x128xf32>
    %cst_19 = arith.constant -0.0909090936 : f32
    %77 = vector.broadcast %cst_19 : f32 to vector<16x128xf32>
    %78 = arith.subf %0, %77 : vector<16x128xf32>
    %cst_20 = arith.constant 0.0909090936 : f32
    %79 = vector.broadcast %cst_20 : f32 to vector<16x128xf32>
    %80 = arith.subf %0, %79 : vector<16x128xf32>
    %cst_21 = arith.constant 0.272727281 : f32
    %81 = vector.broadcast %cst_21 : f32 to vector<16x128xf32>
    %82 = arith.subf %0, %81 : vector<16x128xf32>
    %cst_22 = arith.constant 0.454545468 : f32
    %83 = vector.broadcast %cst_22 : f32 to vector<16x128xf32>
    %84 = arith.subf %0, %83 : vector<16x128xf32>
    %cst_23 = arith.constant 0.636363626 : f32
    %85 = vector.broadcast %cst_23 : f32 to vector<16x128xf32>
    %86 = arith.subf %0, %85 : vector<16x128xf32>
    %cst_24 = arith.constant 0.818181812 : f32
    %87 = vector.broadcast %cst_24 : f32 to vector<16x128xf32>
    %88 = arith.subf %0, %87 : vector<16x128xf32>
    %cst_25 = arith.constant 5.500000e+00 : f32
    %89 = vector.broadcast %cst_25 : f32 to vector<16x128xf32>
    %90 = arith.mulf %68, %89 : vector<16x128xf32>
    %cst_26 = arith.constant 5.500000e+00 : f32
    %91 = vector.broadcast %cst_26 : f32 to vector<16x128xf32>
    %92 = arith.mulf %70, %91 : vector<16x128xf32>
    %cst_27 = arith.constant 5.50000095 : f32
    %93 = vector.broadcast %cst_27 : f32 to vector<16x128xf32>
    %94 = arith.mulf %72, %93 : vector<16x128xf32>
    %cst_28 = arith.constant 5.500000e+00 : f32
    %95 = vector.broadcast %cst_28 : f32 to vector<16x128xf32>
    %96 = arith.mulf %74, %95 : vector<16x128xf32>
    %cst_29 = arith.constant 5.500000e+00 : f32
    %97 = vector.broadcast %cst_29 : f32 to vector<16x128xf32>
    %98 = arith.mulf %76, %97 : vector<16x128xf32>
    %cst_30 = arith.constant 5.500000e+00 : f32
    %99 = vector.broadcast %cst_30 : f32 to vector<16x128xf32>
    %100 = arith.mulf %78, %99 : vector<16x128xf32>
    %cst_31 = arith.constant 5.500000e+00 : f32
    %101 = vector.broadcast %cst_31 : f32 to vector<16x128xf32>
    %102 = arith.mulf %80, %101 : vector<16x128xf32>
    %cst_32 = arith.constant 5.500000e+00 : f32
    %103 = vector.broadcast %cst_32 : f32 to vector<16x128xf32>
    %104 = arith.mulf %82, %103 : vector<16x128xf32>
    %cst_33 = arith.constant 5.50000095 : f32
    %105 = vector.broadcast %cst_33 : f32 to vector<16x128xf32>
    %106 = arith.mulf %84, %105 : vector<16x128xf32>
    %cst_34 = arith.constant 5.500000e+00 : f32
    %107 = vector.broadcast %cst_34 : f32 to vector<16x128xf32>
    %108 = arith.mulf %86, %107 : vector<16x128xf32>
    %cst_35 = arith.constant 5.500000e+00 : f32
    %109 = vector.broadcast %cst_35 : f32 to vector<16x128xf32>
    %110 = arith.mulf %88, %109 : vector<16x128xf32>
    %111 = arith.mulf %90, %16 : vector<16x128xf32>
    %cst_36 = arith.constant 1.000000e+00 : f32
    %112 = vector.broadcast %cst_36 : f32 to vector<16x128xf32>
    %113 = arith.subf %112, %92 : vector<16x128xf32>
    %114 = arith.mulf %113, %21 : vector<16x128xf32>
    %115 = arith.addf %111, %114 : vector<16x128xf32>
    %116 = arith.mulf %92, %21 : vector<16x128xf32>
    %cst_37 = arith.constant 1.000000e+00 : f32
    %117 = vector.broadcast %cst_37 : f32 to vector<16x128xf32>
    %118 = arith.subf %117, %94 : vector<16x128xf32>
    %119 = arith.mulf %118, %26 : vector<16x128xf32>
    %120 = arith.addf %116, %119 : vector<16x128xf32>
    %121 = arith.mulf %94, %26 : vector<16x128xf32>
    %cst_38 = arith.constant 1.000000e+00 : f32
    %122 = vector.broadcast %cst_38 : f32 to vector<16x128xf32>
    %123 = arith.subf %122, %96 : vector<16x128xf32>
    %124 = arith.mulf %123, %31 : vector<16x128xf32>
    %125 = arith.addf %121, %124 : vector<16x128xf32>
    %126 = arith.mulf %96, %31 : vector<16x128xf32>
    %cst_39 = arith.constant 1.000000e+00 : f32
    %127 = vector.broadcast %cst_39 : f32 to vector<16x128xf32>
    %128 = arith.subf %127, %98 : vector<16x128xf32>
    %129 = arith.mulf %128, %36 : vector<16x128xf32>
    %130 = arith.addf %126, %129 : vector<16x128xf32>
    %131 = arith.mulf %98, %36 : vector<16x128xf32>
    %cst_40 = arith.constant 1.000000e+00 : f32
    %132 = vector.broadcast %cst_40 : f32 to vector<16x128xf32>
    %133 = arith.subf %132, %100 : vector<16x128xf32>
    %134 = arith.mulf %133, %41 : vector<16x128xf32>
    %135 = arith.addf %131, %134 : vector<16x128xf32>
    %136 = arith.mulf %100, %41 : vector<16x128xf32>
    %cst_41 = arith.constant 1.000000e+00 : f32
    %137 = vector.broadcast %cst_41 : f32 to vector<16x128xf32>
    %138 = arith.subf %137, %102 : vector<16x128xf32>
    %139 = arith.mulf %138, %46 : vector<16x128xf32>
    %140 = arith.addf %136, %139 : vector<16x128xf32>
    %141 = arith.mulf %102, %46 : vector<16x128xf32>
    %cst_42 = arith.constant 1.000000e+00 : f32
    %142 = vector.broadcast %cst_42 : f32 to vector<16x128xf32>
    %143 = arith.subf %142, %104 : vector<16x128xf32>
    %144 = arith.mulf %143, %51 : vector<16x128xf32>
    %145 = arith.addf %141, %144 : vector<16x128xf32>
    %146 = arith.mulf %104, %51 : vector<16x128xf32>
    %cst_43 = arith.constant 1.000000e+00 : f32
    %147 = vector.broadcast %cst_43 : f32 to vector<16x128xf32>
    %148 = arith.subf %147, %106 : vector<16x128xf32>
    %149 = arith.mulf %148, %56 : vector<16x128xf32>
    %150 = arith.addf %146, %149 : vector<16x128xf32>
    %151 = arith.mulf %106, %56 : vector<16x128xf32>
    %cst_44 = arith.constant 1.000000e+00 : f32
    %152 = vector.broadcast %cst_44 : f32 to vector<16x128xf32>
    %153 = arith.subf %152, %108 : vector<16x128xf32>
    %154 = arith.mulf %153, %61 : vector<16x128xf32>
    %155 = arith.addf %151, %154 : vector<16x128xf32>
    %156 = arith.mulf %108, %61 : vector<16x128xf32>
    %cst_45 = arith.constant 1.000000e+00 : f32
    %157 = vector.broadcast %cst_45 : f32 to vector<16x128xf32>
    %158 = arith.subf %157, %110 : vector<16x128xf32>
    %159 = arith.mulf %158, %66 : vector<16x128xf32>
    %160 = arith.addf %156, %159 : vector<16x128xf32>
    %cst_46 = arith.constant 2.750000e+00 : f32
    %161 = vector.broadcast %cst_46 : f32 to vector<16x128xf32>
    %162 = arith.mulf %68, %161 : vector<16x128xf32>
    %cst_47 = arith.constant 2.75000024 : f32
    %163 = vector.broadcast %cst_47 : f32 to vector<16x128xf32>
    %164 = arith.mulf %70, %163 : vector<16x128xf32>
    %cst_48 = arith.constant 2.75000024 : f32
    %165 = vector.broadcast %cst_48 : f32 to vector<16x128xf32>
    %166 = arith.mulf %72, %165 : vector<16x128xf32>
    %cst_49 = arith.constant 2.750000e+00 : f32
    %167 = vector.broadcast %cst_49 : f32 to vector<16x128xf32>
    %168 = arith.mulf %74, %167 : vector<16x128xf32>
    %cst_50 = arith.constant 2.750000e+00 : f32
    %169 = vector.broadcast %cst_50 : f32 to vector<16x128xf32>
    %170 = arith.mulf %76, %169 : vector<16x128xf32>
    %cst_51 = arith.constant 2.750000e+00 : f32
    %171 = vector.broadcast %cst_51 : f32 to vector<16x128xf32>
    %172 = arith.mulf %78, %171 : vector<16x128xf32>
    %cst_52 = arith.constant 2.750000e+00 : f32
    %173 = vector.broadcast %cst_52 : f32 to vector<16x128xf32>
    %174 = arith.mulf %80, %173 : vector<16x128xf32>
    %cst_53 = arith.constant 2.75000024 : f32
    %175 = vector.broadcast %cst_53 : f32 to vector<16x128xf32>
    %176 = arith.mulf %82, %175 : vector<16x128xf32>
    %cst_54 = arith.constant 2.75000024 : f32
    %177 = vector.broadcast %cst_54 : f32 to vector<16x128xf32>
    %178 = arith.mulf %84, %177 : vector<16x128xf32>
    %cst_55 = arith.constant 2.750000e+00 : f32
    %179 = vector.broadcast %cst_55 : f32 to vector<16x128xf32>
    %180 = arith.mulf %86, %179 : vector<16x128xf32>
    %181 = arith.mulf %162, %115 : vector<16x128xf32>
    %cst_56 = arith.constant 1.000000e+00 : f32
    %182 = vector.broadcast %cst_56 : f32 to vector<16x128xf32>
    %183 = arith.subf %182, %164 : vector<16x128xf32>
    %184 = arith.mulf %183, %120 : vector<16x128xf32>
    %185 = arith.addf %181, %184 : vector<16x128xf32>
    %186 = arith.mulf %164, %120 : vector<16x128xf32>
    %cst_57 = arith.constant 1.000000e+00 : f32
    %187 = vector.broadcast %cst_57 : f32 to vector<16x128xf32>
    %188 = arith.subf %187, %166 : vector<16x128xf32>
    %189 = arith.mulf %188, %125 : vector<16x128xf32>
    %190 = arith.addf %186, %189 : vector<16x128xf32>
    %191 = arith.mulf %166, %125 : vector<16x128xf32>
    %cst_58 = arith.constant 1.000000e+00 : f32
    %192 = vector.broadcast %cst_58 : f32 to vector<16x128xf32>
    %193 = arith.subf %192, %168 : vector<16x128xf32>
    %194 = arith.mulf %193, %130 : vector<16x128xf32>
    %195 = arith.addf %191, %194 : vector<16x128xf32>
    %196 = arith.mulf %168, %130 : vector<16x128xf32>
    %cst_59 = arith.constant 1.000000e+00 : f32
    %197 = vector.broadcast %cst_59 : f32 to vector<16x128xf32>
    %198 = arith.subf %197, %170 : vector<16x128xf32>
    %199 = arith.mulf %198, %135 : vector<16x128xf32>
    %200 = arith.addf %196, %199 : vector<16x128xf32>
    %201 = arith.mulf %170, %135 : vector<16x128xf32>
    %cst_60 = arith.constant 1.000000e+00 : f32
    %202 = vector.broadcast %cst_60 : f32 to vector<16x128xf32>
    %203 = arith.subf %202, %172 : vector<16x128xf32>
    %204 = arith.mulf %203, %140 : vector<16x128xf32>
    %205 = arith.addf %201, %204 : vector<16x128xf32>
    %206 = arith.mulf %172, %140 : vector<16x128xf32>
    %cst_61 = arith.constant 1.000000e+00 : f32
    %207 = vector.broadcast %cst_61 : f32 to vector<16x128xf32>
    %208 = arith.subf %207, %174 : vector<16x128xf32>
    %209 = arith.mulf %208, %145 : vector<16x128xf32>
    %210 = arith.addf %206, %209 : vector<16x128xf32>
    %211 = arith.mulf %174, %145 : vector<16x128xf32>
    %cst_62 = arith.constant 1.000000e+00 : f32
    %212 = vector.broadcast %cst_62 : f32 to vector<16x128xf32>
    %213 = arith.subf %212, %176 : vector<16x128xf32>
    %214 = arith.mulf %213, %150 : vector<16x128xf32>
    %215 = arith.addf %211, %214 : vector<16x128xf32>
    %216 = arith.mulf %176, %150 : vector<16x128xf32>
    %cst_63 = arith.constant 1.000000e+00 : f32
    %217 = vector.broadcast %cst_63 : f32 to vector<16x128xf32>
    %218 = arith.subf %217, %178 : vector<16x128xf32>
    %219 = arith.mulf %218, %155 : vector<16x128xf32>
    %220 = arith.addf %216, %219 : vector<16x128xf32>
    %221 = arith.mulf %178, %155 : vector<16x128xf32>
    %cst_64 = arith.constant 1.000000e+00 : f32
    %222 = vector.broadcast %cst_64 : f32 to vector<16x128xf32>
    %223 = arith.subf %222, %180 : vector<16x128xf32>
    %224 = arith.mulf %223, %160 : vector<16x128xf32>
    %225 = arith.addf %221, %224 : vector<16x128xf32>
    %cst_65 = arith.constant 1.83333337 : f32
    %226 = vector.broadcast %cst_65 : f32 to vector<16x128xf32>
    %227 = arith.mulf %68, %226 : vector<16x128xf32>
    %cst_66 = arith.constant 1.83333337 : f32
    %228 = vector.broadcast %cst_66 : f32 to vector<16x128xf32>
    %229 = arith.mulf %70, %228 : vector<16x128xf32>
    %cst_67 = arith.constant 1.83333337 : f32
    %230 = vector.broadcast %cst_67 : f32 to vector<16x128xf32>
    %231 = arith.mulf %72, %230 : vector<16x128xf32>
    %cst_68 = arith.constant 1.83333325 : f32
    %232 = vector.broadcast %cst_68 : f32 to vector<16x128xf32>
    %233 = arith.mulf %74, %232 : vector<16x128xf32>
    %cst_69 = arith.constant 1.83333325 : f32
    %234 = vector.broadcast %cst_69 : f32 to vector<16x128xf32>
    %235 = arith.mulf %76, %234 : vector<16x128xf32>
    %cst_70 = arith.constant 1.83333325 : f32
    %236 = vector.broadcast %cst_70 : f32 to vector<16x128xf32>
    %237 = arith.mulf %78, %236 : vector<16x128xf32>
    %cst_71 = arith.constant 1.83333337 : f32
    %238 = vector.broadcast %cst_71 : f32 to vector<16x128xf32>
    %239 = arith.mulf %80, %238 : vector<16x128xf32>
    %cst_72 = arith.constant 1.83333337 : f32
    %240 = vector.broadcast %cst_72 : f32 to vector<16x128xf32>
    %241 = arith.mulf %82, %240 : vector<16x128xf32>
    %cst_73 = arith.constant 1.83333337 : f32
    %242 = vector.broadcast %cst_73 : f32 to vector<16x128xf32>
    %243 = arith.mulf %84, %242 : vector<16x128xf32>
    %244 = arith.mulf %227, %185 : vector<16x128xf32>
    %cst_74 = arith.constant 1.000000e+00 : f32
    %245 = vector.broadcast %cst_74 : f32 to vector<16x128xf32>
    %246 = arith.subf %245, %229 : vector<16x128xf32>
    %247 = arith.mulf %246, %190 : vector<16x128xf32>
    %248 = arith.addf %244, %247 : vector<16x128xf32>
    %249 = arith.mulf %229, %190 : vector<16x128xf32>
    %cst_75 = arith.constant 1.000000e+00 : f32
    %250 = vector.broadcast %cst_75 : f32 to vector<16x128xf32>
    %251 = arith.subf %250, %231 : vector<16x128xf32>
    %252 = arith.mulf %251, %195 : vector<16x128xf32>
    %253 = arith.addf %249, %252 : vector<16x128xf32>
    %254 = arith.mulf %231, %195 : vector<16x128xf32>
    %cst_76 = arith.constant 1.000000e+00 : f32
    %255 = vector.broadcast %cst_76 : f32 to vector<16x128xf32>
    %256 = arith.subf %255, %233 : vector<16x128xf32>
    %257 = arith.mulf %256, %200 : vector<16x128xf32>
    %258 = arith.addf %254, %257 : vector<16x128xf32>
    %259 = arith.mulf %233, %200 : vector<16x128xf32>
    %cst_77 = arith.constant 1.000000e+00 : f32
    %260 = vector.broadcast %cst_77 : f32 to vector<16x128xf32>
    %261 = arith.subf %260, %235 : vector<16x128xf32>
    %262 = arith.mulf %261, %205 : vector<16x128xf32>
    %263 = arith.addf %259, %262 : vector<16x128xf32>
    %264 = arith.mulf %235, %205 : vector<16x128xf32>
    %cst_78 = arith.constant 1.000000e+00 : f32
    %265 = vector.broadcast %cst_78 : f32 to vector<16x128xf32>
    %266 = arith.subf %265, %237 : vector<16x128xf32>
    %267 = arith.mulf %266, %210 : vector<16x128xf32>
    %268 = arith.addf %264, %267 : vector<16x128xf32>
    %269 = arith.mulf %237, %210 : vector<16x128xf32>
    %cst_79 = arith.constant 1.000000e+00 : f32
    %270 = vector.broadcast %cst_79 : f32 to vector<16x128xf32>
    %271 = arith.subf %270, %239 : vector<16x128xf32>
    %272 = arith.mulf %271, %215 : vector<16x128xf32>
    %273 = arith.addf %269, %272 : vector<16x128xf32>
    %274 = arith.mulf %239, %215 : vector<16x128xf32>
    %cst_80 = arith.constant 1.000000e+00 : f32
    %275 = vector.broadcast %cst_80 : f32 to vector<16x128xf32>
    %276 = arith.subf %275, %241 : vector<16x128xf32>
    %277 = arith.mulf %276, %220 : vector<16x128xf32>
    %278 = arith.addf %274, %277 : vector<16x128xf32>
    %279 = arith.mulf %241, %220 : vector<16x128xf32>
    %cst_81 = arith.constant 1.000000e+00 : f32
    %280 = vector.broadcast %cst_81 : f32 to vector<16x128xf32>
    %281 = arith.subf %280, %243 : vector<16x128xf32>
    %282 = arith.mulf %281, %225 : vector<16x128xf32>
    %283 = arith.addf %279, %282 : vector<16x128xf32>
    %c0_82 = arith.constant 0 : index
    %c0_83 = arith.constant 0 : index
    %284 = vector.load %arg5[%c0_82, %c0_83] : memref<288x128xf32, #tpu.memory_space<vmem>>, vector<16x128xf32>
    tpu.vector_store %arg5[%c0_82, %c0_83], %248 {strides = array<i32>} : memref<288x128xf32, #tpu.memory_space<vmem>>, vector<16x128xf32>,
    %c16 = arith.constant 16 : index
    %c0_84 = arith.constant 0 : index
    %285 = vector.load %arg5[%c16, %c0_84] : memref<288x128xf32, #tpu.memory_space<vmem>>, vector<16x128xf32>
    tpu.vector_store %arg5[%c16, %c0_84], %253 {strides = array<i32>} : memref<288x128xf32, #tpu.memory_space<vmem>>, vector<16x128xf32>,
    %c32 = arith.constant 32 : index
    %c0_85 = arith.constant 0 : index
    %286 = vector.load %arg5[%c32, %c0_85] : memref<288x128xf32, #tpu.memory_space<vmem>>, vector<16x128xf32>
    tpu.vector_store %arg5[%c32, %c0_85], %258 {strides = array<i32>} : memref<288x128xf32, #tpu.memory_space<vmem>>, vector<16x128xf32>,
    %c48 = arith.constant 48 : index
    %c0_86 = arith.constant 0 : index
    %287 = vector.load %arg5[%c48, %c0_86] : memref<288x128xf32, #tpu.memory_space<vmem>>, vector<16x128xf32>
    tpu.vector_store %arg5[%c48, %c0_86], %263 {strides = array<i32>} : memref<288x128xf32, #tpu.memory_space<vmem>>, vector<16x128xf32>,
    %c64 = arith.constant 64 : index
    %c0_87 = arith.constant 0 : index
    %288 = vector.load %arg5[%c64, %c0_87] : memref<288x128xf32, #tpu.memory_space<vmem>>, vector<16x128xf32>
    tpu.vector_store %arg5[%c64, %c0_87], %268 {strides = array<i32>} : memref<288x128xf32, #tpu.memory_space<vmem>>, vector<16x128xf32>,
    %c80 = arith.constant 80 : index
    %c0_88 = arith.constant 0 : index
    %289 = vector.load %arg5[%c80, %c0_88] : memref<288x128xf32, #tpu.memory_space<vmem>>, vector<16x128xf32>
    tpu.vector_store %arg5[%c80, %c0_88], %273 {strides = array<i32>} : memref<288x128xf32, #tpu.memory_space<vmem>>, vector<16x128xf32>,
    %c96 = arith.constant 96 : index
    %c0_89 = arith.constant 0 : index
    %290 = vector.load %arg5[%c96, %c0_89] : memref<288x128xf32, #tpu.memory_space<vmem>>, vector<16x128xf32>
    tpu.vector_store %arg5[%c96, %c0_89], %278 {strides = array<i32>} : memref<288x128xf32, #tpu.memory_space<vmem>>, vector<16x128xf32>,
    %c112 = arith.constant 112 : index
    %c0_90 = arith.constant 0 : index
    %291 = vector.load %arg5[%c112, %c0_90] : memref<288x128xf32, #tpu.memory_space<vmem>>, vector<16x128xf32>
    tpu.vector_store %arg5[%c112, %c0_90], %283 {strides = array<i32>} : memref<288x128xf32, #tpu.memory_space<vmem>>, vector<16x128xf32>,
    %c128 = arith.constant 128 : index
    %c0_91 = arith.constant 0 : index
    %292 = vector.load %arg5[%c128, %c0_91] : memref<288x128xf32, #tpu.memory_space<vmem>>, vector<16x128xf32>
    tpu.vector_store %arg5[%c128, %c0_91], %7 {strides = array<i32>} : memref<288x128xf32, #tpu.memory_space<vmem>>, vector<16x128xf32>,
    %c0_92 = arith.constant 0 : index
    %c0_93 = arith.constant 0 : index
    %293 = vector.load %arg5[%c0_92, %c0_93] : memref<288x128xf32, #tpu.memory_space<vmem>>, vector<144x128xf32>
    %c0_94 = arith.constant 0 : index
    %c0_95 = arith.constant 0 : index
    %294 = vector.load %arg2[%c0_94, %c0_95] : memref<32x144xbf16, #tpu.memory_space<vmem>>, vector<32x144xbf16>
    %295 = arith.truncf %293 : vector<144x128xf32> to vector<144x128xbf16>
    %cst_96 = arith.constant dense<0.000000e+00> : vector<32x128xf32>
    %296 = tpu.matmul %294, %295, %cst_96 {dimension_numbers = #tpu.dot_dimension_numbers<[1], [0], [0], [1], [0, 0, 1, 1], [], []>} : vector<32x144xbf16>, vector<144x128xbf16>, vector<32x128xf32> -> vector<32x128xf32>
    %cst_97 = arith.constant 0.000000e+00 : f32
    %297 = vector.broadcast %cst_97 : f32 to vector<32x128xf32>
    %298 = arith.subf %297, %296 : vector<32x128xf32>
    %299 = math.exp %298 : vector<32x128xf32>
    %cst_98 = arith.constant 1.000000e+00 : f32
    %300 = vector.broadcast %cst_98 : f32 to vector<32x128xf32>
    %301 = arith.addf %300, %299 : vector<32x128xf32>
    %302 = tpu.reciprocal %301 {approx = true} : vector<32x128xf32> -> vector<32x128xf32>
    %303 = arith.mulf %296, %302 : vector<32x128xf32>
    %cst_99 = arith.constant -1.000000e+00 : f32
    %304 = vector.broadcast %cst_99 : f32 to vector<32x128xf32>
    %305 = arith.cmpf oge, %296, %304 : vector<32x128xf32>
    %306 = arith.extui %305 : vector<32x128xi1> to vector<32x128xi32>
    %307 = arith.sitofp %306 : vector<32x128xi32> to vector<32x128xf32>
    %cst_100 = arith.constant -0.818181812 : f32
    %308 = vector.broadcast %cst_100 : f32 to vector<32x128xf32>
    %309 = arith.cmpf oge, %296, %308 : vector<32x128xf32>
    %310 = arith.extui %309 : vector<32x128xi1> to vector<32x128xi32>
    %311 = arith.sitofp %310 : vector<32x128xi32> to vector<32x128xf32>
    %312 = arith.subf %307, %311 : vector<32x128xf32>
    %cst_101 = arith.constant -0.636363626 : f32
    %313 = vector.broadcast %cst_101 : f32 to vector<32x128xf32>
    %314 = arith.cmpf oge, %296, %313 : vector<32x128xf32>
    %315 = arith.extui %314 : vector<32x128xi1> to vector<32x128xi32>
    %316 = arith.sitofp %315 : vector<32x128xi32> to vector<32x128xf32>
    %317 = arith.subf %311, %316 : vector<32x128xf32>
    %cst_102 = arith.constant -0.454545468 : f32
    %318 = vector.broadcast %cst_102 : f32 to vector<32x128xf32>
    %319 = arith.cmpf oge, %296, %318 : vector<32x128xf32>
    %320 = arith.extui %319 : vector<32x128xi1> to vector<32x128xi32>
    %321 = arith.sitofp %320 : vector<32x128xi32> to vector<32x128xf32>
    %322 = arith.subf %316, %321 : vector<32x128xf32>
    %cst_103 = arith.constant -0.272727281 : f32
    %323 = vector.broadcast %cst_103 : f32 to vector<32x128xf32>
    %324 = arith.cmpf oge, %296, %323 : vector<32x128xf32>
    %325 = arith.extui %324 : vector<32x128xi1> to vector<32x128xi32>
    %326 = arith.sitofp %325 : vector<32x128xi32> to vector<32x128xf32>
    %327 = arith.subf %321, %326 : vector<32x128xf32>
    %cst_104 = arith.constant -0.0909090936 : f32
    %328 = vector.broadcast %cst_104 : f32 to vector<32x128xf32>
    %329 = arith.cmpf oge, %296, %328 : vector<32x128xf32>
    %330 = arith.extui %329 : vector<32x128xi1> to vector<32x128xi32>
    %331 = arith.sitofp %330 : vector<32x128xi32> to vector<32x128xf32>
    %332 = arith.subf %326, %331 : vector<32x128xf32>
    %cst_105 = arith.constant 0.0909090936 : f32
    %333 = vector.broadcast %cst_105 : f32 to vector<32x128xf32>
    %334 = arith.cmpf oge, %296, %333 : vector<32x128xf32>
    %335 = arith.extui %334 : vector<32x128xi1> to vector<32x128xi32>
    %336 = arith.sitofp %335 : vector<32x128xi32> to vector<32x128xf32>
    %337 = arith.subf %331, %336 : vector<32x128xf32>
    %cst_106 = arith.constant 0.272727281 : f32
    %338 = vector.broadcast %cst_106 : f32 to vector<32x128xf32>
    %339 = arith.cmpf oge, %296, %338 : vector<32x128xf32>
    %340 = arith.extui %339 : vector<32x128xi1> to vector<32x128xi32>
    %341 = arith.sitofp %340 : vector<32x128xi32> to vector<32x128xf32>
    %342 = arith.subf %336, %341 : vector<32x128xf32>
    %cst_107 = arith.constant 0.454545468 : f32
    %343 = vector.broadcast %cst_107 : f32 to vector<32x128xf32>
    %344 = arith.cmpf oge, %296, %343 : vector<32x128xf32>
    %345 = arith.extui %344 : vector<32x128xi1> to vector<32x128xi32>
    %346 = arith.sitofp %345 : vector<32x128xi32> to vector<32x128xf32>
    %347 = arith.subf %341, %346 : vector<32x128xf32>
    %cst_108 = arith.constant 0.636363626 : f32
    %348 = vector.broadcast %cst_108 : f32 to vector<32x128xf32>
    %349 = arith.cmpf oge, %296, %348 : vector<32x128xf32>
    %350 = arith.extui %349 : vector<32x128xi1> to vector<32x128xi32>
    %351 = arith.sitofp %350 : vector<32x128xi32> to vector<32x128xf32>
    %352 = arith.subf %346, %351 : vector<32x128xf32>
    %cst_109 = arith.constant 0.818181812 : f32
    %353 = vector.broadcast %cst_109 : f32 to vector<32x128xf32>
    %354 = arith.cmpf oge, %296, %353 : vector<32x128xf32>
    %355 = arith.extui %354 : vector<32x128xi1> to vector<32x128xi32>
    %356 = arith.sitofp %355 : vector<32x128xi32> to vector<32x128xf32>
    %357 = arith.subf %351, %356 : vector<32x128xf32>
    %cst_110 = arith.constant 1.000000e+00 : f32
    %358 = vector.broadcast %cst_110 : f32 to vector<32x128xf32>
    %359 = arith.cmpf oge, %296, %358 : vector<32x128xf32>
    %360 = arith.extui %359 : vector<32x128xi1> to vector<32x128xi32>
    %361 = arith.sitofp %360 : vector<32x128xi32> to vector<32x128xf32>
    %362 = arith.subf %356, %361 : vector<32x128xf32>
    %cst_111 = arith.constant -1.000000e+00 : f32
    %363 = vector.broadcast %cst_111 : f32 to vector<32x128xf32>
    %364 = arith.subf %296, %363 : vector<32x128xf32>
    %cst_112 = arith.constant -0.818181812 : f32
    %365 = vector.broadcast %cst_112 : f32 to vector<32x128xf32>
    %366 = arith.subf %296, %365 : vector<32x128xf32>
    %cst_113 = arith.constant -0.636363626 : f32
    %367 = vector.broadcast %cst_113 : f32 to vector<32x128xf32>
    %368 = arith.subf %296, %367 : vector<32x128xf32>
    %cst_114 = arith.constant -0.454545468 : f32
    %369 = vector.broadcast %cst_114 : f32 to vector<32x128xf32>
    %370 = arith.subf %296, %369 : vector<32x128xf32>
    %cst_115 = arith.constant -0.272727281 : f32
    %371 = vector.broadcast %cst_115 : f32 to vector<32x128xf32>
    %372 = arith.subf %296, %371 : vector<32x128xf32>
    %cst_116 = arith.constant -0.0909090936 : f32
    %373 = vector.broadcast %cst_116 : f32 to vector<32x128xf32>
    %374 = arith.subf %296, %373 : vector<32x128xf32>
    %cst_117 = arith.constant 0.0909090936 : f32
    %375 = vector.broadcast %cst_117 : f32 to vector<32x128xf32>
    %376 = arith.subf %296, %375 : vector<32x128xf32>
    %cst_118 = arith.constant 0.272727281 : f32
    %377 = vector.broadcast %cst_118 : f32 to vector<32x128xf32>
    %378 = arith.subf %296, %377 : vector<32x128xf32>
    %cst_119 = arith.constant 0.454545468 : f32
    %379 = vector.broadcast %cst_119 : f32 to vector<32x128xf32>
    %380 = arith.subf %296, %379 : vector<32x128xf32>
    %cst_120 = arith.constant 0.636363626 : f32
    %381 = vector.broadcast %cst_120 : f32 to vector<32x128xf32>
    %382 = arith.subf %296, %381 : vector<32x128xf32>
    %cst_121 = arith.constant 0.818181812 : f32
    %383 = vector.broadcast %cst_121 : f32 to vector<32x128xf32>
    %384 = arith.subf %296, %383 : vector<32x128xf32>
    %cst_122 = arith.constant 5.500000e+00 : f32
    %385 = vector.broadcast %cst_122 : f32 to vector<32x128xf32>
    %386 = arith.mulf %364, %385 : vector<32x128xf32>
    %cst_123 = arith.constant 5.500000e+00 : f32
    %387 = vector.broadcast %cst_123 : f32 to vector<32x128xf32>
    %388 = arith.mulf %366, %387 : vector<32x128xf32>
    %cst_124 = arith.constant 5.50000095 : f32
    %389 = vector.broadcast %cst_124 : f32 to vector<32x128xf32>
    %390 = arith.mulf %368, %389 : vector<32x128xf32>
    %cst_125 = arith.constant 5.500000e+00 : f32
    %391 = vector.broadcast %cst_125 : f32 to vector<32x128xf32>
    %392 = arith.mulf %370, %391 : vector<32x128xf32>
    %cst_126 = arith.constant 5.500000e+00 : f32
    %393 = vector.broadcast %cst_126 : f32 to vector<32x128xf32>
    %394 = arith.mulf %372, %393 : vector<32x128xf32>
    %cst_127 = arith.constant 5.500000e+00 : f32
    %395 = vector.broadcast %cst_127 : f32 to vector<32x128xf32>
    %396 = arith.mulf %374, %395 : vector<32x128xf32>
    %cst_128 = arith.constant 5.500000e+00 : f32
    %397 = vector.broadcast %cst_128 : f32 to vector<32x128xf32>
    %398 = arith.mulf %376, %397 : vector<32x128xf32>
    %cst_129 = arith.constant 5.500000e+00 : f32
    %399 = vector.broadcast %cst_129 : f32 to vector<32x128xf32>
    %400 = arith.mulf %378, %399 : vector<32x128xf32>
    %cst_130 = arith.constant 5.50000095 : f32
    %401 = vector.broadcast %cst_130 : f32 to vector<32x128xf32>
    %402 = arith.mulf %380, %401 : vector<32x128xf32>
    %cst_131 = arith.constant 5.500000e+00 : f32
    %403 = vector.broadcast %cst_131 : f32 to vector<32x128xf32>
    %404 = arith.mulf %382, %403 : vector<32x128xf32>
    %cst_132 = arith.constant 5.500000e+00 : f32
    %405 = vector.broadcast %cst_132 : f32 to vector<32x128xf32>
    %406 = arith.mulf %384, %405 : vector<32x128xf32>
    %407 = arith.mulf %386, %312 : vector<32x128xf32>
    %cst_133 = arith.constant 1.000000e+00 : f32
    %408 = vector.broadcast %cst_133 : f32 to vector<32x128xf32>
    %409 = arith.subf %408, %388 : vector<32x128xf32>
    %410 = arith.mulf %409, %317 : vector<32x128xf32>
    %411 = arith.addf %407, %410 : vector<32x128xf32>
    %412 = arith.mulf %388, %317 : vector<32x128xf32>
    %cst_134 = arith.constant 1.000000e+00 : f32
    %413 = vector.broadcast %cst_134 : f32 to vector<32x128xf32>
    %414 = arith.subf %413, %390 : vector<32x128xf32>
    %415 = arith.mulf %414, %322 : vector<32x128xf32>
    %416 = arith.addf %412, %415 : vector<32x128xf32>
    %417 = arith.mulf %390, %322 : vector<32x128xf32>
    %cst_135 = arith.constant 1.000000e+00 : f32
    %418 = vector.broadcast %cst_135 : f32 to vector<32x128xf32>
    %419 = arith.subf %418, %392 : vector<32x128xf32>
    %420 = arith.mulf %419, %327 : vector<32x128xf32>
    %421 = arith.addf %417, %420 : vector<32x128xf32>
    %422 = arith.mulf %392, %327 : vector<32x128xf32>
    %cst_136 = arith.constant 1.000000e+00 : f32
    %423 = vector.broadcast %cst_136 : f32 to vector<32x128xf32>
    %424 = arith.subf %423, %394 : vector<32x128xf32>
    %425 = arith.mulf %424, %332 : vector<32x128xf32>
    %426 = arith.addf %422, %425 : vector<32x128xf32>
    %427 = arith.mulf %394, %332 : vector<32x128xf32>
    %cst_137 = arith.constant 1.000000e+00 : f32
    %428 = vector.broadcast %cst_137 : f32 to vector<32x128xf32>
    %429 = arith.subf %428, %396 : vector<32x128xf32>
    %430 = arith.mulf %429, %337 : vector<32x128xf32>
    %431 = arith.addf %427, %430 : vector<32x128xf32>
    %432 = arith.mulf %396, %337 : vector<32x128xf32>
    %cst_138 = arith.constant 1.000000e+00 : f32
    %433 = vector.broadcast %cst_138 : f32 to vector<32x128xf32>
    %434 = arith.subf %433, %398 : vector<32x128xf32>
    %435 = arith.mulf %434, %342 : vector<32x128xf32>
    %436 = arith.addf %432, %435 : vector<32x128xf32>
    %437 = arith.mulf %398, %342 : vector<32x128xf32>
    %cst_139 = arith.constant 1.000000e+00 : f32
    %438 = vector.broadcast %cst_139 : f32 to vector<32x128xf32>
    %439 = arith.subf %438, %400 : vector<32x128xf32>
    %440 = arith.mulf %439, %347 : vector<32x128xf32>
    %441 = arith.addf %437, %440 : vector<32x128xf32>
    %442 = arith.mulf %400, %347 : vector<32x128xf32>
    %cst_140 = arith.constant 1.000000e+00 : f32
    %443 = vector.broadcast %cst_140 : f32 to vector<32x128xf32>
    %444 = arith.subf %443, %402 : vector<32x128xf32>
    %445 = arith.mulf %444, %352 : vector<32x128xf32>
    %446 = arith.addf %442, %445 : vector<32x128xf32>
    %447 = arith.mulf %402, %352 : vector<32x128xf32>
    %cst_141 = arith.constant 1.000000e+00 : f32
    %448 = vector.broadcast %cst_141 : f32 to vector<32x128xf32>
    %449 = arith.subf %448, %404 : vector<32x128xf32>
    %450 = arith.mulf %449, %357 : vector<32x128xf32>
    %451 = arith.addf %447, %450 : vector<32x128xf32>
    %452 = arith.mulf %404, %357 : vector<32x128xf32>
    %cst_142 = arith.constant 1.000000e+00 : f32
    %453 = vector.broadcast %cst_142 : f32 to vector<32x128xf32>
    %454 = arith.subf %453, %406 : vector<32x128xf32>
    %455 = arith.mulf %454, %362 : vector<32x128xf32>
    %456 = arith.addf %452, %455 : vector<32x128xf32>
    %cst_143 = arith.constant 2.750000e+00 : f32
    %457 = vector.broadcast %cst_143 : f32 to vector<32x128xf32>
    %458 = arith.mulf %364, %457 : vector<32x128xf32>
    %cst_144 = arith.constant 2.75000024 : f32
    %459 = vector.broadcast %cst_144 : f32 to vector<32x128xf32>
    %460 = arith.mulf %366, %459 : vector<32x128xf32>
    %cst_145 = arith.constant 2.75000024 : f32
    %461 = vector.broadcast %cst_145 : f32 to vector<32x128xf32>
    %462 = arith.mulf %368, %461 : vector<32x128xf32>
    %cst_146 = arith.constant 2.750000e+00 : f32
    %463 = vector.broadcast %cst_146 : f32 to vector<32x128xf32>
    %464 = arith.mulf %370, %463 : vector<32x128xf32>
    %cst_147 = arith.constant 2.750000e+00 : f32
    %465 = vector.broadcast %cst_147 : f32 to vector<32x128xf32>
    %466 = arith.mulf %372, %465 : vector<32x128xf32>
    %cst_148 = arith.constant 2.750000e+00 : f32
    %467 = vector.broadcast %cst_148 : f32 to vector<32x128xf32>
    %468 = arith.mulf %374, %467 : vector<32x128xf32>
    %cst_149 = arith.constant 2.750000e+00 : f32
    %469 = vector.broadcast %cst_149 : f32 to vector<32x128xf32>
    %470 = arith.mulf %376, %469 : vector<32x128xf32>
    %cst_150 = arith.constant 2.75000024 : f32
    %471 = vector.broadcast %cst_150 : f32 to vector<32x128xf32>
    %472 = arith.mulf %378, %471 : vector<32x128xf32>
    %cst_151 = arith.constant 2.75000024 : f32
    %473 = vector.broadcast %cst_151 : f32 to vector<32x128xf32>
    %474 = arith.mulf %380, %473 : vector<32x128xf32>
    %cst_152 = arith.constant 2.750000e+00 : f32
    %475 = vector.broadcast %cst_152 : f32 to vector<32x128xf32>
    %476 = arith.mulf %382, %475 : vector<32x128xf32>
    %477 = arith.mulf %458, %411 : vector<32x128xf32>
    %cst_153 = arith.constant 1.000000e+00 : f32
    %478 = vector.broadcast %cst_153 : f32 to vector<32x128xf32>
    %479 = arith.subf %478, %460 : vector<32x128xf32>
    %480 = arith.mulf %479, %416 : vector<32x128xf32>
    %481 = arith.addf %477, %480 : vector<32x128xf32>
    %482 = arith.mulf %460, %416 : vector<32x128xf32>
    %cst_154 = arith.constant 1.000000e+00 : f32
    %483 = vector.broadcast %cst_154 : f32 to vector<32x128xf32>
    %484 = arith.subf %483, %462 : vector<32x128xf32>
    %485 = arith.mulf %484, %421 : vector<32x128xf32>
    %486 = arith.addf %482, %485 : vector<32x128xf32>
    %487 = arith.mulf %462, %421 : vector<32x128xf32>
    %cst_155 = arith.constant 1.000000e+00 : f32
    %488 = vector.broadcast %cst_155 : f32 to vector<32x128xf32>
    %489 = arith.subf %488, %464 : vector<32x128xf32>
    %490 = arith.mulf %489, %426 : vector<32x128xf32>
    %491 = arith.addf %487, %490 : vector<32x128xf32>
    %492 = arith.mulf %464, %426 : vector<32x128xf32>
    %cst_156 = arith.constant 1.000000e+00 : f32
    %493 = vector.broadcast %cst_156 : f32 to vector<32x128xf32>
    %494 = arith.subf %493, %466 : vector<32x128xf32>
    %495 = arith.mulf %494, %431 : vector<32x128xf32>
    %496 = arith.addf %492, %495 : vector<32x128xf32>
    %497 = arith.mulf %466, %431 : vector<32x128xf32>
    %cst_157 = arith.constant 1.000000e+00 : f32
    %498 = vector.broadcast %cst_157 : f32 to vector<32x128xf32>
    %499 = arith.subf %498, %468 : vector<32x128xf32>
    %500 = arith.mulf %499, %436 : vector<32x128xf32>
    %501 = arith.addf %497, %500 : vector<32x128xf32>
    %502 = arith.mulf %468, %436 : vector<32x128xf32>
    %cst_158 = arith.constant 1.000000e+00 : f32
    %503 = vector.broadcast %cst_158 : f32 to vector<32x128xf32>
    %504 = arith.subf %503, %470 : vector<32x128xf32>
    %505 = arith.mulf %504, %441 : vector<32x128xf32>
    %506 = arith.addf %502, %505 : vector<32x128xf32>
    %507 = arith.mulf %470, %441 : vector<32x128xf32>
    %cst_159 = arith.constant 1.000000e+00 : f32
    %508 = vector.broadcast %cst_159 : f32 to vector<32x128xf32>
    %509 = arith.subf %508, %472 : vector<32x128xf32>
    %510 = arith.mulf %509, %446 : vector<32x128xf32>
    %511 = arith.addf %507, %510 : vector<32x128xf32>
    %512 = arith.mulf %472, %446 : vector<32x128xf32>
    %cst_160 = arith.constant 1.000000e+00 : f32
    %513 = vector.broadcast %cst_160 : f32 to vector<32x128xf32>
    %514 = arith.subf %513, %474 : vector<32x128xf32>
    %515 = arith.mulf %514, %451 : vector<32x128xf32>
    %516 = arith.addf %512, %515 : vector<32x128xf32>
    %517 = arith.mulf %474, %451 : vector<32x128xf32>
    %cst_161 = arith.constant 1.000000e+00 : f32
    %518 = vector.broadcast %cst_161 : f32 to vector<32x128xf32>
    %519 = arith.subf %518, %476 : vector<32x128xf32>
    %520 = arith.mulf %519, %456 : vector<32x128xf32>
    %521 = arith.addf %517, %520 : vector<32x128xf32>
    %cst_162 = arith.constant 1.83333337 : f32
    %522 = vector.broadcast %cst_162 : f32 to vector<32x128xf32>
    %523 = arith.mulf %364, %522 : vector<32x128xf32>
    %cst_163 = arith.constant 1.83333337 : f32
    %524 = vector.broadcast %cst_163 : f32 to vector<32x128xf32>
    %525 = arith.mulf %366, %524 : vector<32x128xf32>
    %cst_164 = arith.constant 1.83333337 : f32
    %526 = vector.broadcast %cst_164 : f32 to vector<32x128xf32>
    %527 = arith.mulf %368, %526 : vector<32x128xf32>
    %cst_165 = arith.constant 1.83333325 : f32
    %528 = vector.broadcast %cst_165 : f32 to vector<32x128xf32>
    %529 = arith.mulf %370, %528 : vector<32x128xf32>
    %cst_166 = arith.constant 1.83333325 : f32
    %530 = vector.broadcast %cst_166 : f32 to vector<32x128xf32>
    %531 = arith.mulf %372, %530 : vector<32x128xf32>
    %cst_167 = arith.constant 1.83333325 : f32
    %532 = vector.broadcast %cst_167 : f32 to vector<32x128xf32>
    %533 = arith.mulf %374, %532 : vector<32x128xf32>
    %cst_168 = arith.constant 1.83333337 : f32
    %534 = vector.broadcast %cst_168 : f32 to vector<32x128xf32>
    %535 = arith.mulf %376, %534 : vector<32x128xf32>
    %cst_169 = arith.constant 1.83333337 : f32
    %536 = vector.broadcast %cst_169 : f32 to vector<32x128xf32>
    %537 = arith.mulf %378, %536 : vector<32x128xf32>
    %cst_170 = arith.constant 1.83333337 : f32
    %538 = vector.broadcast %cst_170 : f32 to vector<32x128xf32>
    %539 = arith.mulf %380, %538 : vector<32x128xf32>
    %540 = arith.mulf %523, %481 : vector<32x128xf32>
    %cst_171 = arith.constant 1.000000e+00 : f32
    %541 = vector.broadcast %cst_171 : f32 to vector<32x128xf32>
    %542 = arith.subf %541, %525 : vector<32x128xf32>
    %543 = arith.mulf %542, %486 : vector<32x128xf32>
    %544 = arith.addf %540, %543 : vector<32x128xf32>
    %545 = arith.mulf %525, %486 : vector<32x128xf32>
    %cst_172 = arith.constant 1.000000e+00 : f32
    %546 = vector.broadcast %cst_172 : f32 to vector<32x128xf32>
    %547 = arith.subf %546, %527 : vector<32x128xf32>
    %548 = arith.mulf %547, %491 : vector<32x128xf32>
    %549 = arith.addf %545, %548 : vector<32x128xf32>
    %550 = arith.mulf %527, %491 : vector<32x128xf32>
    %cst_173 = arith.constant 1.000000e+00 : f32
    %551 = vector.broadcast %cst_173 : f32 to vector<32x128xf32>
    %552 = arith.subf %551, %529 : vector<32x128xf32>
    %553 = arith.mulf %552, %496 : vector<32x128xf32>
    %554 = arith.addf %550, %553 : vector<32x128xf32>
    %555 = arith.mulf %529, %496 : vector<32x128xf32>
    %cst_174 = arith.constant 1.000000e+00 : f32
    %556 = vector.broadcast %cst_174 : f32 to vector<32x128xf32>
    %557 = arith.subf %556, %531 : vector<32x128xf32>
    %558 = arith.mulf %557, %501 : vector<32x128xf32>
    %559 = arith.addf %555, %558 : vector<32x128xf32>
    %560 = arith.mulf %531, %501 : vector<32x128xf32>
    %cst_175 = arith.constant 1.000000e+00 : f32
    %561 = vector.broadcast %cst_175 : f32 to vector<32x128xf32>
    %562 = arith.subf %561, %533 : vector<32x128xf32>
    %563 = arith.mulf %562, %506 : vector<32x128xf32>
    %564 = arith.addf %560, %563 : vector<32x128xf32>
    %565 = arith.mulf %533, %506 : vector<32x128xf32>
    %cst_176 = arith.constant 1.000000e+00 : f32
    %566 = vector.broadcast %cst_176 : f32 to vector<32x128xf32>
    %567 = arith.subf %566, %535 : vector<32x128xf32>
    %568 = arith.mulf %567, %511 : vector<32x128xf32>
    %569 = arith.addf %565, %568 : vector<32x128xf32>
    %570 = arith.mulf %535, %511 : vector<32x128xf32>
    %cst_177 = arith.constant 1.000000e+00 : f32
    %571 = vector.broadcast %cst_177 : f32 to vector<32x128xf32>
    %572 = arith.subf %571, %537 : vector<32x128xf32>
    %573 = arith.mulf %572, %516 : vector<32x128xf32>
    %574 = arith.addf %570, %573 : vector<32x128xf32>
    %575 = arith.mulf %537, %516 : vector<32x128xf32>
    %cst_178 = arith.constant 1.000000e+00 : f32
    %576 = vector.broadcast %cst_178 : f32 to vector<32x128xf32>
    %577 = arith.subf %576, %539 : vector<32x128xf32>
    %578 = arith.mulf %577, %521 : vector<32x128xf32>
    %579 = arith.addf %575, %578 : vector<32x128xf32>
    %c0_179 = arith.constant 0 : index
    %c0_180 = arith.constant 0 : index
    %580 = vector.load %arg5[%c0_179, %c0_180] : memref<288x128xf32, #tpu.memory_space<vmem>>, vector<32x128xf32>
    tpu.vector_store %arg5[%c0_179, %c0_180], %544 {strides = array<i32>} : memref<288x128xf32, #tpu.memory_space<vmem>>, vector<32x128xf32>,
    %c32_181 = arith.constant 32 : index
    %c0_182 = arith.constant 0 : index
    %581 = vector.load %arg5[%c32_181, %c0_182] : memref<288x128xf32, #tpu.memory_space<vmem>>, vector<32x128xf32>
    tpu.vector_store %arg5[%c32_181, %c0_182], %549 {strides = array<i32>} : memref<288x128xf32, #tpu.memory_space<vmem>>, vector<32x128xf32>,
    %c64_183 = arith.constant 64 : index
    %c0_184 = arith.constant 0 : index
    %582 = vector.load %arg5[%c64_183, %c0_184] : memref<288x128xf32, #tpu.memory_space<vmem>>, vector<32x128xf32>
    tpu.vector_store %arg5[%c64_183, %c0_184], %554 {strides = array<i32>} : memref<288x128xf32, #tpu.memory_space<vmem>>, vector<32x128xf32>,
    %c96_185 = arith.constant 96 : index
    %c0_186 = arith.constant 0 : index
    %583 = vector.load %arg5[%c96_185, %c0_186] : memref<288x128xf32, #tpu.memory_space<vmem>>, vector<32x128xf32>
    tpu.vector_store %arg5[%c96_185, %c0_186], %559 {strides = array<i32>} : memref<288x128xf32, #tpu.memory_space<vmem>>, vector<32x128xf32>,
    %c128_187 = arith.constant 128 : index
    %c0_188 = arith.constant 0 : index
    %584 = vector.load %arg5[%c128_187, %c0_188] : memref<288x128xf32, #tpu.memory_space<vmem>>, vector<32x128xf32>
    tpu.vector_store %arg5[%c128_187, %c0_188], %564 {strides = array<i32>} : memref<288x128xf32, #tpu.memory_space<vmem>>, vector<32x128xf32>,
    %c160 = arith.constant 160 : index
    %c0_189 = arith.constant 0 : index
    %585 = vector.load %arg5[%c160, %c0_189] : memref<288x128xf32, #tpu.memory_space<vmem>>, vector<32x128xf32>
    tpu.vector_store %arg5[%c160, %c0_189], %569 {strides = array<i32>} : memref<288x128xf32, #tpu.memory_space<vmem>>, vector<32x128xf32>,
    %c192 = arith.constant 192 : index
    %c0_190 = arith.constant 0 : index
    %586 = vector.load %arg5[%c192, %c0_190] : memref<288x128xf32, #tpu.memory_space<vmem>>, vector<32x128xf32>
    tpu.vector_store %arg5[%c192, %c0_190], %574 {strides = array<i32>} : memref<288x128xf32, #tpu.memory_space<vmem>>, vector<32x128xf32>,
    %c224 = arith.constant 224 : index
    %c0_191 = arith.constant 0 : index
    %587 = vector.load %arg5[%c224, %c0_191] : memref<288x128xf32, #tpu.memory_space<vmem>>, vector<32x128xf32>
    tpu.vector_store %arg5[%c224, %c0_191], %579 {strides = array<i32>} : memref<288x128xf32, #tpu.memory_space<vmem>>, vector<32x128xf32>,
    %c256 = arith.constant 256 : index
    %c0_192 = arith.constant 0 : index
    %588 = vector.load %arg5[%c256, %c0_192] : memref<288x128xf32, #tpu.memory_space<vmem>>, vector<32x128xf32>
    tpu.vector_store %arg5[%c256, %c0_192], %303 {strides = array<i32>} : memref<288x128xf32, #tpu.memory_space<vmem>>, vector<32x128xf32>,
    %c0_193 = arith.constant 0 : index
    %c0_194 = arith.constant 0 : index
    %589 = vector.load %arg5[%c0_193, %c0_194] : memref<288x128xf32, #tpu.memory_space<vmem>>, vector<288x128xf32>
    %c0_195 = arith.constant 0 : index
    %c0_196 = arith.constant 0 : index
    %590 = vector.load %arg3[%c0_195, %c0_196] : memref<8x288xbf16, #tpu.memory_space<vmem>>, vector<8x288xbf16>
    %591 = arith.truncf %589 : vector<288x128xf32> to vector<288x128xbf16>
    %cst_197 = arith.constant dense<0.000000e+00> : vector<8x128xf32>
    %592 = tpu.matmul %590, %591, %cst_197 {dimension_numbers = #tpu.dot_dimension_numbers<[1], [0], [0], [1], [0, 0, 1, 1], [], []>} : vector<8x288xbf16>, vector<288x128xbf16>, vector<8x128xf32> -> vector<8x128xf32>
    %c0_198 = arith.constant 0 : index
    %c0_199 = arith.constant 0 : index
    %593 = vector.load %arg4[%c0_198, %c0_199] : memref<8x128xf32, #tpu.memory_space<vmem>>, vector<8x128xf32>
    tpu.vector_store %arg4[%c0_198, %c0_199], %592 {strides = array<i32>} : memref<8x128xf32, #tpu.memory_space<vmem>>, vector<8x128xf32>,
    return
  }
  func.func @transform_0(%arg0: i32) -> (i32, i32) {
    %c0_i32 = arith.constant 0 : i32
    %c0_i32_0 = arith.constant 0 : i32
    return %c0_i32, %arg0 : i32, i32
  }
  func.func @transform_1(%arg0: i32) -> (i32, i32) {
    %c0_i32 = arith.constant 0 : i32
    %c0_i32_0 = arith.constant 0 : i32
    %c0_i32_1 = arith.constant 0 : i32
    return %c0_i32, %c0_i32_0 : i32, i32
  }
  func.func @transform_2(%arg0: i32) -> (i32, i32) {
    %c0_i32 = arith.constant 0 : i32
    %c0_i32_0 = arith.constant 0 : i32
    %c0_i32_1 = arith.constant 0 : i32
    return %c0_i32, %c0_i32_0 : i32, i32
  }
  func.func @transform_3(%arg0: i32) -> (i32, i32) {
    %c0_i32 = arith.constant 0 : i32
    %c0_i32_0 = arith.constant 0 : i32
    return %c0_i32, %arg0 : i32, i32
  }
}

</mosaic_0001>

<bundles_post_ra>
// kernel: _lambda_.1
= control target key start
LH: loop header
LB: loop body
LE: loop exit
PB: predicated region body
PF: predicated region fallthrough
CT: control target
= control target key end

     0   :  { %8 = vsyncpa [#allocation4], 0  ;;  %s3594_s0 = inlined_call_operand.hbm [shape: f32[16,256], index: 0, kind: input, shape index: {}]   ;;  %s3595_s1 = inlined_call_operand.hbm [shape: bf16[32,144], index: 1, kind: input, shape index: {}]   ;;  %s3596_s2 = inlined_call_operand.hbm [shape: bf16[8,288], index: 2, kind: input, shape index: {}]   ;;  %s3597_s3 = inlined_call_operand.hbm [shape: f32[8,256], index: 3, kind: output, shape index: {}]  }
   0x1   :  { %10 = vsyncpa [#allocation4 + $0x1], 0 }
   0x2   :  { %11 = vsyncpa [#allocation7], 0 }
   0x3   :  { %12 = vsyncpa [#allocation5], 0 }
   0x4   :  { %14 = vsyncpa [#allocation5 + $0x1], 0  ;;  %s2326_s12 = smov 0   ;;  %s2328_s13 = smov 0  }
   0x5   :  { %s2330_s14 = smov 0   ;;  %s2332_s15 = smov 0  }
   0x6 LB: > { %s2347_s16 = sadd.s32 4294967295, %s2294_s15   ;;  %s1843_s17 = sadd.s32 4294967294, %s2294_s15   ;;  %s2294_s15 = sphi %s2332_s15, %s3803_s15   ;;  %s2290_s14 = sphi %s2330_s14, %s3802_s14   ;;  %s2286_s13 = sphi %s2328_s13, %s3801_s13   ;;  %s2282_s12 = sphi %s2326_s12, %s3800_s12  }
   0x7   : > { %s2351_s18 = sadd.s32 1, %s2294_s15   ;;  %s27_s19 = sadd.s32 1, %s2290_s14 }
   0x8   : > { %s24_s20 = ssub.s32 %s2294_s15, %s2351_s18  ;;  %p34_p0 = scmp.ne.s32.totalorder %s2290_s14, %s2286_s13 }
   0x9   : > { %p25_p1 = scmp.eq.s32.totalorder %s24_s20, 0  ;;  %p35_p2 = scmp.eq.s32.totalorder %s2294_s15, 0 }
   0xa   : > { %p40_p3 = scmp.ne.s32.totalorder %s2286_s13, %s2282_s12  ;;  %p3599_p4 = scmp.eq.s32.totalorder %s2347_s16, 0 }
   0xb   : > { %s2363_s21 = scalar_select %p25_p1, %s2290_s14, %s27_s19  }
   0xc   : > { %p2365_p5 = por %p35_p2, %p34_p0  ;;  %p2371_p6 = por %p3599_p4, %p40_p3 }
   0xd   : > { %p106_p7 = scmp.eq.s32.totalorder %s2347_s16, 1  ;;  %p112_p8 = scmp.eq.s32.totalorder %s1843_s17, 1 }
   0xe   : > { %s3663_s23 = scalar_select %p2371_p6, 1, 0 }
   0xf   : > { %p1844_p9 = scmp.ge.s32.totalorder %s2294_s15, 1  ;;  %p119_p10 = scmp.lt.s32.totalorder %s2294_s15, 3 }
  0x10   : > { %p2378_p11 = por %p106_p7, %p34_p0  ;;  %p2382_p12 = por %p112_p8, %p40_p3 }
  0x11   : > { %p2386_p13 = pnand %p1844_p9, %p119_p10  ;;  %s2296_s27 = smov [#allocation6]  }
  0x12   : > { %s3664_s24 = scalar_select %p2378_p11, 1, 0 }
  0x13   : > { %s3665_s25 = scalar_select %p2382_p12, 1, 0 }
  0x14   : > { %s3666_s26 = scalar_select %p2386_p13, 1, 0 }
  0x15   : > { %p2052_p1 = pneg %p2386_p13  ;;  %s131_s28 = sshll.u32 %s2296_s27, 4  ;;  %s132_s28 = int_to_ptr.vmem [resolvable:$true] %s131_s28 }
  0x16   : > { %p2069_p3 = scmp.lt.s32.totalorder %s2294_s15, 2  ;;  %s2297_s30 = smov [#allocation8]  }
  0x17   : > { %p2394_p2 = pnand %p2052_p1, %p3599_p4  ;;  %s145_s4 = sshll.u32 %s2297_s30, 4  ;;  %s146_s4 = int_to_ptr.vmem [resolvable:$true] %s145_s4 }
  0x18   : > { %s2157_s5 = scalar_lea.vmem %s132_s28, 512  ;;  %p2165_p12 = scmp.lt.s32.totalorder %s132_s28, %s132_s28 }
  0x19   : > { %p2148_p7 = pneg %p2394_p2  ;;  %p2158_p8 = scmp.ne.s32.totalorder %s132_s28, %s2157_s5 }
  0x1a   : > { %p2166_p11 = scmp.lt.s32.totalorder %s2157_s5, %s2157_s5 }
  0x1b   : > { %p2160_p9 = pnand %p2158_p8, %p2148_p7 }
  0x1c   : > { %p2167_p1 = por %p2166_p11, %p2165_p12 }
  0x1d   : > { %p2161_p10 = pneg %p2160_p9 }
  0x1f   : > { %p2168_p4 = pnand %p2167_p1, %p2161_p10 }
  0x21   : > { %2171 = shalt.err (!%p2168_p4)
}
  0x22   : > { %s2298_s6 = smov 128   ;;  %s2299_s7 = smov 8  }
  0x23   : > { %2055 = dma.hbm_to_vmem [thread:$0]  (!%p2394_p2), %s3595_s1, 512, %s132_s28, [#allocation7], %s2298_s6, %s2298_s6, %s2299_s7  }
  0x24   : > { %p2417_p8 = pnand %p2069_p3, %p2365_p5  ;;  %s2183_s11 = scalar_lea.vmem %s146_s4, 192 }
  0x25   : > { %p2184_p4 = scmp.ne.s32.totalorder %s146_s4, %s2183_s11  ;;  %p2191_p9 = scmp.lt.s32.totalorder %s146_s4, %s146_s4 }
  0x26   : > { %p2192_p10 = scmp.lt.s32.totalorder %s2183_s11, %s2183_s11 }
  0x27   : > { %p2186_p11 = pnand %p2184_p4, %p2148_p7 }
  0x28   : > { %p2193_p1 = por %p2192_p10, %p2191_p9 }
  0x29   : > { %p2187_p12 = pneg %p2186_p11 }
  0x2b   : > { %p2194_p0 = pnand %p2193_p1, %p2187_p12 }
  0x2d   : > { %2197 = shalt.err (!%p2194_p0)
}
  0x2e   : > { %2058 = dma.hbm_to_vmem [thread:$0]  (!%p2394_p2), %s3596_s2, 192, %s146_s4, [#allocation7]  }
  0x2f   : > { %s156_s20 = sand.u32 1, %s2290_s14   ;;  %s1849_s27 = sshll.u32 %s2294_s15, 7 }
  0x30   : > { %s1848_s22 = sshll.u32 %s156_s20, 4  ;;  %s2434_s5 = scalar_lea.hbm %s3594_s0, %s1849_s27 }
  0x31   : > { %s160_s8 = scalar_lea.vmem [#allocation3], %s1848_s22  ;;  %s2438_s9 = scalar_lea.sflag [#allocation4], %s156_s20 }
  0x32   : > { %s166_s29 = sshll.u32 %s160_s8, 4  ;;  %s2198_s11 = scalar_lea.hbm %s2434_s5, 256  ;;  %s2436_s29 = int_to_ptr.vmem [resolvable:$true] %s166_s29 }
  0x33   : > { %p2199_p5 = scmp.ne.s32.totalorder %s2434_s5, %s2198_s11  ;;  %p2200_p2 = pneg %p2417_p8 }
  0x34   : > { %s2203_s19 = scalar_lea.hbm %s3594_s0, 512  ;;  %p2204_p7 = scmp.lt.s32.totalorder %s2434_s5, %s3594_s0 }
  0x35   : > { %p2201_p0 = pnand %p2200_p2, %p2199_p5  ;;  %p2205_p4 = scmp.lt.s32.totalorder %s2203_s19, %s2198_s11 }
  0x37   : > { %p2202_p3 = pneg %p2201_p0  ;;  %p2206_p11 = por %p2205_p4, %p2204_p7 }
  0x39   : > { %p2207_p12 = pnand %p2206_p11, %p2202_p3 }
  0x3b   : > { %2210 = shalt.err (!%p2207_p12)
}
  0x3c   : > { %s2211_s20 = scalar_lea.vmem %s2436_s29, 256  ;;  %s2300_s22 = smov [#allocation3]  }
  0x3d   : > { %p2212_p9 = scmp.ne.s32.totalorder %s2436_s29, %s2211_s20  ;;  %s2216_s30 = sshll.u32 %s2300_s22, 4  ;;  %s2217_s30 = int_to_ptr.vmem [resolvable:$false] %s2216_s30 }
  0x3e   : > { %s2218_s8 = scalar_lea.vmem %s2217_s30, 512  ;;  %p2219_p5 = scmp.lt.s32.totalorder %s2436_s29, %s2217_s30 }
  0x3f   : > { %p2214_p10 = pnand %p2212_p9, %p2200_p2  ;;  %p2220_p0 = scmp.lt.s32.totalorder %s2218_s8, %s2211_s20 }
  0x41   : > { %p2215_p1 = pneg %p2214_p10  ;;  %p2221_p6 = por %p2220_p0, %p2219_p5 }
  0x43   : > { %p2222_p13 = pnand %p2221_p6, %p2215_p1 }
  0x45   : > { %2225 = shalt.err (!%p2222_p13)
}
  0x46   : > { %s2301_s11 = smov 256   ;;  %p3669_p2 = scmp.ne.s32.totalorder %s3666_s26, 0 }
  0x47   : > { %2062 = dma.hbm_to_vmem [thread:$0]  (!%p2417_p8), %s2434_s5, 256, %s2436_s29, %s2438_s9, %s2301_s11, %s2298_s6, %s2299_s7  }
  0x48   : > { %178 = sbr.rel (%p3669_p2) target bundleno = 853 (0x355), region = 32 }
  0x4d   : > { %s2464_s4 = sand.u32 1, %s2286_s13   ;;  %p3670_p6 = scmp.ne.s32.totalorder %s3663_s23, 0 }
  0x4e   : > { %s1851_s17 = sshll.u32 %s2464_s4, 4  ;;  %s181_s19 = scalar_lea.sflag [#allocation4], %s2464_s4 }
  0x4f   : > { %s184_s27 = scalar_lea.vmem [#allocation3], %s1851_s17 }
  0x50   : > { %2269 = dma.done.wait (%p3670_p6), %s181_s19, 256  }
  0x51   : > { %2271 = vsyncadd (%p3670_p6), %s181_s19, 4294967040  ;;  %p3671_p13 = scmp.eq.s32.totalorder %s2347_s16, 0 }
  0x53   : > { %2273 = dma.done.wait (%p3671_p13), [#allocation7], 704   ;;  %p3672_p8 = pmov %p3671_p13 }
  0x54   : > { %v2302_v0 = vmov 0   ;;  %v2477_v1 = vld [vmem:[%s184_s27] sm:$0xff]  ;;  %v2479_v2 = vld [vmem:[%s184_s27 + $0x8] sm:$0xff]  ;;  %v3602_v3 = vmov 0.0   ;;  %s1854_s23 = sshll.u32 %s2464_s4, 3  ;;  %s2004_s26 = sshll.u32 %s2347_s16, 7 }
  0x55   : > { %2275 = vsyncadd (%p3672_p8), [#allocation7], 4294966592  ;;  %696 = vmatprep.subr.bf16.mxu0 %v2302_v0  ;;  %vm276_vm0 = vcmp.ge.f32.partialorder %v2477_v1, 0.09090909  ;;  %vm277_vm1 = vcmp.ge.f32.partialorder %v2479_v2, 0.09090909  ;;  %s3551_s29 = scalar_lea.hbm %s3597_s3, %s2004_s26 }
  0x56   : > { %vm284_vm2 = vcmp.ge.f32.partialorder %v2477_v1, 0.27272728  ;;  %v2485_v4 = vsel %vm276_vm0, 1.0, %v3602_v3  ;;  %v2488_v5 = vsel %vm277_vm1, 1.0, %v3602_v3  ;;  %vm285_vm3 = vcmp.ge.f32.partialorder %v2479_v2, 0.27272728 }
  0x57   : > { %v1869_v6 = vsel %vm284_vm2, 1.0, %v3602_v3  ;;  %v1870_v7 = vsel %vm285_vm3, 1.0, %v3602_v3  ;;  %vm292_vm4 = vcmp.ge.f32.partialorder %v2477_v1, 0.45454547  ;;  %vm293_vm5 = vcmp.ge.f32.partialorder %v2479_v2, 0.45454547 }
  0x58   : > { %v2496_v8 = vsub.f32 %v2485_v4, %v1869_v6  ;;  %v1871_v9 = vsel %vm292_vm4, 1.0, %v3602_v3  ;;  %v1872_v10 = vsel %vm293_vm5, 1.0, %v3602_v3  ;;  %vm300_vm6 = vcmp.ge.f32.partialorder %v2477_v1, 0.6363636  ;;  %s214_s6 = scalar_lea.vmem [#allocation9], %s1854_s23  ;;  %s1741_s9 = scalar_lea.sflag [#allocation5], %s2464_s4 }
  0x59   : > { %v2502_v11 = vsub.f32 %v2488_v5, %v1870_v7  ;;  %v2504_v12 = vsub.f32 %v1869_v6, %v1871_v9  ;;  %vm301_vm7 = vcmp.ge.f32.partialorder %v2479_v2, 0.6363636  ;;  %v1873_v13 = vsel %vm300_vm6, 1.0, %v3602_v3  ;;  %s1754_s7 = sshll.u32 %s214_s6, 4  ;;  %p3797_p7 = scmp.ne.s32.totalorder %s3664_s24, 0  ;;  %s3553_s7 = int_to_ptr.vmem [resolvable:$true] %s1754_s7 }
  0x5a   : > { %v2508_v14 = vsub.f32 %v1870_v7, %v1872_v10  ;;  %v1874_v15 = vsel %vm301_vm7, 1.0, %v3602_v3  ;;  %vm308_vm8 = vcmp.ge.f32.partialorder %v2477_v1, 0.8181818  ;;  %vm309_vm9 = vcmp.ge.f32.partialorder %v2479_v2, 0.8181818  ;;  %s2226_s16 = scalar_lea.vmem %s3553_s7, 128 }
  0x5b   : > { %v306_v16 = vsub.f32 %v1871_v9, %v1873_v13  ;;  %v1875_v17 = vsel %vm308_vm8, 1.0, %v3602_v3  ;;  %v1876_v18 = vsel %vm309_vm9, 1.0, %v3602_v3  ;;  %vm316_vm10 = vcmp.ge.f32.partialorder %v2477_v1, 1.0  ;;  %p2227_p3 = scmp.ne.s32.totalorder %s3553_s7, %s2226_s16  ;;  %s2305_s28 = smov [#allocation9]  }
  0x5c   : > { %v307_v19 = vsub.f32 %v1872_v10, %v1874_v15  ;;  %v314_v20 = vsub.f32 %v1873_v13, %v1875_v17  ;;  %vm317_vm11 = vcmp.ge.f32.partialorder %v2479_v2, 1.0  ;;  %v1877_v21 = vsel %vm316_vm10, 1.0, %v3602_v3  ;;  %s2230_s20 = sshll.u32 %s2305_s28, 4  ;;  %s2231_s20 = int_to_ptr.vmem [resolvable:$false] %s2230_s20 }
  0x5d   : > { %v315_v22 = vsub.f32 %v1874_v15, %v1876_v18  ;;  %v1878_v23 = vsel %vm317_vm11, 1.0, %v3602_v3  ;;  %v1893_v24 = vadd.f32 -0.27272728, %v2477_v1  ;;  %v1894_v25 = vadd.f32 -0.27272728, %v2479_v2  ;;  %p2228_p4 = pnand %p2227_p3, %p3797_p7  ;;  %s2232_s22 = scalar_lea.vmem %s2231_s20, 256 }
  0x5e   : > { %v322_v26 = vsub.f32 %v1875_v17, %v1877_v21  ;;  %v1895_v27 = vadd.f32 -0.45454547, %v2477_v1  ;;  %v1896_v28 = vadd.f32 -0.45454547, %v2479_v2  ;;  %v1897_v29 = vadd.f32 -0.6363636, %v2477_v1  ;;  %p2233_p12 = scmp.lt.s32.totalorder %s3553_s7, %s2231_s20  ;;  %p2234_p9 = scmp.lt.s32.totalorder %s2232_s22, %s2226_s16 }
  0x5f   : > { %v323_v30 = vsub.f32 %v1876_v18, %v1878_v23  ;;  %v1898_v31 = vadd.f32 -0.6363636, %v2479_v2  ;;  %v1899_v32 = vadd.f32 -0.8181818, %v2477_v1  ;;  %v1900_v33 = vadd.f32 -0.8181818, %v2479_v2  ;;  %p2229_p11 = pneg %p2228_p4 }
  0x60   : > { %v2527_v34 = vmul.f32 5.5, %v1893_v24  ;;  %v2529_v35 = vmul.f32 5.5, %v1894_v25  ;;  %v362_v36 = vmul.f32 5.500001, %v1895_v27  ;;  %v363_v37 = vmul.f32 5.500001, %v1896_v28  ;;  %p2235_p10 = por %p2234_p9, %p2233_p12 }
  0x61   : > { %v364_v38 = vmul.f32 5.5, %v1897_v29  ;;  %v365_v39 = vmul.f32 5.5, %v1898_v31  ;;  %v366_v40 = vmul.f32 5.5, %v1899_v32  ;;  %v367_v41 = vmul.f32 5.5, %v1900_v33 }
  0x62   : > { %v418_v42 = vsub.f32 1.0, %v2527_v34  ;;  %v419_v43 = vsub.f32 1.0, %v2529_v35  ;;  %v424_v44 = vmul.f32 %v2527_v34, %v2504_v12  ;;  %v425_v45 = vmul.f32 %v2529_v35, %v2508_v14  ;;  %p2236_p1 = pnand %p2235_p10, %p2229_p11 }
  0x63   : > { %v426_v46 = vsub.f32 1.0, %v362_v36  ;;  %v427_v47 = vsub.f32 1.0, %v363_v37  ;;  %v432_v48 = vmul.f32 %v362_v36, %v306_v16  ;;  %v433_v49 = vmul.f32 %v363_v37, %v307_v19 }
  0x64   : > { %v434_v50 = vsub.f32 1.0, %v364_v38  ;;  %v435_v51 = vsub.f32 1.0, %v365_v39  ;;  %v440_v52 = vmul.f32 %v364_v38, %v314_v20  ;;  %v441_v53 = vmul.f32 %v365_v39, %v315_v22 }
  0x65   : > { %v428_v54 = vmul.f32 %v426_v46, %v306_v16  ;;  %v429_v55 = vmul.f32 %v427_v47, %v307_v19  ;;  %v442_v56 = vsub.f32 1.0, %v366_v40  ;;  %v443_v57 = vsub.f32 1.0, %v367_v41 }
  0x66   : > { %v436_v58 = vmul.f32 %v434_v50, %v314_v20  ;;  %v437_v59 = vmul.f32 %v435_v51, %v315_v22  ;;  %v462_v60 = vmul.f32 2.7500002, %v1893_v24  ;;  %v463_v61 = vmul.f32 2.7500002, %v1894_v25 }
  0x67   : > { %v430_v62 = vadd.f32 %v428_v54, %v424_v44  ;;  %v431_v63 = vadd.f32 %v429_v55, %v425_v45  ;;  %v444_v6 = vmul.f32 %v442_v56, %v322_v26  ;;  %v445_v7 = vmul.f32 %v443_v57, %v323_v30 }
  0x68   : > { %v438_v9 = vadd.f32 %v436_v58, %v432_v48  ;;  %v439_v10 = vadd.f32 %v437_v59, %v433_v49  ;;  %v464_v13 = vmul.f32 2.7500002, %v1895_v27  ;;  %v465_v15 = vmul.f32 2.7500002, %v1896_v28 }
  0x69   : > { %v446_v17 = vadd.f32 %v444_v6, %v440_v52  ;;  %v447_v18 = vadd.f32 %v445_v7, %v441_v53  ;;  %v466_v21 = vmul.f32 2.75, %v1897_v29  ;;  %v467_v23 = vmul.f32 2.75, %v1898_v31 }
  0x6a   : > { %v518_v16 = vsub.f32 1.0, %v462_v60  ;;  %v519_v19 = vsub.f32 1.0, %v463_v61  ;;  %v524_v32 = vmul.f32 %v462_v60, %v430_v62  ;;  %v525_v33 = vmul.f32 %v463_v61, %v431_v63 }
  0x6b   : > { %v526_v20 = vsub.f32 1.0, %v464_v13  ;;  %v527_v22 = vsub.f32 1.0, %v465_v15  ;;  %v532_v34 = vmul.f32 %v464_v13, %v438_v9  ;;  %v533_v35 = vmul.f32 %v465_v15, %v439_v10 }
  0x6c   : > { %v534_v36 = vsub.f32 1.0, %v466_v21  ;;  %v535_v37 = vsub.f32 1.0, %v467_v23  ;;  %v554_v26 = vmul.f32 1.8333334, %v1893_v24  ;;  %v555_v30 = vmul.f32 1.8333334, %v1894_v25 }
  0x6d   : > { %v528_v38 = vmul.f32 %v526_v20, %v438_v9  ;;  %v529_v39 = vmul.f32 %v527_v22, %v439_v10  ;;  %v556_v40 = vmul.f32 1.8333334, %v1895_v27  ;;  %v557_v41 = vmul.f32 1.8333334, %v1896_v28 }
  0x6e   : > { %v536_v44 = vmul.f32 %v534_v36, %v446_v17  ;;  %v537_v45 = vmul.f32 %v535_v37, %v447_v18  ;;  %v608_v29 = vsub.f32 1.0, %v554_v26  ;;  %v609_v31 = vsub.f32 1.0, %v555_v30 }
  0x6f   : > { %v530_v46 = vadd.f32 %v528_v38, %v524_v32  ;;  %v531_v47 = vadd.f32 %v529_v39, %v525_v33  ;;  %v616_v48 = vsub.f32 1.0, %v556_v40  ;;  %v617_v49 = vsub.f32 1.0, %v557_v41 }
  0x70   : > { %v538_v50 = vadd.f32 %v536_v44, %v532_v34  ;;  %v539_v51 = vadd.f32 %v537_v45, %v533_v35  ;;  %v1891_v52 = vadd.f32 -0.09090909, %v2477_v1  ;;  %v1892_v53 = vadd.f32 -0.09090909, %v2479_v2 }
  0x71   : > { %v614_v24 = vmul.f32 %v554_v26, %v530_v46  ;;  %v615_v25 = vmul.f32 %v555_v30, %v531_v47  ;;  %v420_v54 = vmul.f32 %v418_v42, %v2504_v12  ;;  %v421_v27 = vmul.f32 %v419_v43, %v2508_v14 }
  0x72   : > { %v618_v28 = vmul.f32 %v616_v48, %v538_v50  ;;  %v619_v55 = vmul.f32 %v617_v49, %v539_v51  ;;  %v358_v56 = vmul.f32 5.5, %v1891_v52  ;;  %v359_v57 = vmul.f32 5.5, %v1892_v53 }
  0x73   : > { %v460_v58 = vmul.f32 2.75, %v1891_v52  ;;  %v461_v59 = vmul.f32 2.75, %v1892_v53  ;;  %v520_v60 = vmul.f32 %v518_v16, %v430_v62  ;;  %v521_v61 = vmul.f32 %v519_v19, %v431_v63 }
  0x74   : > { %v620_v6 = vadd.f32 %v618_v28, %v614_v24  ;;  %v621_v7 = vadd.f32 %v619_v55, %v615_v25  ;;  %v416_v9 = vmul.f32 %v358_v56, %v2496_v8  ;;  %v417_v10 = vmul.f32 %v359_v57, %v2502_v11 }
  0x75   : > { %v552_v13 = vmul.f32 1.8333334, %v1891_v52  ;;  %v553_v15 = vmul.f32 1.8333334, %v1892_v53  ;;  %v610_v17 = vmul.f32 %v608_v29, %v530_v46  ;;  %v611_v12 = vmul.f32 %v609_v31, %v531_v47 }
  0x76   : > { %v669_v42 = vpack.c.bf16 %v621_v7, %v620_v6  ;;  %v422_v14 = vadd.f32 %v420_v54, %v416_v9  ;;  %v423_v43 = vadd.f32 %v421_v27, %v417_v10  ;;  %vm268_vm12 = vcmp.ge.f32.partialorder %v2477_v1, -0.09090909 }
  0x77   : > { %vm269_vm13 = vcmp.ge.f32.partialorder %v2479_v2, -0.09090909  ;;  %v1865_v62 = vsel %vm268_vm12, 1.0, %v3602_v3  ;;  %v1889_v63 = vadd.f32 0.09090909, %v2477_v1  ;;  %v410_v18 = vsub.f32 1.0, %v358_v56 }
  0x78   : > { %697 = vmatpush1.bf16.msra.mxu0 %v669_v42  ;;  %v516_v21 = vmul.f32 %v460_v58, %v422_v14  ;;  %v517_v23 = vmul.f32 %v461_v59, %v423_v43  ;;  %v1866_v16 = vsel %vm269_vm13, 1.0, %v3602_v3  ;;  %v282_v19 = vsub.f32 %v1865_v62, %v2485_v4 }
  0x79   : > { %698 = vmatprep.subr.bf16.mxu0 %v2302_v0  ;;  %v283_v32 = vsub.f32 %v1866_v16, %v2488_v5  ;;  %v1890_v33 = vadd.f32 0.09090909, %v2479_v2  ;;  %v356_v20 = vmul.f32 5.5, %v1889_v63  ;;  %v411_v22 = vsub.f32 1.0, %v359_v57 }
  0x7a   : > { %v522_v34 = vadd.f32 %v520_v60, %v516_v21  ;;  %v523_v35 = vadd.f32 %v521_v61, %v517_v23  ;;  %v412_v36 = vmul.f32 %v410_v18, %v2496_v8  ;;  %v458_v37 = vmul.f32 2.75, %v1889_v63 }
  0x7b   : > { %v357_v26 = vmul.f32 5.5, %v1890_v33  ;;  %v408_v30 = vmul.f32 %v356_v20, %v282_v19  ;;  %v413_v38 = vmul.f32 %v411_v22, %v2502_v11  ;;  %v459_v39 = vmul.f32 2.75, %v1890_v33 }
  0x7c   : > { %v606_v40 = vmul.f32 %v552_v13, %v522_v34  ;;  %v607_v4 = vmul.f32 %v553_v15, %v523_v35  ;;  %v510_v41 = vsub.f32 1.0, %v460_v58  ;;  %v511_v44 = vsub.f32 1.0, %v461_v59 }
  0x7d   : > { %v409_v45 = vmul.f32 %v357_v26, %v283_v32  ;;  %v414_v5 = vadd.f32 %v412_v36, %v408_v30  ;;  %v550_v29 = vmul.f32 1.8333333, %v1889_v63  ;;  %v551_v31 = vmul.f32 1.8333333, %v1890_v33 }
  0x7e   : > { %v612_v46 = vadd.f32 %v610_v17, %v606_v40  ;;  %v613_v47 = vadd.f32 %v611_v12, %v607_v4  ;;  %v512_v48 = vmul.f32 %v510_v41, %v422_v14  ;;  %v513_v49 = vmul.f32 %v511_v44, %v423_v43 }
  0x7f   : > { %v415_v50 = vadd.f32 %v413_v38, %v409_v45  ;;  %v508_v8 = vmul.f32 %v458_v37, %v414_v5  ;;  %v600_v51 = vsub.f32 1.0, %v552_v13  ;;  %v601_v52 = vsub.f32 1.0, %v553_v15 }
  0x80   : > { %v668_v53 = vpack.c.bf16 %v613_v47, %v612_v46  ;;  %vm260_vm14 = vcmp.ge.f32.partialorder %v2477_v1, -0.27272728  ;;  %vm261_vm15 = vcmp.ge.f32.partialorder %v2479_v2, -0.27272728  ;;  %v1887_v11 = vadd.f32 0.27272728, %v2477_v1 }
  0x81   : > { %v509_v24 = vmul.f32 %v459_v39, %v415_v50  ;;  %v514_v25 = vadd.f32 %v512_v48, %v508_v8  ;;  %v602_v54 = vmul.f32 %v600_v51, %v522_v34  ;;  %v603_v27 = vmul.f32 %v601_v52, %v523_v35 }
  0x82   : > { %699 = vmatpush1.bf16.msra.mxu0 %v668_v53  ;;  %v1863_v28 = vsel %vm260_vm14, 1.0, %v3602_v3  ;;  %v1864_v55 = vsel %vm261_vm15, 1.0, %v3602_v3  ;;  %v1888_v56 = vadd.f32 0.27272728, %v2479_v2  ;;  %v354_v57 = vmul.f32 5.5, %v1887_v11 }
  0x83   : > { %700 = vmatprep.subr.bf16.mxu0 %v2302_v0  ;;  %v515_v58 = vadd.f32 %v513_v49, %v509_v24  ;;  %v598_v59 = vmul.f32 %v550_v29, %v514_v25  ;;  %v274_v60 = vsub.f32 %v1863_v28, %v1865_v62  ;;  %v275_v61 = vsub.f32 %v1864_v55, %v1866_v16 }
  0x84   : > { %v355_v6 = vmul.f32 5.5, %v1888_v56  ;;  %v402_v7 = vsub.f32 1.0, %v356_v20  ;;  %v403_v9 = vsub.f32 1.0, %v357_v26  ;;  %v456_v10 = vmul.f32 2.75, %v1887_v11 }
  0x85   : > { %v599_v13 = vmul.f32 %v551_v31, %v515_v58  ;;  %v604_v15 = vadd.f32 %v602_v54, %v598_v59  ;;  %v400_v17 = vmul.f32 %v354_v57, %v274_v60  ;;  %v457_v12 = vmul.f32 2.75, %v1888_v56 }
  0x86   : > { %v401_v42 = vmul.f32 %v355_v6, %v275_v61  ;;  %v404_v14 = vmul.f32 %v402_v7, %v282_v19  ;;  %v405_v43 = vmul.f32 %v403_v9, %v283_v32  ;;  %v502_v63 = vsub.f32 1.0, %v458_v37 }
  0x87   : > { %v605_v18 = vadd.f32 %v603_v27, %v599_v13  ;;  %v503_v21 = vsub.f32 1.0, %v459_v39  ;;  %v548_v23 = vmul.f32 1.8333333, %v1887_v11  ;;  %v549_v33 = vmul.f32 1.8333333, %v1888_v56 }
  0x88   : > { %v406_v22 = vadd.f32 %v404_v14, %v400_v17  ;;  %v407_v34 = vadd.f32 %v405_v43, %v401_v42  ;;  %v504_v62 = vmul.f32 %v502_v63, %v414_v5  ;;  %v592_v16 = vsub.f32 1.0, %v550_v29 }
  0x89   : > { %v667_v35 = vpack.c.bf16 %v605_v18, %v604_v15  ;;  %v505_v20 = vmul.f32 %v503_v21, %v415_v50  ;;  %v593_v36 = vsub.f32 1.0, %v551_v31  ;;  %vm252_vm0 = vcmp.ge.f32.partialorder %v2477_v1, -0.45454547 }
  0x8a   : > { %v500_v26 = vmul.f32 %v456_v10, %v406_v22  ;;  %v501_v30 = vmul.f32 %v457_v12, %v407_v34  ;;  %v594_v38 = vmul.f32 %v592_v16, %v514_v25  ;;  %vm253_vm1 = vcmp.ge.f32.partialorder %v2479_v2, -0.45454547 }
  0x8b   : > { %701 = vmatpush1.bf16.msra.mxu0 %v667_v35  ;;  %v595_v19 = vmul.f32 %v593_v36, %v515_v58  ;;  %v1861_v32 = vsel %vm252_vm0, 1.0, %v3602_v3  ;;  %v1862_v37 = vsel %vm253_vm1, 1.0, %v3602_v3  ;;  %v1885_v39 = vadd.f32 0.45454547, %v2477_v1 }
  0x8c   : > { %702 = vmatprep.subr.bf16.mxu0 %v2302_v0  ;;  %v506_v40 = vadd.f32 %v504_v62, %v500_v26  ;;  %v507_v4 = vadd.f32 %v505_v20, %v501_v30  ;;  %v266_v41 = vsub.f32 %v1861_v32, %v1863_v28  ;;  %v267_v44 = vsub.f32 %v1862_v37, %v1864_v55 }
  0x8d   : > { %v1886_v45 = vadd.f32 0.45454547, %v2479_v2  ;;  %v352_v5 = vmul.f32 5.5, %v1885_v39  ;;  %v394_v29 = vsub.f32 1.0, %v354_v57  ;;  %v395_v31 = vsub.f32 1.0, %v355_v6 }
  0x8e   : > { %v590_v46 = vmul.f32 %v548_v23, %v506_v40  ;;  %v591_v47 = vmul.f32 %v549_v33, %v507_v4  ;;  %v454_v48 = vmul.f32 2.75, %v1885_v39  ;;  %v494_v49 = vsub.f32 1.0, %v456_v10 }
  0x8f   : > { %v353_v50 = vmul.f32 5.5, %v1886_v45  ;;  %v392_v8 = vmul.f32 %v352_v5, %v266_v41  ;;  %v396_v51 = vmul.f32 %v394_v29, %v274_v60  ;;  %v397_v52 = vmul.f32 %v395_v31, %v275_v61 }
  0x90   : > { %v596_v53 = vadd.f32 %v594_v38, %v590_v46  ;;  %v597_v11 = vadd.f32 %v595_v19, %v591_v47  ;;  %v455_v24 = vmul.f32 2.75, %v1886_v45  ;;  %v495_v25 = vsub.f32 1.0, %v457_v12 }
  0x91   : > { %v393_v54 = vmul.f32 %v353_v50, %v267_v44  ;;  %v398_v27 = vadd.f32 %v396_v51, %v392_v8  ;;  %v496_v28 = vmul.f32 %v494_v49, %v406_v22  ;;  %v546_v55 = vmul.f32 1.8333333, %v1885_v39 }
  0x92   : > { %v666_v56 = vpack.c.bf16 %v597_v11, %v596_v53  ;;  %v497_v58 = vmul.f32 %v495_v25, %v407_v34  ;;  %v547_v57 = vmul.f32 1.8333333, %v1886_v45  ;;  %v584_v59 = vsub.f32 1.0, %v548_v23 }
  0x93   : > { %v399_v6 = vadd.f32 %v397_v52, %v393_v54  ;;  %v492_v7 = vmul.f32 %v454_v48, %v398_v27  ;;  %v585_v9 = vsub.f32 1.0, %v549_v33  ;;  %vm244_vm2 = vcmp.ge.f32.partialorder %v2477_v1, -0.6363636 }
  0x94   : > { %703 = vmatpush1.bf16.msra.mxu0 %v666_v56  ;;  %v586_v60 = vmul.f32 %v584_v59, %v506_v40  ;;  %vm245_vm3 = vcmp.ge.f32.partialorder %v2479_v2, -0.6363636  ;;  %v1859_v61 = vsel %vm244_vm2, 1.0, %v3602_v3  ;;  %v1883_v10 = vadd.f32 0.6363636, %v2477_v1 }
  0x95   : > { %704 = vmatprep.subr.bf16.mxu0 %v2302_v0  ;;  %v493_v13 = vmul.f32 %v455_v24, %v399_v6  ;;  %v498_v15 = vadd.f32 %v496_v28, %v492_v7  ;;  %v587_v17 = vmul.f32 %v585_v9, %v507_v4  ;;  %v1860_v12 = vsel %vm245_vm3, 1.0, %v3602_v3 }
  0x96   : > { %v258_v42 = vsub.f32 %v1859_v61, %v1861_v32  ;;  %v259_v14 = vsub.f32 %v1860_v12, %v1862_v37  ;;  %v1884_v43 = vadd.f32 0.6363636, %v2479_v2  ;;  %v350_v63 = vmul.f32 5.500001, %v1883_v10 }
  0x97   : > { %v499_v18 = vadd.f32 %v497_v58, %v493_v13  ;;  %v582_v21 = vmul.f32 %v546_v55, %v498_v15  ;;  %v386_v23 = vsub.f32 1.0, %v352_v5  ;;  %v387_v33 = vsub.f32 1.0, %v353_v50 }
  0x98   : > { %v351_v22 = vmul.f32 5.500001, %v1884_v43  ;;  %v384_v34 = vmul.f32 %v350_v63, %v258_v42  ;;  %v452_v62 = vmul.f32 2.7500002, %v1883_v10  ;;  %v453_v16 = vmul.f32 2.7500002, %v1884_v43 }
  0x99   : > { %v583_v35 = vmul.f32 %v547_v57, %v499_v18  ;;  %v588_v20 = vadd.f32 %v586_v60, %v582_v21  ;;  %v388_v36 = vmul.f32 %v386_v23, %v266_v41  ;;  %v389_v26 = vmul.f32 %v387_v33, %v267_v44 }
  0x9a   : > { %v385_v30 = vmul.f32 %v351_v22, %v259_v14  ;;  %v486_v38 = vsub.f32 1.0, %v454_v48  ;;  %v487_v19 = vsub.f32 1.0, %v455_v24  ;;  %v544_v32 = vmul.f32 1.8333334, %v1883_v10 }
  0x9b   : > { %v589_v37 = vadd.f32 %v587_v17, %v583_v35  ;;  %v390_v39 = vadd.f32 %v388_v36, %v384_v34  ;;  %v545_v40 = vmul.f32 1.8333334, %v1884_v43  ;;  %v576_v4 = vsub.f32 1.0, %v546_v55 }
  0x9c   : > { %v391_v45 = vadd.f32 %v389_v26, %v385_v30  ;;  %v488_v29 = vmul.f32 %v486_v38, %v398_v27  ;;  %v489_v5 = vmul.f32 %v487_v19, %v399_v6  ;;  %v577_v31 = vsub.f32 1.0, %v547_v57 }
  0x9d   : > { %v665_v46 = vpack.c.bf16 %v589_v37, %v588_v20  ;;  %v484_v47 = vmul.f32 %v452_v62, %v390_v39  ;;  %v578_v49 = vmul.f32 %v576_v4, %v498_v15  ;;  %vm236_vm4 = vcmp.ge.f32.partialorder %v2477_v1, -0.8181818 }
  0x9e   : > { %v485_v50 = vmul.f32 %v453_v16, %v391_v45  ;;  %v579_v41 = vmul.f32 %v577_v31, %v499_v18  ;;  %vm237_vm5 = vcmp.ge.f32.partialorder %v2479_v2, -0.8181818  ;;  %v1857_v44 = vsel %vm236_vm4, 1.0, %v3602_v3 }
  0x9f   : > { %705 = vmatpush1.bf16.msra.mxu0 %v665_v46  ;;  %v490_v48 = vadd.f32 %v488_v29, %v484_v47  ;;  %v2579_v8 = vsel %vm237_vm5, 1.0, %v3602_v3  ;;  %v250_v51 = vsub.f32 %v1857_v44, %v1859_v61  ;;  %v1881_v52 = vadd.f32 0.8181818, %v2477_v1 }
  0xa0   : > { %706 = vmatprep.subr.bf16.mxu0 %v2302_v0  ;;  %v491_v53 = vadd.f32 %v489_v5, %v485_v50  ;;  %v251_v11 = vsub.f32 %v2579_v8, %v1860_v12  ;;  %v1882_v24 = vadd.f32 0.8181818, %v2479_v2  ;;  %v378_v25 = vsub.f32 1.0, %v350_v63 }
  0xa1   : > { %v574_v54 = vmul.f32 %v544_v32, %v490_v48  ;;  %v348_v27 = vmul.f32 5.5, %v1881_v52  ;;  %v379_v28 = vsub.f32 1.0, %v351_v22  ;;  %v450_v55 = vmul.f32 2.7500002, %v1881_v52 }
  0xa2   : > { %v575_v56 = vmul.f32 %v545_v40, %v491_v53  ;;  %v349_v58 = vmul.f32 5.5, %v1882_v24  ;;  %v380_v57 = vmul.f32 %v378_v25, %v258_v42  ;;  %v451_v59 = vmul.f32 2.7500002, %v1882_v24 }
  0xa3   : > { %v580_v6 = vadd.f32 %v578_v49, %v574_v54  ;;  %v376_v7 = vmul.f32 %v348_v27, %v250_v51  ;;  %v381_v9 = vmul.f32 %v379_v28, %v259_v14  ;;  %v478_v60 = vsub.f32 1.0, %v452_v62 }
  0xa4   : > { %v581_v61 = vadd.f32 %v579_v41, %v575_v56  ;;  %v377_v10 = vmul.f32 %v349_v58, %v251_v11  ;;  %v479_v13 = vsub.f32 1.0, %v453_v16  ;;  %v542_v15 = vmul.f32 1.8333334, %v1881_v52 }
  0xa5   : > { %v382_v17 = vadd.f32 %v380_v57, %v376_v7  ;;  %v480_v12 = vmul.f32 %v478_v60, %v390_v39  ;;  %v543_v43 = vmul.f32 1.8333334, %v1882_v24  ;;  %v568_v63 = vsub.f32 1.0, %v544_v32 }
  0xa6   : > { %v664_v18 = vpack.c.bf16 %v581_v61, %v580_v6  ;;  %v383_v21 = vadd.f32 %v381_v9, %v377_v10  ;;  %v481_v23 = vmul.f32 %v479_v13, %v391_v45  ;;  %v569_v33 = vsub.f32 1.0, %v545_v40 }
  0xa7   : > { %v476_v22 = vmul.f32 %v450_v55, %v382_v17  ;;  %v570_v34 = vmul.f32 %v568_v63, %v490_v48  ;;  %vm230_vm6 = vcmp.ge.f32.partialorder %v2477_v1, -1.0  ;;  %vm231_vm7 = vcmp.ge.f32.partialorder %v2479_v2, -1.0  ;;  %v2115_v48 = vld [vmem:[#allocation6 + $0x4] ss:$8 sps:$4 sm:$0xff]  }
  0xa8   : > { %707 = vmatpush1.bf16.msra.mxu0 %v664_v18  ;;  %v477_v42 = vmul.f32 %v451_v59, %v383_v21  ;;  %v571_v14 = vmul.f32 %v569_v33, %v491_v53  ;;  %v1855_v62 = vsel %vm230_vm6, 1.0, %v3602_v3  ;;  %v1856_v16 = vsel %vm231_vm7, 1.0, %v3602_v3 }
  0xa9   : > { %708 = vmatprep.subr.bf16.mxu0 %v2302_v0  ;;  %v482_v35 = vadd.f32 %v480_v12, %v476_v22  ;;  %v242_v20 = vsub.f32 %v1855_v62, %v1857_v44  ;;  %v243_v36 = vsub.f32 %v1856_v16, %v2579_v8  ;;  %v1879_v26 = vadd.f32 1.0, %v2477_v1 }
  0xaa   : > { %v483_v30 = vadd.f32 %v481_v23, %v477_v42  ;;  %v1880_v38 = vadd.f32 1.0, %v2479_v2  ;;  %v370_v19 = vsub.f32 1.0, %v348_v27  ;;  %v371_v32 = vsub.f32 1.0, %v349_v58  ;;  %v2113_v42 = vld [vmem:[#allocation6] ss:$8 sps:$4 sm:$0xff]  }
  0xab   : > { %v566_v37 = vmul.f32 %v542_v15, %v482_v35  ;;  %v346_v39 = vmul.f32 5.5, %v1879_v26  ;;  %v470_v40 = vsub.f32 1.0, %v450_v55  ;;  %v448_v47 = vmul.f32 2.75, %v1879_v26 }
  0xac   : > { %v567_v4 = vmul.f32 %v543_v43, %v483_v30  ;;  %v347_v45 = vmul.f32 5.5, %v1880_v38  ;;  %v372_v29 = vmul.f32 %v370_v19, %v250_v51  ;;  %v373_v5 = vmul.f32 %v371_v32, %v251_v11 }
  0xad   : > { %v572_v31 = vadd.f32 %v570_v34, %v566_v37  ;;  %v368_v46 = vmul.f32 %v346_v39, %v242_v20  ;;  %v471_v49 = vsub.f32 1.0, %v451_v59  ;;  %v449_v44 = vmul.f32 2.75, %v1880_v38 }
  0xae   : > { %v573_v50 = vadd.f32 %v571_v14, %v567_v4  ;;  %v369_v41 = vmul.f32 %v347_v45, %v243_v36  ;;  %v472_v52 = vmul.f32 %v470_v40, %v382_v17  ;;  %v560_v24 = vsub.f32 1.0, %v542_v15  ;;  %v2116_v14 = vld [vmem:[#allocation6 + $0x14] ss:$8 sps:$4 sm:$0xff]  }
  0xaf   : > { %v374_v8 = vadd.f32 %v372_v29, %v368_v46  ;;  %v473_v53 = vmul.f32 %v471_v49, %v383_v21  ;;  %v561_v27 = vsub.f32 1.0, %v543_v43  ;;  %v218_v28 = vsub.f32 0.0, %v2477_v1 }
  0xb0   : > { %v663_v25 = vpack.c.bf16 %v573_v50, %v572_v31  ;;  %v375_v54 = vadd.f32 %v373_v5, %v369_v41  ;;  %v540_v51 = vmul.f32 1.8333334, %v1879_v26  ;;  %v219_v11 = vsub.f32 0.0, %v2479_v2 }
  0xb1   : > { %v468_v55 = vmul.f32 %v448_v47, %v374_v8  ;;  %vm689_vm8 = vcmask 130048   ;;  %v541_v58 = vmul.f32 1.8333334, %v1880_v38  ;;  %v220_v57 = vmul.f32 1.442695, %v218_v28 }
  0xb2   : > { %709 = vmatpush1.bf16.msra.mxu0 %v663_v25  ;;  %v469_v56 = vmul.f32 %v449_v44, %v375_v54  ;;  %1905 = vmatprep.mubr.msk.bf16.mxu0 %vm689_vm8, %v2115_v48  ;;  %v562_v6 = vmul.f32 %v560_v24, %v482_v35  ;;  %v222_v7 = vmul.f32 1.442695, %v219_v11  ;;  %v563_v60 = vmul.f32 %v561_v27, %v483_v30 }
  0xb3   : > { %710 = vmatprep.subr.bf16.mxu0 %v2302_v0  ;;  %v474_v59 = vadd.f32 %v472_v52, %v468_v55  ;;  %2122 = vpow2.f32 %v220_v57 }
  0xb4   : > { %v475_v9 = vadd.f32 %v473_v53, %v469_v56  ;;  %2124 = vpow2.f32 %v222_v7 }
  0xb5   : > { %v558_v61 = vmul.f32 %v540_v51, %v474_v59 }
  0xb6   : > { %v559_v10 = vmul.f32 %v541_v58, %v475_v9 }
  0xb7   : > { %v564_v13 = vadd.f32 %v562_v6, %v558_v61 }
  0xb8   : > { %v565_v15 = vadd.f32 %v563_v60, %v559_v10 }
  0xba   : > { %v662_v17 = vpack.c.bf16 %v565_v15, %v564_v13 }
  0xbc   : > { %711 = vmatpush1.bf16.msra.mxu0 %v662_v17 }
  0xbd   : > { %726 = vmatprep.subr.bf16.mxu0 %v2302_v0  ;;  %v2118_v0 = vld [vmem:[#allocation6 + $0x10] ss:$8 sps:$4 sm:$0xff]  }
  0xc0   : > { %v2123_v12 = vpop.eup %2122 }
  0xc1   : > { %v2125_v43 = vpop.eup %2124  ;;  %v224_v63 = vadd.f32 1.0, %v2123_v12 }
  0xc2   : > { %v225_v18 = vadd.f32 1.0, %v2125_v43 }
  0xc3   : > { %2126 = vrcp.f32 %v224_v63 }
  0xc4   : > { %2128 = vrcp.f32 %v225_v18 }
  0xd0   : > { %v2127_v21 = vpop.eup %2126 }
  0xd1   : > { %v2129_v23 = vpop.eup %2128  ;;  %v228_v33 = vmul.f32 %v2127_v21, %v2477_v1 }
  0xd2   : > { %v229_v22 = vmul.f32 %v2129_v23, %v2479_v2 }
  0xd4   : > { %v670_v34 = vpack.c.bf16 %v229_v22, %v228_v33 }
  0xd6   : > { %727 = vmatpush2.bf16.msra.mxu0 %v670_v34 }
  0xd9   : > { %729 = vmatmul.mubr.bf16.vlgmr.msra.gmra.mxu0 %v2113_v42 }
  0xda   : > { %1906 = vmatprep.mubr.msk.bf16.mxu0 %vm689_vm8, %v2116_v14 }
  0xe1   : > { %737 = vmatmul.mubr.bf16.gmra.mxu0 %v2118_v0 }
 0x199   : > { %v2601_v62 = vpop.f32.mrf.mxu0 }
 0x19a   : > { %3673 = vst [vmem:[#allocation13_spill] sm:$0xff] %v2601_v62  ;;  %vm877_vm9 = vcmp.ge.f32.partialorder %v2601_v62, 0.27272728  ;;  %vm893_vm10 = vcmp.ge.f32.partialorder %v2601_v62, 0.45454547  ;;  %vm941_vm13 = vcmp.ge.f32.partialorder %v2601_v62, 1.0 }
 0x19b   : > { %vm909_vm11 = vcmp.ge.f32.partialorder %v2601_v62, 0.6363636  ;;  %v732_v1 = vpop.f32.mrf.mxu0  ;;  %v2607_v2 = vsel %vm877_vm9, 1.0, %v3602_v3  ;;  %v1939_v16 = vsel %vm893_vm10, 1.0, %v3602_v3  ;;  %vm925_vm12 = vcmp.ge.f32.partialorder %v2601_v62, 0.8181818 }
 0x19c   : > { %v1943_v35 = vsel %vm909_vm11, 1.0, %v3602_v3  ;;  %v2613_v20 = vsub.f32 %v2607_v2, %v1939_v16  ;;  %v2618_v26 = vsel %vm925_vm12, 1.0, %v3602_v3  ;;  %v2627_v19 = vsel %vm941_vm13, 1.0, %v3602_v3 }
 0x19d   : > { %v2615_v36 = vsub.f32 %v1939_v16, %v1943_v35  ;;  %v2621_v30 = vpop.f32.mrf.mxu0  ;;  %v2624_v38 = vsub.f32 %v1943_v35, %v2618_v26  ;;  %v2630_v32 = vadd.f32 -0.27272728, %v2601_v62  ;;  %v2633_v37 = vadd.f32 -0.45454547, %v2601_v62 }
 0x19e   : > { %3674 = vst [vmem:[#allocation14_spill] sm:$0xff] %v2613_v20  ;;  %3675 = vst [vmem:[#allocation15_spill] sm:$0xff] %v2621_v30  ;;  %vm878_vm14 = vcmp.ge.f32.partialorder %v2621_v30, 0.27272728  ;;  %vm894_vm15 = vcmp.ge.f32.partialorder %v2621_v30, 0.45454547 }
 0x19f   : > { %vm910_vm0 = vcmp.ge.f32.partialorder %v2621_v30, 0.6363636  ;;  %v735_v40 = vpop.f32.mrf.mxu0  ;;  %v2641_v4 = vsel %vm878_vm14, 1.0, %v3602_v3  ;;  %v1940_v45 = vsel %vm894_vm15, 1.0, %v3602_v3  ;;  %vm926_vm1 = vcmp.ge.f32.partialorder %v2621_v30, 0.8181818 }
 0x1a0   : > { %v1944_v29 = vsel %vm910_vm0, 1.0, %v3602_v3  ;;  %v2647_v5 = vsub.f32 %v2641_v4, %v1940_v45  ;;  %v2652_v46 = vsel %vm926_vm1, 1.0, %v3602_v3  ;;  %vm942_vm2 = vcmp.ge.f32.partialorder %v2621_v30, 1.0 }
 0x1a1   : > { %v2649_v31 = vsub.f32 %v1940_v45, %v1944_v29  ;;  %v2655_v47 = vpop.f32.mrf.mxu0  ;;  %v2658_v49 = vsub.f32 %v1944_v29, %v2652_v46  ;;  %v2661_v50 = vsel %vm942_vm2, 1.0, %v3602_v3  ;;  %v2664_v41 = vadd.f32 -0.27272728, %v2621_v30 }
 0x1a2   : > { %3676 = vst [vmem:[#allocation16_spill] sm:$0xff] %v2655_v47  ;;  %v2667_v44 = vadd.f32 -0.45454547, %v2621_v30  ;;  %vm879_vm3 = vcmp.ge.f32.partialorder %v2655_v47, 0.27272728  ;;  %vm943_vm7 = vcmp.ge.f32.partialorder %v2655_v47, 1.0 }
 0x1a3   : > { %vm895_vm4 = vcmp.ge.f32.partialorder %v2655_v47, 0.45454547  ;;  %vm911_vm5 = vcmp.ge.f32.partialorder %v2655_v47, 0.6363636  ;;  %v740_v8 = vpop.f32.mrf.mxu0  ;;  %v2675_v52 = vsel %vm879_vm3, 1.0, %v3602_v3  ;;  %v1953_v51 = vsel %vm943_vm7, 1.0, %v3602_v3 }
 0x1a4   : > { %v1941_v53 = vsel %vm895_vm4, 1.0, %v3602_v3  ;;  %v1945_v24 = vsel %vm911_vm5, 1.0, %v3602_v3  ;;  %vm927_vm6 = vcmp.ge.f32.partialorder %v2655_v47, 0.8181818  ;;  %v2689_v11 = vadd.f32 -0.27272728, %v2655_v47 }
 0x1a5   : > { %v2681_v25 = vsub.f32 %v2675_v52, %v1941_v53  ;;  %v923_v54 = vsub.f32 %v1941_v53, %v1945_v24  ;;  %v1949_v27 = vsel %vm927_vm6, 1.0, %v3602_v3  ;;  %v2685_v28 = vpop.f32.mrf.mxu0  ;;  %v2692_v56 = vadd.f32 -0.45454547, %v2655_v47 }
 0x1a6   : > { %3677 = vst [vmem:[#allocation17_spill] sm:$0xff] %v2685_v28  ;;  %v939_v55 = vsub.f32 %v1945_v24, %v1949_v27  ;;  %vm880_vm8 = vcmp.ge.f32.partialorder %v2685_v28, 0.27272728  ;;  %vm896_vm9 = vcmp.ge.f32.partialorder %v2685_v28, 0.45454547  ;;  %v955_v58 = vsub.f32 %v1949_v27, %v1953_v51 }
 0x1a7   : > { %vm912_vm10 = vcmp.ge.f32.partialorder %v2685_v28, 0.6363636  ;;  %v743_v57 = vpop.f32.mrf.mxu0  ;;  %v2698_v59 = vsel %vm880_vm8, 1.0, %v3602_v3  ;;  %v1942_v6 = vsel %vm896_vm9, 1.0, %v3602_v3  ;;  %vm928_vm11 = vcmp.ge.f32.partialorder %v2685_v28, 0.8181818 }
 0x1a8   : > { %v1946_v7 = vsel %vm912_vm10, 1.0, %v3602_v3  ;;  %v2704_v9 = vsub.f32 %v2698_v59, %v1942_v6  ;;  %v1950_v61 = vsel %vm928_vm11, 1.0, %v3602_v3  ;;  %vm944_vm12 = vcmp.ge.f32.partialorder %v2685_v28, 1.0 }
 0x1a9   : > { %v924_v60 = vsub.f32 %v1942_v6, %v1946_v7  ;;  %v940_v10 = vsub.f32 %v1946_v7, %v1950_v61  ;;  %v1954_v13 = vsel %vm944_vm12, 1.0, %v3602_v3  ;;  %v1986_v15 = vadd.f32 -0.27272728, %v2685_v28 }
 0x1aa   : > { %v2711_v17 = vadd.f32 -0.45454547, %v2685_v28  ;;  %v956_v12 = vsub.f32 %v1950_v61, %v1954_v13  ;;  %v1993_v43 = vadd.f32 -0.6363636, %v2655_v47  ;;  %v1994_v63 = vadd.f32 -0.6363636, %v2685_v28 }
 0x1ab   : > { %v1997_v18 = vadd.f32 -0.8181818, %v2655_v47  ;;  %v1998_v21 = vadd.f32 -0.8181818, %v2685_v28  ;;  %v2718_v23 = vmul.f32 5.5, %v2689_v11  ;;  %v2720_v33 = vmul.f32 5.5, %v1986_v15 }
 0x1ac   : > { %v1035_v22 = vmul.f32 5.500001, %v2692_v56  ;;  %v1036_v34 = vmul.f32 5.500001, %v2711_v17  ;;  %v1039_v42 = vmul.f32 5.5, %v1993_v43  ;;  %v1040_v14 = vmul.f32 5.5, %v1994_v63 }
 0x1ad   : > { %3678 = vst [vmem:[#allocation18_spill] sm:$0xff] %v2720_v33  ;;  %v1043_v0 = vmul.f32 5.5, %v1997_v18  ;;  %v1044_v1 = vmul.f32 5.5, %v1998_v21  ;;  %v1159_v40 = vmul.f32 %v2718_v23, %v2681_v25  ;;  %v1160_v45 = vmul.f32 %v2720_v33, %v2704_v9 }
 0x1ae   : > { %v1163_v29 = vsub.f32 1.0, %v1035_v22  ;;  %v1164_v8 = vsub.f32 1.0, %v1036_v34  ;;  %v1175_v53 = vmul.f32 %v1035_v22, %v923_v54  ;;  %v1176_v24 = vmul.f32 %v1036_v34, %v924_v60 }
 0x1af   : > { %v1179_v27 = vsub.f32 1.0, %v1039_v42  ;;  %v1180_v51 = vsub.f32 1.0, %v1040_v14  ;;  %v1191_v57 = vmul.f32 %v1039_v42, %v939_v55  ;;  %v1192_v61 = vmul.f32 %v1040_v14, %v940_v10 }
 0x1b0   : > { %v1167_v6 = vmul.f32 %v1163_v29, %v923_v54  ;;  %v1168_v7 = vmul.f32 %v1164_v8, %v924_v60  ;;  %v1195_v13 = vsub.f32 1.0, %v1043_v0  ;;  %v1196_v35 = vsub.f32 1.0, %v1044_v1 }
 0x1b1   : > { %v1183_v18 = vmul.f32 %v1179_v27, %v939_v55  ;;  %v1184_v21 = vmul.f32 %v1180_v51, %v940_v10  ;;  %v2731_v16 = vmul.f32 2.7500002, %v2689_v11  ;;  %v2737_v22 = vmul.f32 2.7500002, %v1986_v15 }
 0x1b2   : > { %v2733_v48 = vadd.f32 %v1167_v6, %v1159_v40  ;;  %v2735_v39 = vadd.f32 %v1168_v7, %v1160_v45  ;;  %v1199_v3 = vmul.f32 %v1195_v13, %v955_v58  ;;  %v1200_v42 = vmul.f32 %v1196_v35, %v956_v12 }
 0x1b3   : > { %3680 = vst [vmem:[#allocation20_spill] sm:$0xff] %v2737_v22  ;;  %v1187_v34 = vadd.f32 %v1183_v18, %v1175_v53  ;;  %v1188_v33 = vadd.f32 %v1184_v21, %v1176_v24  ;;  %v1239_v54 = vmul.f32 2.7500002, %v2692_v56  ;;  %v1240_v55 = vmul.f32 2.7500002, %v2711_v17 }
 0x1b4   : > { %3679 = vst [vmem:[#allocation19_spill] sm:$0xff] %v2735_v39  ;;  %v1203_v60 = vadd.f32 %v1199_v3, %v1191_v57  ;;  %v1243_v10 = vmul.f32 2.75, %v1993_v43  ;;  %v1244_v14 = vmul.f32 2.75, %v1994_v63  ;;  %v1204_v0 = vadd.f32 %v1200_v42, %v1192_v61 }
 0x1b5   : > { %v1359_v58 = vmul.f32 %v2731_v16, %v2733_v48  ;;  %v1360_v45 = vmul.f32 %v2737_v22, %v2735_v39  ;;  %v1363_v29 = vsub.f32 1.0, %v1239_v54  ;;  %v1364_v12 = vsub.f32 1.0, %v1240_v55 }
 0x1b6   : > { %v1375_v35 = vmul.f32 %v1239_v54, %v1187_v34  ;;  %v1376_v8 = vmul.f32 %v1240_v55, %v1188_v33  ;;  %v1379_v3 = vsub.f32 1.0, %v1243_v10  ;;  %v1380_v53 = vsub.f32 1.0, %v1244_v14 }
 0x1b7   : > { %v2748_v43 = vmul.f32 1.8333334, %v2689_v11  ;;  %v1367_v63 = vmul.f32 %v1363_v29, %v1187_v34  ;;  %v1368_v24 = vmul.f32 %v1364_v12, %v1188_v33  ;;  %v2750_v27 = vmul.f32 1.8333334, %v1986_v15 }
 0x1b8   : > { %v1423_v51 = vmul.f32 1.8333334, %v2692_v56  ;;  %v1383_v57 = vmul.f32 %v1379_v3, %v1203_v60  ;;  %v1384_v6 = vmul.f32 %v1380_v53, %v1204_v0  ;;  %v1424_v7 = vmul.f32 1.8333334, %v2711_v17 }
 0x1b9   : > { %3681 = vst [vmem:[#allocation21_spill] sm:$0xff] %v2748_v43  ;;  %3682 = vst [vmem:[#allocation22_spill] sm:$0xff] %v2750_v27  ;;  %v2755_v13 = vadd.f32 %v1367_v63, %v1359_v58  ;;  %v2757_v18 = vadd.f32 %v1368_v24, %v1360_v45  ;;  %vm799_vm13 = vcmp.ge.f32.partialorder %v2655_v47, -0.6363636  ;;  %vm800_vm14 = vcmp.ge.f32.partialorder %v2685_v28, -0.6363636 }
 0x1ba   : > { %v1543_v11 = vsub.f32 1.0, %v1423_v51  ;;  %v1387_v42 = vadd.f32 %v1383_v57, %v1375_v35  ;;  %v1388_v34 = vadd.f32 %v1384_v6, %v1376_v8  ;;  %v1544_v33 = vsub.f32 1.0, %v1424_v7 }
 0x1bb   : > { %3683 = vst [vmem:[#allocation23_spill] sm:$0xff] %v2755_v13  ;;  %3684 = vst [vmem:[#allocation24_spill] sm:$0xff] %v2757_v18  ;;  %v1539_v56 = vmul.f32 %v2748_v43, %v2755_v13  ;;  %v1540_v15 = vmul.f32 %v2750_v27, %v2757_v18  ;;  %v3685_v17 = vmov 0.0   ;;  %vm815_vm15 = vcmp.ge.f32.partialorder %v2655_v47, -0.45454547 }
 0x1bc   : > { %v2767_v54 = vsel %vm799_vm13, 1.0, %v3685_v17  ;;  %v1547_v60 = vmul.f32 %v1543_v11, %v1387_v42  ;;  %v1548_v55 = vmul.f32 %v1544_v33, %v1388_v34  ;;  %v2770_v10 = vsel %vm800_vm14, 1.0, %v3685_v17 }
 0x1bd   : > { %3686 = vst [vmem:[#allocation25_spill] sm:$0xff] %v2767_v54  ;;  %3687 = vst [vmem:[#allocation26_spill] sm:$0xff] %v2770_v10  ;;  %vm816_vm0 = vcmp.ge.f32.partialorder %v2685_v28, -0.45454547  ;;  %v1921_v14 = vsel %vm815_vm15, 1.0, %v3685_v17  ;;  %v2777_v0 = vmul.f32 5.5, %v2630_v32 }
 0x1be   : > { %vm831_vm1 = vcmp.ge.f32.partialorder %v2655_v47, -0.27272728  ;;  %v1551_v58 = vadd.f32 %v1547_v60, %v1539_v56  ;;  %v1552_v45 = vadd.f32 %v1548_v55, %v1540_v15  ;;  %v1922_v29 = vsel %vm816_vm0, 1.0, %v3685_v17 }
 0x1bf   : > { %3688 = vst [vmem:[#allocation27_spill] sm:$0xff] %v2777_v0  ;;  %v2781_v12 = vsub.f32 %v2767_v54, %v1921_v14  ;;  %v2784_v35 = vsub.f32 %v2770_v10, %v1922_v29  ;;  %vm832_vm2 = vcmp.ge.f32.partialorder %v2685_v28, -0.27272728  ;;  %v1925_v8 = vsel %vm831_vm1, 1.0, %v3685_v17 }
 0x1c0   : > { %vm847_vm3 = vcmp.ge.f32.partialorder %v2655_v47, -0.09090909  ;;  %v1642_v3 = vpack.c.bf16 %v1552_v45, %v1551_v58  ;;  %v1926_v53 = vsel %vm832_vm2, 1.0, %v3685_v17  ;;  %v2790_v63 = vsub.f32 %v1921_v14, %v1925_v8 }
 0x1c1   : > { %3689 = vst [vmem:[#allocation28_spill] sm:$0xff] %v2781_v12  ;;  %3690 = vst [vmem:[#allocation29_spill] sm:$0xff] %v2784_v35  ;;  %vm848_vm4 = vcmp.ge.f32.partialorder %v2685_v28, -0.09090909  ;;  %v2793_v24 = vsub.f32 %v1922_v29, %v1926_v53  ;;  %v1929_v51 = vsel %vm847_vm3, 1.0, %v3685_v17  ;;  %v2823_v29 = vmul.f32 %v2777_v0, %v2613_v20 }
 0x1c2   : > { %3691 = vst [vmem:[#allocation30_spill] sm:$0xff] %v2790_v63  ;;  %v1930_v57 = vsel %vm848_vm4, 1.0, %v3685_v17  ;;  %vm863_vm5 = vcmp.ge.f32.partialorder %v2655_v47, 0.09090909  ;;  %2007 = vmatprep.subr.bf16.mxu1 %v1642_v3  ;;  %v859_v6 = vsub.f32 %v1925_v8, %v1929_v51  ;;  %vm864_vm6 = vcmp.ge.f32.partialorder %v2685_v28, 0.09090909 }
 0x1c3   : > { %v860_v7 = vsub.f32 %v1926_v53, %v1930_v57  ;;  %v1933_v11 = vsel %vm863_vm5, 1.0, %v3685_v17  ;;  %v1934_v42 = vsel %vm864_vm6, 1.0, %v3685_v17  ;;  %v2805_v56 = vadd.f32 0.45454547, %v2655_v47 }
 0x1c4   : > { %v875_v34 = vsub.f32 %v1929_v51, %v1933_v11  ;;  %v2802_v33 = vsub.f32 %v1933_v11, %v2675_v52  ;;  %v876_v15 = vsub.f32 %v1930_v57, %v1934_v42  ;;  %v2808_v60 = vsub.f32 %v1934_v42, %v2698_v59 }
 0x1c5   : > { %v1970_v55 = vadd.f32 0.45454547, %v2685_v28  ;;  %v2812_v14 = vadd.f32 0.27272728, %v2655_v47  ;;  %v1974_v58 = vadd.f32 0.27272728, %v2685_v28 }
 0x1c6   : > { %v2816_v45 = vadd.f32 0.09090909, %v2655_v47  ;;  %v2819_v52 = vadd.f32 0.09090909, %v2685_v28  ;;  %v2826_v59 = vadd.f32 -0.09090909, %v2655_v47 }
 0x1c7   : > { %v2829_v8 = vadd.f32 -0.09090909, %v2685_v28  ;;  %v2832_v3 = vmul.f32 5.5, %v2805_v56  ;;  %v2834_v53 = vmul.f32 5.5, %v1970_v55  ;;  %v1019_v51 = vmul.f32 5.5, %v2812_v14 }
 0x1c8   : > { %3692 = vst [vmem:[#allocation31_spill] sm:$0xff] %v2816_v45  ;;  %3693 = vst [vmem:[#allocation32_spill] sm:$0xff] %v2819_v52  ;;  %v1020_v57 = vmul.f32 5.5, %v1974_v58  ;;  %v1023_v11 = vmul.f32 5.5, %v2816_v45  ;;  %v1024_v42 = vmul.f32 5.5, %v2819_v52  ;;  %v2840_v21 = vmul.f32 5.5, %v2826_v59 }
 0x1c9   : > { %3694 = vst [vmem:[#allocation33_spill] sm:$0xff] %v2832_v3  ;;  %3695 = vst [vmem:[#allocation34_spill] sm:$0xff] %v2834_v53  ;;  %v2843_v61 = vmul.f32 5.5, %v2829_v8  ;;  %v1095_v10 = vmul.f32 %v2832_v3, %v2790_v63  ;;  %v1096_v54 = vmul.f32 %v2834_v53, %v2793_v24  ;;  %v1099_v20 = vsub.f32 1.0, %v1019_v51 }
 0x1ca   : > { %v1100_v0 = vsub.f32 1.0, %v1020_v57  ;;  %v1111_v35 = vmul.f32 %v1019_v51, %v859_v6  ;;  %v1112_v12 = vmul.f32 %v1020_v57, %v860_v7  ;;  %v1115_v28 = vsub.f32 1.0, %v1023_v11 }
 0x1cb   : > { %v1116_v47 = vsub.f32 1.0, %v1024_v42  ;;  %v1103_v27 = vmul.f32 %v1099_v20, %v859_v6  ;;  %v1127_v43 = vmul.f32 %v1023_v11, %v875_v34  ;;  %v1128_v13 = vmul.f32 %v1024_v42, %v876_v15 }
 0x1cc   : > { %v1104_v18 = vmul.f32 %v1100_v0, %v860_v7  ;;  %v1119_v22 = vmul.f32 %v1115_v28, %v875_v34  ;;  %v1131_v1 = vsub.f32 1.0, %v2840_v21  ;;  %v1132_v39 = vsub.f32 1.0, %v2843_v61 }
 0x1cd   : > { %v1120_v40 = vmul.f32 %v1116_v47, %v876_v15  ;;  %v2853_v3 = vadd.f32 %v1103_v27, %v1095_v10  ;;  %v2858_v53 = vmul.f32 2.75, %v2805_v56  ;;  %v2860_v51 = vmul.f32 2.75, %v1970_v55 }
 0x1ce   : > { %v2855_v63 = vadd.f32 %v1104_v18, %v1096_v54  ;;  %v1123_v57 = vadd.f32 %v1119_v22, %v1111_v35  ;;  %v1135_v0 = vmul.f32 %v1131_v1, %v2802_v33  ;;  %v1136_v28 = vmul.f32 %v1132_v39, %v2808_v60 }
 0x1cf   : > { %v1124_v20 = vadd.f32 %v1120_v40, %v1112_v12  ;;  %v1223_v47 = vmul.f32 2.75, %v2812_v14  ;;  %v1224_v6 = vmul.f32 2.75, %v1974_v58  ;;  %v2866_v7 = vmul.f32 2.75, %v2816_v45 }
 0x1d0   : > { %v2869_v27 = vmul.f32 2.75, %v2819_v52  ;;  %v2871_v18 = vadd.f32 %v1135_v0, %v1127_v43  ;;  %v2873_v54 = vadd.f32 %v1136_v28, %v1128_v13  ;;  %v1295_v39 = vmul.f32 %v2858_v53, %v2853_v3 }
 0x1d1   : > { %3696 = vst [vmem:[#allocation35_spill] sm:$0xff] %v2866_v7  ;;  %v1296_v1 = vmul.f32 %v2860_v51, %v2855_v63  ;;  %v1299_v10 = vsub.f32 1.0, %v1223_v47  ;;  %v1300_v12 = vsub.f32 1.0, %v1224_v6  ;;  %v1311_v35 = vmul.f32 %v1223_v47, %v1123_v57 }
 0x1d2   : > { %3697 = vst [vmem:[#allocation36_spill] sm:$0xff] %v2869_v27  ;;  %3698 = vst [vmem:[#allocation37_spill] sm:$0xff] %v2871_v18  ;;  %v1312_v34 = vmul.f32 %v1224_v6, %v1124_v20  ;;  %v1315_v15 = vsub.f32 1.0, %v2866_v7  ;;  %v1316_v43 = vsub.f32 1.0, %v2869_v27  ;;  %v2884_v42 = vmul.f32 1.8333333, %v2805_v56 }
 0x1d3   : > { %3699 = vst [vmem:[#allocation38_spill] sm:$0xff] %v2873_v54  ;;  %v1303_v13 = vmul.f32 %v1299_v10, %v1123_v57  ;;  %v1304_v11 = vmul.f32 %v1300_v12, %v1124_v20  ;;  %v2886_v0 = vmul.f32 1.8333333, %v1970_v55  ;;  %v2891_v22 = vmul.f32 1.8333333, %v2812_v14 }
 0x1d4   : > { %v1319_v28 = vmul.f32 %v1315_v15, %v2871_v18  ;;  %v1320_v40 = vmul.f32 %v1316_v43, %v2873_v54  ;;  %v2893_v47 = vmul.f32 1.8333333, %v1974_v58  ;;  %v2918_v43 = vmul.f32 5.5, %v2664_v41 }
 0x1d5   : > { %3700 = vst [vmem:[#allocation39_spill] sm:$0xff] %v2886_v0  ;;  %3701 = vst [vmem:[#allocation40_spill] sm:$0xff] %v2891_v22  ;;  %v2895_v6 = vadd.f32 %v1303_v13, %v1295_v39  ;;  %v2897_v52 = vadd.f32 %v1304_v11, %v1296_v1  ;;  %v1479_v10 = vsub.f32 1.0, %v2891_v22  ;;  %v1991_v39 = vadd.f32 -0.6363636, %v2601_v62 }
 0x1d6   : > { %3702 = vst [vmem:[#allocation41_spill] sm:$0xff] %v2893_v47  ;;  %v2901_v20 = vadd.f32 %v1319_v28, %v1311_v35  ;;  %v2903_v55 = vadd.f32 %v1320_v40, %v1312_v34  ;;  %v1480_v12 = vsub.f32 1.0, %v2893_v47  ;;  %v1992_v1 = vadd.f32 -0.6363636, %v2621_v30 }
 0x1d7   : > { %v1475_v14 = vmul.f32 %v2884_v42, %v2895_v6  ;;  %v1476_v58 = vmul.f32 %v2886_v0, %v2897_v52  ;;  %v1995_v40 = vadd.f32 -0.8181818, %v2601_v62  ;;  %v1996_v34 = vadd.f32 -0.8181818, %v2621_v30 }
 0x1d8   : > { %3703 = vst [vmem:[#allocation42_spill] sm:$0xff] %v2901_v20  ;;  %3704 = vst [vmem:[#allocation43_spill] sm:$0xff] %v2903_v55  ;;  %v1483_v15 = vmul.f32 %v1479_v10, %v2901_v20  ;;  %v1484_v35 = vmul.f32 %v1480_v12, %v2903_v55  ;;  %v1033_v13 = vmul.f32 5.500001, %v2633_v37  ;;  %v1034_v11 = vmul.f32 5.500001, %v2667_v44 }
 0x1d9   : > { %v1037_v28 = vmul.f32 5.5, %v1991_v39  ;;  %v1038_v47 = vmul.f32 5.5, %v1992_v1  ;;  %v1041_v22 = vmul.f32 5.5, %v1995_v40  ;;  %v1042_v45 = vmul.f32 5.5, %v1996_v34 }
 0x1da   : > { %v1487_v56 = vadd.f32 %v1483_v15, %v1475_v14  ;;  %v1488_v57 = vadd.f32 %v1484_v35, %v1476_v58  ;;  %v1158_v10 = vmul.f32 %v2918_v43, %v2647_v5  ;;  %v1161_v12 = vsub.f32 1.0, %v1033_v13 }
 0x1db   : > { %v1162_v55 = vsub.f32 1.0, %v1034_v11  ;;  %v1173_v27 = vmul.f32 %v1033_v13, %v2615_v36  ;;  %v1174_v54 = vmul.f32 %v1034_v11, %v2649_v31  ;;  %v1177_v7 = vsub.f32 1.0, %v1037_v28 }
 0x1dc   : > { %v1634_v20 = vpack.c.bf16 %v1488_v57, %v1487_v56  ;;  %v1165_v18 = vmul.f32 %v1161_v12, %v2615_v36  ;;  %v1178_v14 = vsub.f32 1.0, %v1038_v47  ;;  %v1189_v58 = vmul.f32 %v1037_v28, %v2624_v38 }
 0x1dd   : > { %v1166_v0 = vmul.f32 %v1162_v55, %v2649_v31  ;;  %v1181_v15 = vmul.f32 %v1177_v7, %v2624_v38  ;;  %v1190_v35 = vmul.f32 %v1038_v47, %v2658_v49  ;;  %v1193_v40 = vsub.f32 1.0, %v1041_v22 }
 0x1de   : > { %2008 = vmatpush3.bf16.msra.mxu1 %v1634_v20  ;;  %v1194_v34 = vsub.f32 1.0, %v1042_v45  ;;  %v2932_v57 = vadd.f32 %v1165_v18, %v2823_v29  ;;  %v1182_v13 = vmul.f32 %v1178_v14, %v2658_v49  ;;  %v2938_v36 = vmul.f32 2.7500002, %v2630_v32 }
 0x1df   : > { %v2934_v56 = vadd.f32 %v1166_v0, %v1158_v10  ;;  %v1185_v31 = vadd.f32 %v1181_v15, %v1173_v27  ;;  %v3705_v20 = vsub.f32 %v2618_v26, %v2627_v19  ;;  %v3706_v38 = vsub.f32 %v2652_v46, %v2661_v50 }
 0x1e0   : > { %v2947_v45 = vmul.f32 2.7500002, %v2664_v41  ;;  %v1186_v29 = vadd.f32 %v1182_v13, %v1174_v54  ;;  %v1237_v18 = vmul.f32 2.7500002, %v2633_v37  ;;  %v1238_v49 = vmul.f32 2.7500002, %v2667_v44 }
 0x1e1   : > { %v1197_v55 = vmul.f32 %v1193_v40, %v3705_v20  ;;  %v1198_v7 = vmul.f32 %v1194_v34, %v3706_v38  ;;  %v1241_v22 = vmul.f32 2.75, %v1991_v39  ;;  %v1242_v27 = vmul.f32 2.75, %v1992_v1 }
 0x1e2   : > { %v1357_v26 = vmul.f32 %v2938_v36, %v2932_v57  ;;  %v1358_v19 = vmul.f32 %v2947_v45, %v2934_v56  ;;  %v1361_v46 = vsub.f32 1.0, %v1237_v18  ;;  %v1362_v50 = vsub.f32 1.0, %v1238_v49 }
 0x1e3   : > { %v1201_v0 = vadd.f32 %v1197_v55, %v1189_v58  ;;  %v1202_v47 = vadd.f32 %v1198_v7, %v1190_v35  ;;  %v1373_v11 = vmul.f32 %v1237_v18, %v1185_v31  ;;  %v1374_v28 = vmul.f32 %v1238_v49, %v1186_v29 }
 0x1e4   : > { %v1377_v10 = vsub.f32 1.0, %v1241_v22  ;;  %v1378_v54 = vsub.f32 1.0, %v1242_v27  ;;  %v2956_v12 = vmul.f32 1.8333334, %v2630_v32  ;;  %v1365_v14 = vmul.f32 %v1361_v46, %v1185_v31 }
 0x1e5   : > { %v1366_v39 = vmul.f32 %v1362_v50, %v1186_v29  ;;  %v2959_v58 = vmul.f32 1.8333334, %v2664_v41  ;;  %v1421_v1 = vmul.f32 1.8333334, %v2633_v37  ;;  %v1422_v40 = vmul.f32 1.8333334, %v2667_v44 }
 0x1e6   : > { %v1381_v15 = vmul.f32 %v1377_v10, %v1201_v0  ;;  %v1382_v35 = vmul.f32 %v1378_v54, %v1202_v47  ;;  %vm813_vm7 = vcmp.ge.f32.partialorder %v2601_v62, -0.45454547  ;;  %v2964_v34 = vadd.f32 %v1365_v14, %v1357_v26 }
 0x1e7   : > { %3707 = vst [vmem:[#allocation44_spill] sm:$0xff] %v2959_v58  ;;  %v2966_v13 = vadd.f32 %v1366_v39, %v1358_v19  ;;  %v1541_v20 = vsub.f32 1.0, %v1421_v1  ;;  %vm814_vm8 = vcmp.ge.f32.partialorder %v2621_v30, -0.45454547  ;;  %v1542_v55 = vsub.f32 1.0, %v1422_v40 }
 0x1e8   : > { %3708 = vst [vmem:[#allocation45_spill] sm:$0xff] %v2964_v34  ;;  %v1385_v32 = vadd.f32 %v1381_v15, %v1373_v11  ;;  %v1386_v31 = vadd.f32 %v1382_v35, %v1374_v28  ;;  %v2970_v41 = vsel %vm813_vm7, 1.0, %v3685_v17  ;;  %v1537_v37 = vmul.f32 %v2956_v12, %v2964_v34 }
 0x1e9   : > { %3709 = vst [vmem:[#allocation46_spill] sm:$0xff] %v2966_v13  ;;  %3710 = vst [vmem:[#allocation47_spill] sm:$0xff] %v2970_v41  ;;  %v1538_v44 = vmul.f32 %v2959_v58, %v2966_v13  ;;  %v2977_v38 = vsel %vm814_vm8, 1.0, %v3685_v17  ;;  %vm829_vm9 = vcmp.ge.f32.partialorder %v2601_v62, -0.27272728 }
 0x1ea   : > { %3711 = vst [vmem:[#allocation48_spill] sm:$0xff] %v2977_v38  ;;  %v1545_v7 = vmul.f32 %v1541_v20, %v1385_v32  ;;  %v1546_v29 = vmul.f32 %v1542_v55, %v1386_v31  ;;  %vm830_vm10 = vcmp.ge.f32.partialorder %v2621_v30, -0.27272728  ;;  %v1923_v18 = vsel %vm829_vm9, 1.0, %v3685_v17 }
 0x1eb   : > { %v1924_v49 = vsel %vm830_vm10, 1.0, %v3685_v17  ;;  %v2984_v22 = vsub.f32 %v2970_v41, %v1923_v18  ;;  %vm845_vm11 = vcmp.ge.f32.partialorder %v2601_v62, -0.09090909  ;;  %vm846_vm12 = vcmp.ge.f32.partialorder %v2621_v30, -0.09090909 }
 0x1ec   : > { %v1549_v0 = vadd.f32 %v1545_v7, %v1537_v37  ;;  %v1550_v47 = vadd.f32 %v1546_v29, %v1538_v44  ;;  %v2989_v27 = vsub.f32 %v2977_v38, %v1924_v49  ;;  %v1927_v26 = vsel %vm845_vm11, 1.0, %v3685_v17 }
 0x1ed   : > { %3712 = vst [vmem:[#allocation49_spill] sm:$0xff] %v2984_v22  ;;  %v1928_v19 = vsel %vm846_vm12, 1.0, %v3685_v17  ;;  %v857_v46 = vsub.f32 %v1923_v18, %v1927_v26  ;;  %vm861_vm13 = vcmp.ge.f32.partialorder %v2601_v62, 0.09090909  ;;  %vm862_vm14 = vcmp.ge.f32.partialorder %v2621_v30, 0.09090909 }
 0x1ee   : > { %3713 = vst [vmem:[#allocation50_spill] sm:$0xff] %v2989_v27  ;;  %v1641_v50 = vpack.c.bf16 %v1550_v47, %v1549_v0  ;;  %v858_v11 = vsub.f32 %v1924_v49, %v1928_v19  ;;  %v1931_v28 = vsel %vm861_vm13, 1.0, %v3685_v17  ;;  %v1932_v10 = vsel %vm862_vm14, 1.0, %v3685_v17 }
 0x1ef   : > { %v873_v54 = vsub.f32 %v1927_v26, %v1931_v28  ;;  %v874_v14 = vsub.f32 %v1928_v19, %v1932_v10  ;;  %v2998_v39 = vsub.f32 %v1931_v28, %v2607_v2  ;;  %v3001_v1 = vsub.f32 %v1932_v10, %v2641_v4 }
 0x1f0   : > { %2009 = vmatprep.subr.bf16.mxu1 %v1641_v50  ;;  %v1967_v15 = vadd.f32 0.45454547, %v2601_v62  ;;  %v1968_v35 = vadd.f32 0.45454547, %v2621_v30  ;;  %v1971_v40 = vadd.f32 0.27272728, %v2601_v62  ;;  %v3008_v20 = vmul.f32 %v2840_v21, %v2802_v33 }
 0x1f1   : > { %v1972_v32 = vadd.f32 0.27272728, %v2621_v30  ;;  %v3012_v31 = vadd.f32 0.09090909, %v2601_v62  ;;  %v3015_v2 = vadd.f32 0.09090909, %v2621_v30  ;;  %v3019_v4 = vmul.f32 %v2843_v61, %v2808_v60 }
 0x1f2   : > { %v3022_v55 = vadd.f32 -0.09090909, %v2601_v62  ;;  %v3025_v37 = vadd.f32 -0.09090909, %v2621_v30  ;;  %v3027_v21 = vmul.f32 5.5, %v1967_v15  ;;  %v3029_v33 = vmul.f32 5.5, %v1968_v35 }
 0x1f3   : > { %3714 = vst [vmem:[#allocation51_spill] sm:$0xff] %v3012_v31  ;;  %3715 = vst [vmem:[#allocation52_spill] sm:$0xff] %v3015_v2  ;;  %v1017_v44 = vmul.f32 5.5, %v1971_v40  ;;  %v1018_v7 = vmul.f32 5.5, %v1972_v32  ;;  %v1021_v29 = vmul.f32 5.5, %v3012_v31  ;;  %v1022_v18 = vmul.f32 5.5, %v3015_v2 }
 0x1f4   : > { %3716 = vst [vmem:[#allocation53_spill] sm:$0xff] %v3027_v21  ;;  %v3034_v49 = vmul.f32 5.5, %v3022_v55  ;;  %v3037_v61 = vmul.f32 5.5, %v3025_v37  ;;  %v1093_v60 = vmul.f32 %v3027_v21, %v2984_v22  ;;  %v1094_v0 = vmul.f32 %v3029_v33, %v2989_v27 }
 0x1f5   : > { %v1097_v47 = vsub.f32 1.0, %v1017_v44  ;;  %v1098_v26 = vsub.f32 1.0, %v1018_v7  ;;  %v1109_v19 = vmul.f32 %v1017_v44, %v857_v46  ;;  %v1110_v50 = vmul.f32 %v1018_v7, %v858_v11 }
 0x1f6   : > { %v1113_v28 = vsub.f32 1.0, %v1021_v29  ;;  %v1114_v10 = vsub.f32 1.0, %v1022_v18  ;;  %v1125_v38 = vmul.f32 %v1021_v29, %v873_v54  ;;  %v1126_v41 = vmul.f32 %v1022_v18, %v874_v14 }
 0x1f7   : > { %v1101_v17 = vmul.f32 %v1097_v47, %v857_v46  ;;  %v1102_v13 = vmul.f32 %v1098_v26, %v858_v11  ;;  %v1129_v34 = vsub.f32 1.0, %v3034_v49  ;;  %v1130_v30 = vsub.f32 1.0, %v3037_v61 }
 0x1f8   : > { %v1117_v62 = vmul.f32 %v1113_v28, %v873_v54  ;;  %v1118_v58 = vmul.f32 %v1114_v10, %v874_v14  ;;  %v3045_v22 = vmul.f32 2.75, %v1967_v15  ;;  %v3047_v21 = vmul.f32 2.75, %v1968_v35 }
 0x1f9   : > { %v3049_v27 = vadd.f32 %v1101_v17, %v1093_v60  ;;  %v3051_v44 = vadd.f32 %v1102_v13, %v1094_v0  ;;  %v1133_v7 = vmul.f32 %v1129_v34, %v2998_v39  ;;  %v1134_v29 = vmul.f32 %v1130_v30, %v3001_v1 }
 0x1fa   : > { %v1121_v46 = vadd.f32 %v1117_v62, %v1109_v19  ;;  %v1122_v11 = vadd.f32 %v1118_v58, %v1110_v50  ;;  %v1221_v18 = vmul.f32 2.75, %v1971_v40  ;;  %v1222_v47 = vmul.f32 2.75, %v1972_v32 }
 0x1fb   : > { %v3055_v26 = vadd.f32 %v1133_v7, %v1125_v38  ;;  %v3057_v54 = vadd.f32 %v1134_v29, %v1126_v41  ;;  %v3060_v14 = vmul.f32 2.75, %v3012_v31  ;;  %v3063_v17 = vmul.f32 2.75, %v3015_v2 }
 0x1fc   : > { %v1293_v13 = vmul.f32 %v3045_v22, %v3049_v27  ;;  %v1294_v30 = vmul.f32 %v3047_v21, %v3051_v44  ;;  %v1297_v62 = vsub.f32 1.0, %v1221_v18  ;;  %v1298_v58 = vsub.f32 1.0, %v1222_v47 }
 0x1fd   : > { %3717 = vst [vmem:[#allocation54_spill] sm:$0xff] %v3055_v26  ;;  %3718 = vst [vmem:[#allocation55_spill] sm:$0xff] %v3057_v54  ;;  %v1309_v34 = vmul.f32 %v1221_v18, %v1121_v46  ;;  %v1310_v60 = vmul.f32 %v1222_v47, %v1122_v11  ;;  %v1313_v38 = vsub.f32 1.0, %v3060_v14  ;;  %v1314_v41 = vsub.f32 1.0, %v3063_v17 }
 0x1fe   : > { %3719 = vst [vmem:[#allocation56_spill] sm:$0xff] %v3060_v14  ;;  %3720 = vst [vmem:[#allocation57_spill] sm:$0xff] %v3063_v17  ;;  %v1301_v0 = vmul.f32 %v1297_v62, %v1121_v46  ;;  %v1302_v19 = vmul.f32 %v1298_v58, %v1122_v11  ;;  %v3071_v50 = vmul.f32 1.8333333, %v1967_v15  ;;  %v3073_v28 = vmul.f32 1.8333333, %v1968_v35 }
 0x1ff   : > { %v1317_v10 = vmul.f32 %v1313_v38, %v3055_v26  ;;  %v1318_v7 = vmul.f32 %v1314_v41, %v3057_v54  ;;  %v3077_v29 = vmul.f32 1.8333333, %v1971_v40  ;;  %v3079_v2 = vmul.f32 1.8333333, %v1972_v32  ;;  %v3724_v15 = vld [vmem:[#allocation18_spill] sm:$0xff] }
 0x200   : > { %v3081_v18 = vadd.f32 %v1301_v0, %v1293_v13  ;;  %v3083_v47 = vadd.f32 %v1302_v19, %v1294_v30  ;;  %v3723_v46 = vsub.f32 1.0, %v2718_v23  ;;  %v3725_v35 = vsub.f32 1.0, %v3724_v15 }
 0x201   : > { %3721 = vst [vmem:[#allocation58_spill] sm:$0xff] %v3077_v29  ;;  %3722 = vst [vmem:[#allocation59_spill] sm:$0xff] %v3079_v2  ;;  %v3091_v58 = vadd.f32 %v1317_v10, %v1309_v34  ;;  %v3093_v38 = vadd.f32 %v1318_v7, %v1310_v60  ;;  %v1477_v40 = vsub.f32 1.0, %v3077_v29  ;;  %v1478_v32 = vsub.f32 1.0, %v3079_v2  ;;  %v3729_v10 = vld [vmem:[#allocation19_spill] sm:$0xff]  ;;  %v3738_v2 = vld [vmem:[#allocation16_spill] sm:$0xff] }
 0x202   : > { %v1151_v11 = vmul.f32 %v3723_v46, %v2681_v25  ;;  %v1152_v62 = vmul.f32 %v3725_v35, %v2704_v9  ;;  %v1473_v13 = vmul.f32 %v3071_v50, %v3081_v18  ;;  %v1474_v30 = vmul.f32 %v3073_v28, %v3083_v47 }
 0x203   : > { %3726 = vst [vmem:[#allocation18_spill] sm:$0xff] %v3091_v58  ;;  %3727 = vst [vmem:[#allocation60_spill] sm:$0xff] %v3093_v38  ;;  %v1481_v9 = vmul.f32 %v1477_v40, %v3091_v58  ;;  %v1482_v34 = vmul.f32 %v1478_v32, %v3093_v38  ;;  %v3110_v60 = vmul.f32 2.75, %v2826_v59  ;;  %v3113_v41 = vmul.f32 2.75, %v2829_v8  ;;  %v3741_v58 = vld [vmem:[#allocation33_spill] sm:$0xff] }
 0x204   : > { %v3102_v25 = vadd.f32 %v1151_v11, %v3008_v20  ;;  %v3105_v23 = vadd.f32 %v1152_v62, %v3019_v4  ;;  %v3728_v0 = vsub.f32 1.0, %v2731_v16  ;;  %v3730_v20 = vld [vmem:[#allocation20_spill] sm:$0xff]  ;;  %v3122_v4 = vmul.f32 1.8333334, %v2826_v59  ;;  %v3732_v16 = vld [vmem:[#allocation23_spill] sm:$0xff] }
 0x205   : > { %v3731_v7 = vsub.f32 1.0, %v3730_v20  ;;  %v3125_v11 = vmul.f32 1.8333334, %v2829_v8  ;;  %v1485_v15 = vadd.f32 %v1481_v9, %v1473_v13  ;;  %v1486_v35 = vadd.f32 %v1482_v34, %v1474_v30  ;;  %v3735_v20 = vld [vmem:[#allocation24_spill] sm:$0xff]  ;;  %v3739_v8 = vld [vmem:[#allocation17_spill] sm:$0xff]  ;;  %v3740_v34 = vld [vmem:[#allocation30_spill] sm:$0xff] }
 0x206   : > { %v1351_v19 = vmul.f32 %v3728_v0, %v2733_v48  ;;  %v1343_v62 = vmul.f32 %v3110_v60, %v3102_v25  ;;  %v1344_v40 = vmul.f32 %v3113_v41, %v3105_v23  ;;  %v3733_v48 = vld [vmem:[#allocation21_spill] sm:$0xff]  ;;  %v1965_v38 = vadd.f32 0.6363636, %v3738_v2 }
 0x207   : > { %v1352_v46 = vmul.f32 %v3731_v7, %v3729_v10  ;;  %v3734_v32 = vsub.f32 1.0, %v3733_v48  ;;  %v3736_v10 = vld [vmem:[#allocation22_spill] sm:$0xff]  ;;  %v1966_v29 = vadd.f32 0.6363636, %v3739_v8  ;;  %v1633_v13 = vpack.c.bf16 %v1486_v35, %v1485_v15  ;;  %v3747_v35 = vld [vmem:[#allocation28_spill] sm:$0xff] }
 0x208   : > { %v3737_v7 = vsub.f32 1.0, %v3736_v10  ;;  %v3139_v30 = vadd.f32 %v1351_v19, %v1343_v62  ;;  %v3742_v31 = vsub.f32 1.0, %v3741_v58  ;;  %v3146_v54 = vmul.f32 5.500001, %v1965_v38  ;;  %v3744_v48 = vld [vmem:[#allocation34_spill] sm:$0xff] }
 0x209   : > { %v1531_v0 = vmul.f32 %v3734_v32, %v3732_v16  ;;  %v3141_v9 = vadd.f32 %v1352_v46, %v1344_v40  ;;  %v3148_v16 = vmul.f32 5.500001, %v1966_v29  ;;  %v3745_v32 = vsub.f32 1.0, %v3744_v48  ;;  %2010 = vmatpush3.bf16.msra.mxu1 %v1633_v13  ;;  %v3748_v40 = vld [vmem:[#allocation29_spill] sm:$0xff] }
 0x20a   : > { %v1532_v59 = vmul.f32 %v3737_v7, %v3735_v20  ;;  %v1087_v17 = vmul.f32 %v3742_v31, %v3740_v34  ;;  %v3153_v10 = vmul.f32 2.7500002, %v1965_v38  ;;  %v1523_v19 = vmul.f32 %v3122_v4, %v3139_v30 }
 0x20b   : > { %3743 = vst [vmem:[#allocation19_spill] sm:$0xff] %v3148_v16  ;;  %v1088_v20 = vmul.f32 %v3745_v32, %v2793_v24  ;;  %v1524_v46 = vmul.f32 %v3125_v11, %v3141_v9  ;;  %v3159_v15 = vmul.f32 2.7500002, %v1966_v29  ;;  %v3746_v31 = vsub.f32 1.0, %v2858_v53 }
 0x20c   : > { %v1079_v62 = vmul.f32 %v3146_v54, %v3747_v35  ;;  %v1080_v24 = vmul.f32 %v3148_v16, %v3748_v40  ;;  %v3749_v7 = vsub.f32 1.0, %v2860_v51  ;;  %v3171_v34 = vmul.f32 1.8333334, %v1965_v38  ;;  %v3751_v40 = vld [vmem:[#allocation39_spill] sm:$0xff] }
 0x20d   : > { %v1287_v58 = vmul.f32 %v3746_v31, %v2853_v3  ;;  %v1535_v48 = vadd.f32 %v1531_v0, %v1523_v19  ;;  %v1536_v32 = vadd.f32 %v1532_v59, %v1524_v46  ;;  %v3173_v14 = vmul.f32 1.8333334, %v1966_v29  ;;  %v3753_v38 = vld [vmem:[#allocation27_spill] sm:$0xff] }
 0x20e   : > { %v1288_v13 = vmul.f32 %v3749_v7, %v2855_v63  ;;  %v3750_v53 = vsub.f32 1.0, %v2884_v42  ;;  %v3178_v31 = vadd.f32 %v1087_v17, %v1079_v62  ;;  %v3180_v26 = vadd.f32 %v1088_v20, %v1080_v24  ;;  %v3755_v24 = vld [vmem:[#allocation44_spill] sm:$0xff] }
 0x20f   : > { %v3752_v35 = vsub.f32 1.0, %v3751_v40  ;;  %v1141_v63 = vmul.f32 %v3034_v49, %v2998_v39  ;;  %v1640_v51 = vpack.c.bf16 %v1536_v32, %v1535_v48  ;;  %v1142_v29 = vmul.f32 %v3037_v61, %v3001_v1  ;;  %v3754_v39 = vld [vmem:[#allocation14_spill] sm:$0xff]  ;;  %v3756_v48 = vld [vmem:[#allocation13_spill] sm:$0xff] }
 0x210   : > { %v1467_v3 = vmul.f32 %v3750_v53, %v2895_v6  ;;  %v1145_v0 = vsub.f32 1.0, %v3753_v38  ;;  %v1146_v42 = vsub.f32 1.0, %v2918_v43  ;;  %v1279_v6 = vmul.f32 %v3153_v10, %v3178_v31  ;;  %v3758_v53 = vld [vmem:[#allocation45_spill] sm:$0xff] }
 0x211   : > { %v1468_v16 = vmul.f32 %v3752_v35, %v2897_v52  ;;  %v1280_v17 = vmul.f32 %v3159_v15, %v3180_v26  ;;  %v3196_v59 = vmul.f32 2.75, %v3022_v55  ;;  %v3199_v52 = vmul.f32 2.75, %v3025_v37  ;;  %2011 = vmatprep.subr.bf16.mxu1 %v1640_v51  ;;  %v3759_v51 = vld [vmem:[#allocation46_spill] sm:$0xff] }
 0x212   : > { %v1149_v49 = vmul.f32 %v1145_v0, %v3754_v39  ;;  %v1150_v1 = vmul.f32 %v1146_v42, %v2647_v5  ;;  %v1345_v61 = vsub.f32 1.0, %v2938_v36  ;;  %v1346_v43 = vsub.f32 1.0, %v2947_v45  ;;  %v3762_v39 = vld [vmem:[#allocation47_spill] sm:$0xff] }
 0x213   : > { %v3205_v20 = vadd.f32 %v1287_v58, %v1279_v6  ;;  %v3207_v19 = vadd.f32 %v1288_v13, %v1280_v17  ;;  %v3210_v46 = vmul.f32 1.8333334, %v3022_v55  ;;  %v3213_v35 = vmul.f32 1.8333334, %v3025_v37 }
 0x214   : > { %v3215_v62 = vadd.f32 %v1149_v49, %v1141_v63  ;;  %v3217_v40 = vadd.f32 %v1150_v1, %v1142_v29  ;;  %v1349_v5 = vmul.f32 %v1345_v61, %v2932_v57  ;;  %v1350_v36 = vmul.f32 %v1346_v43, %v2934_v56  ;;  %v3757_v57 = vld [vmem:[#allocation15_spill] sm:$0xff] }
 0x215   : > { %v1459_v45 = vmul.f32 %v3171_v34, %v3205_v20  ;;  %v1460_v58 = vmul.f32 %v3173_v14, %v3207_v19  ;;  %v1525_v55 = vsub.f32 1.0, %v2956_v12  ;;  %v1526_v7 = vsub.f32 1.0, %v3755_v24 }
 0x216   : > { %v1341_v37 = vmul.f32 %v3196_v59, %v3215_v62  ;;  %v1342_v13 = vmul.f32 %v3199_v52, %v3217_v40  ;;  %vm797_vm15 = vcmp.ge.f32.partialorder %v3756_v48, -0.6363636  ;;  %vm798_vm0 = vcmp.ge.f32.partialorder %v3757_v57, -0.6363636 }
 0x217   : > { %v1471_v56 = vadd.f32 %v1467_v3, %v1459_v45  ;;  %v1472_v32 = vadd.f32 %v1468_v16, %v1460_v58  ;;  %v1529_v63 = vmul.f32 %v1525_v55, %v3758_v53  ;;  %v1530_v29 = vmul.f32 %v1526_v7, %v3759_v51  ;;  %v3763_v16 = vld [vmem:[#allocation48_spill] sm:$0xff] }
 0x218   : > { %v3235_v38 = vadd.f32 %v1349_v5, %v1341_v37  ;;  %v3237_v12 = vadd.f32 %v1350_v36, %v1342_v13  ;;  %v3760_v0 = vmov 0.0   ;;  %v1963_v1 = vadd.f32 0.6363636, %v3756_v48  ;;  %v3764_v36 = vld [vmem:[#allocation53_spill] sm:$0xff] }
 0x219   : > { %v3240_v42 = vsel %vm797_vm15, 1.0, %v3760_v0  ;;  %v3243_v6 = vsel %vm798_vm0, 1.0, %v3760_v0  ;;  %v1632_v17 = vpack.c.bf16 %v1472_v32, %v1471_v56  ;;  %v1964_v5 = vadd.f32 0.6363636, %v3757_v57  ;;  %v3765_v32 = vld [vmem:[#allocation49_spill] sm:$0xff] }
 0x21a   : > { %3761 = vst [vmem:[#allocation20_spill] sm:$0xff] %v3243_v6  ;;  %v3247_v49 = vsub.f32 %v3240_v42, %v3762_v39  ;;  %v3251_v3 = vsub.f32 %v3243_v6, %v3763_v16  ;;  %v1521_v61 = vmul.f32 %v3210_v46, %v3235_v38  ;;  %v1522_v43 = vmul.f32 %v3213_v35, %v3237_v12  ;;  %v3766_v39 = vld [vmem:[#allocation50_spill] sm:$0xff] }
 0x21b   : > { %v1081_v45 = vsub.f32 1.0, %v3764_v36  ;;  %2012 = vmatpush3.bf16.msra.mxu1 %v1632_v17  ;;  %v3260_v58 = vmul.f32 5.500001, %v1963_v1  ;;  %v1082_v55 = vsub.f32 1.0, %v3029_v33  ;;  %v3263_v24 = vmul.f32 2.7500002, %v1963_v1 }
 0x21c   : > { %v1281_v7 = vsub.f32 1.0, %v3045_v22  ;;  %v1533_v37 = vadd.f32 %v1529_v63, %v1521_v61  ;;  %v1534_v13 = vadd.f32 %v1530_v29, %v1522_v43  ;;  %v3266_v56 = vmul.f32 5.500001, %v1964_v5 }
 0x21d   : > { %v1085_v53 = vmul.f32 %v1081_v45, %v3765_v32  ;;  %v1077_v51 = vmul.f32 %v3260_v58, %v3247_v49  ;;  %v1086_v16 = vmul.f32 %v1082_v55, %v3766_v39  ;;  %v3272_v17 = vmul.f32 2.7500002, %v1964_v5  ;;  %v3769_v39 = vld [vmem:[#allocation38_spill] sm:$0xff] }
 0x21e   : > { %v1282_v36 = vsub.f32 1.0, %v3047_v21  ;;  %v1639_v33 = vpack.c.bf16 %v1534_v13, %v1533_v37  ;;  %v1078_v6 = vmul.f32 %v3266_v56, %v3251_v3  ;;  %v1285_v22 = vmul.f32 %v1281_v7, %v3049_v27  ;;  %v3767_v37 = vld [vmem:[#allocation37_spill] sm:$0xff]  ;;  %v3768_v13 = vld [vmem:[#allocation35_spill] sm:$0xff]  ;;  %v3770_v27 = vld [vmem:[#allocation36_spill] sm:$0xff] }
 0x21f   : > { %v3278_v63 = vmul.f32 1.8333334, %v1963_v1  ;;  %v3280_v29 = vadd.f32 %v1085_v53, %v1077_v51  ;;  %v3283_v43 = vmul.f32 1.8333334, %v1964_v5  ;;  %v1461_v45 = vsub.f32 1.0, %v3071_v50  ;;  %v3771_v53 = vld [vmem:[#allocation31_spill] sm:$0xff] }
 0x220   : > { %v1286_v61 = vmul.f32 %v1282_v36, %v3051_v44  ;;  %2013 = vmatprep.subr.bf16.mxu1 %v1639_v33  ;;  %v3286_v55 = vadd.f32 %v1086_v16, %v1078_v6  ;;  %v1462_v21 = vsub.f32 1.0, %v3073_v28  ;;  %v1327_v32 = vmul.f32 %v3768_v13, %v3767_v37  ;;  %v3772_v16 = vld [vmem:[#allocation32_spill] sm:$0xff] }
 0x221   : > { %v1328_v1 = vmul.f32 %v3770_v27, %v3769_v39  ;;  %v1277_v7 = vmul.f32 %v3263_v24, %v3280_v29  ;;  %v1465_v44 = vmul.f32 %v1461_v45, %v3081_v18  ;;  %v1331_v5 = vsub.f32 1.0, %v3110_v60  ;;  %v3775_v27 = vld [vmem:[#allocation25_spill] sm:$0xff] }
 0x222   : > { %v1332_v50 = vsub.f32 1.0, %v3113_v41  ;;  %v1278_v6 = vmul.f32 %v3272_v17, %v3286_v55  ;;  %v1466_v28 = vmul.f32 %v1462_v21, %v3083_v47  ;;  %v3302_v51 = vmul.f32 1.8333333, %v3771_v53 }
 0x223   : > { %v3305_v36 = vmul.f32 1.8333333, %v3772_v16  ;;  %v3307_v33 = vadd.f32 %v1285_v22, %v1277_v7  ;;  %v1335_v37 = vmul.f32 %v1331_v5, %v3102_v25  ;;  %v1511_v60 = vsub.f32 1.0, %v3122_v4  ;;  %v3776_v7 = vld [vmem:[#allocation26_spill] sm:$0xff]  ;;  %v3777_v16 = vld [vmem:[#allocation19_spill] sm:$0xff] }
 0x224   : > { %v1336_v18 = vmul.f32 %v1332_v50, %v3105_v23  ;;  %v3312_v41 = vadd.f32 %v1286_v61, %v1278_v6  ;;  %v1512_v45 = vsub.f32 1.0, %v3125_v11  ;;  %vm783_vm1 = vcmp.ge.f32.partialorder %v3738_v2, -0.8181818 }
 0x225   : > { %vm784_vm2 = vcmp.ge.f32.partialorder %v3739_v8, -0.8181818  ;;  %v1457_v47 = vmul.f32 %v3278_v63, %v3307_v33  ;;  %v3319_v21 = vadd.f32 %v1335_v37, %v1327_v32  ;;  %v1515_v25 = vmul.f32 %v1511_v60, %v3139_v30 }
 0x226   : > { %v3321_v22 = vadd.f32 %v1336_v18, %v1328_v1  ;;  %v1458_v23 = vmul.f32 %v3283_v43, %v3312_v41  ;;  %v1516_v4 = vmul.f32 %v1512_v45, %v3141_v9  ;;  %v3328_v11 = vsel %vm783_vm1, 1.0, %v3760_v0 }
 0x227   : > { %3773 = vst [vmem:[#allocation23_spill] sm:$0xff] %v3328_v11  ;;  %v3331_v61 = vsel %vm784_vm2, 1.0, %v3760_v0  ;;  %v1469_v13 = vadd.f32 %v1465_v44, %v1457_v47  ;;  %v1507_v32 = vmul.f32 %v3302_v51, %v3319_v21  ;;  %v3339_v30 = vsub.f32 %v3328_v11, %v3775_v27 }
 0x228   : > { %3774 = vst [vmem:[#allocation21_spill] sm:$0xff] %v3331_v61  ;;  %v1508_v39 = vmul.f32 %v3305_v36, %v3321_v22  ;;  %v1470_v1 = vadd.f32 %v1466_v28, %v1458_v23  ;;  %v3343_v9 = vsub.f32 %v3331_v61, %v3776_v7  ;;  %v1961_v5 = vadd.f32 0.8181818, %v3738_v2  ;;  %v3778_v23 = vld [vmem:[#allocation28_spill] sm:$0xff]  ;;  %v3779_v7 = vld [vmem:[#allocation29_spill] sm:$0xff] }
 0x229   : > { %v1962_v50 = vadd.f32 0.8181818, %v3739_v8  ;;  %v1519_v44 = vadd.f32 %v1515_v25, %v1507_v32  ;;  %v1067_v53 = vsub.f32 1.0, %v3146_v54  ;;  %v1068_v37 = vsub.f32 1.0, %v3777_v16 }
 0x22a   : > { %v1520_v6 = vadd.f32 %v1516_v4, %v1508_v39  ;;  %v1631_v18 = vpack.c.bf16 %v1470_v1, %v1469_v13  ;;  %v3349_v60 = vmul.f32 5.5, %v1961_v5  ;;  %v3353_v28 = vmul.f32 2.7500002, %v1961_v5 }
 0x22b   : > { %v3351_v45 = vmul.f32 5.5, %v1962_v50  ;;  %v1071_v27 = vmul.f32 %v1067_v53, %v3778_v23  ;;  %v1072_v61 = vmul.f32 %v1068_v37, %v3779_v7  ;;  %v3357_v11 = vmul.f32 2.7500002, %v1962_v50  ;;  %v3783_v23 = vld [vmem:[#allocation57_spill] sm:$0xff] }
 0x22c   : > { %v1638_v47 = vpack.c.bf16 %v1520_v6, %v1519_v44  ;;  %2014 = vmatpush3.bf16.msra.mxu1 %v1631_v18  ;;  %v1063_v54 = vmul.f32 %v3349_v60, %v3339_v30  ;;  %v1267_v4 = vsub.f32 1.0, %v3153_v10  ;;  %v1268_v13 = vsub.f32 1.0, %v3159_v15  ;;  %v3781_v18 = vld [vmem:[#allocation56_spill] sm:$0xff] }
 0x22d   : > { %v1064_v25 = vmul.f32 %v3351_v45, %v3343_v9  ;;  %v3365_v32 = vmul.f32 1.8333334, %v1961_v5  ;;  %v3367_v39 = vmul.f32 1.8333334, %v1962_v50  ;;  %v1447_v1 = vsub.f32 1.0, %v3171_v34  ;;  %v3780_v5 = vld [vmem:[#allocation54_spill] sm:$0xff] }
 0x22e   : > { %2015 = vmatprep.subr.bf16.mxu1 %v1638_v47  ;;  %v1448_v44 = vsub.f32 1.0, %v3173_v14  ;;  %v3371_v6 = vadd.f32 %v1071_v27, %v1063_v54  ;;  %v1271_v16 = vmul.f32 %v1267_v4, %v3178_v31  ;;  %v1272_v37 = vmul.f32 %v1268_v13, %v3180_v26  ;;  %v3782_v47 = vld [vmem:[#allocation55_spill] sm:$0xff] }
 0x22f   : > { %v3373_v53 = vadd.f32 %v1072_v61, %v1064_v25  ;;  %v1451_v10 = vmul.f32 %v1447_v1, %v3205_v20  ;;  %v1325_v50 = vmul.f32 %v3781_v18, %v3780_v5  ;;  %v1326_v34 = vmul.f32 %v3783_v23, %v3782_v47  ;;  %v3784_v27 = vld [vmem:[#allocation51_spill] sm:$0xff] }
 0x230   : > { %v1452_v15 = vmul.f32 %v1448_v44, %v3207_v19  ;;  %v1263_v14 = vmul.f32 %v3353_v28, %v3371_v6  ;;  %v1329_v31 = vsub.f32 1.0, %v3196_v59  ;;  %v1330_v26 = vsub.f32 1.0, %v3199_v52  ;;  %v3785_v19 = vld [vmem:[#allocation52_spill] sm:$0xff] }
 0x231   : > { %v1264_v61 = vmul.f32 %v3357_v11, %v3373_v53  ;;  %v3390_v20 = vmul.f32 1.8333333, %v3784_v27  ;;  %v3393_v7 = vmul.f32 1.8333333, %v3785_v19  ;;  %v1509_v54 = vsub.f32 1.0, %v3210_v46 }
 0x232   : > { %v1510_v25 = vsub.f32 1.0, %v3213_v35  ;;  %v3397_v4 = vadd.f32 %v1271_v16, %v1263_v14  ;;  %v1333_v1 = vmul.f32 %v1329_v31, %v3215_v62  ;;  %v1334_v59 = vmul.f32 %v1330_v26, %v3217_v40 }
 0x233   : > { %v3399_v13 = vadd.f32 %v1272_v37, %v1264_v61  ;;  %v1513_v52 = vmul.f32 %v1509_v54, %v3235_v38  ;;  %vm781_vm3 = vcmp.ge.f32.partialorder %v3756_v48, -0.8181818  ;;  %vm782_vm4 = vcmp.ge.f32.partialorder %v3757_v57, -0.8181818 }
 0x234   : > { %v1514_v44 = vmul.f32 %v1510_v25, %v3237_v12  ;;  %v1443_v46 = vmul.f32 %v3365_v32, %v3397_v4  ;;  %v3411_v16 = vadd.f32 %v1333_v1, %v1325_v50  ;;  %v3413_v37 = vadd.f32 %v1334_v59, %v1326_v34  ;;  %v3786_v34 = vld [vmem:[#allocation20_spill] sm:$0xff] }
 0x235   : > { %v1444_v35 = vmul.f32 %v3367_v39, %v3399_v13  ;;  %v3416_v62 = vsel %vm781_vm3, 1.0, %v3760_v0  ;;  %v3419_v40 = vsel %vm782_vm4, 1.0, %v3760_v0  ;;  %v1959_v38 = vadd.f32 0.8181818, %v3756_v48 }
 0x236   : > { %v1960_v12 = vadd.f32 0.8181818, %v3757_v57  ;;  %v1455_v5 = vadd.f32 %v1451_v10, %v1443_v46  ;;  %v1505_v47 = vmul.f32 %v3390_v20, %v3411_v16  ;;  %v1506_v50 = vmul.f32 %v3393_v7, %v3413_v37 }
 0x237   : > { %v1456_v18 = vadd.f32 %v1452_v15, %v1444_v35  ;;  %v3429_v23 = vsub.f32 %v3416_v62, %v3240_v42  ;;  %v3433_v14 = vsub.f32 %v3419_v40, %v3786_v34  ;;  %v3435_v61 = vmul.f32 5.5, %v1959_v38  ;;  %v3788_v34 = vld [vmem:[#allocation40_spill] sm:$0xff] }
 0x238   : > { %v3437_v31 = vmul.f32 5.5, %v1960_v12  ;;  %v1517_v15 = vadd.f32 %v1513_v52, %v1505_v47  ;;  %v1518_v26 = vadd.f32 %v1514_v44, %v1506_v50  ;;  %v1065_v27 = vsub.f32 1.0, %v3260_v58 }
 0x239   : > { %v1630_v10 = vpack.c.bf16 %v1456_v18, %v1455_v5  ;;  %v1061_v19 = vmul.f32 %v3435_v61, %v3429_v23  ;;  %v1066_v54 = vsub.f32 1.0, %v3266_v56  ;;  %v3445_v25 = vmul.f32 2.7500002, %v1959_v38 }
 0x23a   : > { %v1062_v42 = vmul.f32 %v3437_v31, %v3433_v14  ;;  %v1637_v1 = vpack.c.bf16 %v1518_v26, %v1517_v15  ;;  %v1069_v59 = vmul.f32 %v1065_v27, %v3247_v49  ;;  %v3448_v46 = vmul.f32 2.7500002, %v1960_v12 }
 0x23b   : > { %2016 = vmatpush3.bf16.msra.mxu1 %v1630_v10  ;;  %v1265_v52 = vsub.f32 1.0, %v3263_v24  ;;  %v1070_v58 = vmul.f32 %v1066_v54, %v3251_v3  ;;  %v1266_v44 = vsub.f32 1.0, %v3272_v17  ;;  %v3453_v35 = vmul.f32 1.8333334, %v1959_v38  ;;  %v3787_v3 = vld [vmem:[#allocation42_spill] sm:$0xff]  ;;  %v3789_v38 = vld [vmem:[#allocation43_spill] sm:$0xff] }
 0x23c   : > { %v3455_v5 = vmul.f32 1.8333334, %v1960_v12  ;;  %2017 = vmatprep.subr.bf16.mxu1 %v1637_v1  ;;  %v3457_v56 = vadd.f32 %v1069_v59, %v1061_v19  ;;  %v1445_v47 = vsub.f32 1.0, %v3278_v63  ;;  %v1446_v49 = vsub.f32 1.0, %v3283_v43  ;;  %v3790_v10 = vld [vmem:[#allocation41_spill] sm:$0xff]  ;;  %v3791_v54 = vld [vmem:[#allocation23_spill] sm:$0xff] }
 0x23d   : > { %v1269_v18 = vmul.f32 %v1265_v52, %v3280_v29  ;;  %v3462_v50 = vadd.f32 %v1070_v58, %v1062_v42  ;;  %v1270_v24 = vmul.f32 %v1266_v44, %v3286_v55  ;;  %v1491_v17 = vmul.f32 %v3788_v34, %v3787_v3  ;;  %v3792_v59 = vld [vmem:[#allocation21_spill] sm:$0xff] }
 0x23e   : > { %v1492_v12 = vmul.f32 %v3790_v10, %v3789_v38  ;;  %v1261_v15 = vmul.f32 %v3445_v25, %v3457_v56  ;;  %v1449_v26 = vmul.f32 %v1445_v47, %v3307_v33  ;;  %v1450_v29 = vmul.f32 %v1446_v49, %v3312_v41 }
 0x23f   : > { %v1495_v63 = vsub.f32 1.0, %v3302_v51  ;;  %v1262_v43 = vmul.f32 %v3448_v46, %v3462_v50  ;;  %v1496_v55 = vsub.f32 1.0, %v3305_v36  ;;  %vm771_vm5 = vcmp.ge.f32.partialorder %v3738_v2, -1.0 }
 0x240   : > { %vm772_vm6 = vcmp.ge.f32.partialorder %v3739_v8, -1.0  ;;  %v3479_v27 = vadd.f32 %v1269_v18, %v1261_v15  ;;  %v1909_v42 = vsel %vm771_vm5, 1.0, %v3760_v0  ;;  %v1957_v44 = vadd.f32 1.0, %v3738_v2 }
 0x241   : > { %v1499_v19 = vmul.f32 %v1495_v63, %v3319_v21  ;;  %v1910_v33 = vsel %vm772_vm6, 1.0, %v3760_v0  ;;  %v3484_v41 = vadd.f32 %v1270_v24, %v1262_v43  ;;  %v1500_v51 = vmul.f32 %v1496_v55, %v3321_v22 }
 0x242   : > { %v795_v1 = vsub.f32 %v1909_v42, %v3791_v54  ;;  %v796_v36 = vsub.f32 %v1910_v33, %v3792_v59  ;;  %v1441_v52 = vmul.f32 %v3453_v35, %v3479_v27  ;;  %v1958_v21 = vadd.f32 1.0, %v3739_v8  ;;  %v3794_v59 = vld [vmem:[#allocation58_spill] sm:$0xff] }
 0x243   : > { %v1503_v58 = vadd.f32 %v1499_v19, %v1491_v17  ;;  %v1442_v18 = vmul.f32 %v3455_v5, %v3484_v41  ;;  %v1504_v47 = vadd.f32 %v1500_v51, %v1492_v12  ;;  %v1051_v49 = vsub.f32 1.0, %v3349_v60 }
 0x244   : > { %v1052_v22 = vsub.f32 1.0, %v3351_v45  ;;  %v1453_v24 = vadd.f32 %v1449_v26, %v1441_v52  ;;  %v1003_v3 = vmul.f32 5.5, %v1957_v44  ;;  %v1004_v34 = vmul.f32 5.5, %v1958_v21  ;;  %v3796_v52 = vld [vmem:[#allocation59_spill] sm:$0xff] }
 0x245   : > { %v1207_v38 = vmul.f32 2.75, %v1957_v44  ;;  %v1454_v10 = vadd.f32 %v1450_v29, %v1442_v18  ;;  %v1636_v15 = vpack.c.bf16 %v1504_v47, %v1503_v58  ;;  %v1055_v17 = vmul.f32 %v1051_v49, %v3339_v30 }
 0x246   : > { %v1056_v63 = vmul.f32 %v1052_v22, %v3343_v9  ;;  %v1047_v43 = vmul.f32 %v1003_v3, %v795_v1  ;;  %v1048_v55 = vmul.f32 %v1004_v34, %v796_v36  ;;  %v1208_v19 = vmul.f32 2.75, %v1958_v21  ;;  %v3793_v1 = vld [vmem:[#allocation18_spill] sm:$0xff] }
 0x247   : > { %v1251_v42 = vsub.f32 1.0, %v3353_v28  ;;  %v1629_v12 = vpack.c.bf16 %v1454_v10, %v1453_v24  ;;  %v1252_v60 = vsub.f32 1.0, %v3357_v11  ;;  %v1391_v33 = vmul.f32 1.8333334, %v1957_v44  ;;  %v3795_v28 = vld [vmem:[#allocation60_spill] sm:$0xff] }
 0x248   : > { %v1392_v45 = vmul.f32 1.8333334, %v1958_v21  ;;  %v1059_v26 = vadd.f32 %v1055_v17, %v1047_v43  ;;  %v1060_v51 = vadd.f32 %v1056_v63, %v1048_v55  ;;  %v1431_v29 = vsub.f32 1.0, %v3365_v32 }
 0x249   : > { %v1255_v54 = vmul.f32 %v1251_v42, %v3371_v6  ;;  %2018 = vmatpush3.bf16.msra.mxu1 %v1629_v12  ;;  %v1256_v30 = vmul.f32 %v1252_v60, %v3373_v53  ;;  %v1432_v9 = vsub.f32 1.0, %v3367_v39  ;;  %v1489_v36 = vmul.f32 %v3794_v59, %v3793_v1 }
 0x24a   : > { %v1490_v58 = vmul.f32 %v3796_v52, %v3795_v28  ;;  %2019 = vmatprep.subr.bf16.mxu1 %v1636_v15  ;;  %v1247_v11 = vmul.f32 %v1207_v38, %v1059_v26  ;;  %v1248_v44 = vmul.f32 %v1208_v19, %v1060_v51  ;;  %v1435_v21 = vmul.f32 %v1431_v29, %v3397_v4  ;;  %v1625_v26 = vld [vmem:[#allocation8] sm:$0xff] }
 0x24b   : > { %v1493_v6 = vsub.f32 1.0, %v3390_v20  ;;  %v1436_v32 = vmul.f32 %v1432_v9, %v3399_v13  ;;  %v1494_v18 = vsub.f32 1.0, %v3393_v7  ;;  %vm769_vm7 = vcmp.ge.f32.partialorder %v3756_v48, -1.0 }
 0x24c   : > { %vm770_vm8 = vcmp.ge.f32.partialorder %v3757_v57, -1.0  ;;  %v1259_v39 = vadd.f32 %v1255_v54, %v1247_v11  ;;  %v1260_v53 = vadd.f32 %v1256_v30, %v1248_v44  ;;  %v1907_v49 = vsel %vm769_vm7, 1.0, %v3760_v0 }
 0x24d   : > { %v1497_v47 = vmul.f32 %v1493_v6, %v3411_v16  ;;  %v1498_v22 = vmul.f32 %v1494_v18, %v3413_v37  ;;  %v1908_v4 = vsel %vm770_vm8, 1.0, %v3760_v0  ;;  %v793_v20 = vsub.f32 %v1907_v49, %v3416_v62 }
 0x24e   : > { %v1955_v13 = vadd.f32 1.0, %v3756_v48  ;;  %v1427_v24 = vmul.f32 %v1391_v33, %v1259_v39  ;;  %v1428_v7 = vmul.f32 %v1392_v45, %v1260_v53  ;;  %v794_v3 = vsub.f32 %v1908_v4, %v3419_v40 }
 0x24f   : > { %v1502_v34 = vadd.f32 %v1498_v22, %v1490_v58  ;;  %v1956_v38 = vadd.f32 1.0, %v3757_v57  ;;  %v1049_v16 = vsub.f32 1.0, %v3435_v61  ;;  %v1050_v37 = vsub.f32 1.0, %v3437_v31 }
 0x250   : > { %v1001_v10 = vmul.f32 5.5, %v1955_v13  ;;  %v1439_v15 = vadd.f32 %v1435_v21, %v1427_v24  ;;  %v1440_v17 = vadd.f32 %v1436_v32, %v1428_v7  ;;  %v1501_v63 = vadd.f32 %v1497_v47, %v1489_v36 }
 0x251   : > { %v1002_v43 = vmul.f32 5.5, %v1956_v38  ;;  %v1053_v62 = vmul.f32 %v1049_v16, %v3429_v23  ;;  %v1054_v42 = vmul.f32 %v1050_v37, %v3433_v14  ;;  %v1205_v12 = vmul.f32 2.75, %v1955_v13 }
 0x252   : > { %v1045_v55 = vmul.f32 %v1001_v10, %v793_v20  ;;  %v1628_v19 = vpack.c.bf16 %v1440_v17, %v1439_v15  ;;  %v1249_v40 = vsub.f32 1.0, %v3445_v25  ;;  %v1635_v60 = vpack.c.bf16 %v1502_v34, %v1501_v63 }
 0x253   : > { %v1046_v33 = vmul.f32 %v1002_v43, %v794_v3  ;;  %v1250_v61 = vsub.f32 1.0, %v3448_v46  ;;  %v1206_v51 = vmul.f32 2.75, %v1956_v38  ;;  %v1389_v54 = vmul.f32 1.8333334, %v1955_v13  ;;  %v2121_v43 = vld [vmem:[#allocation8 + $0x8] ss:$0 sps:$4 sm:$0xff]  }
 0x254   : > { %v1057_v45 = vadd.f32 %v1053_v62, %v1045_v55  ;;  %2020 = vmatpush3.bf16.msra.mxu1 %v1628_v19  ;;  %v1253_v31 = vmul.f32 %v1249_v40, %v3457_v56  ;;  %v1390_v14 = vmul.f32 1.8333334, %v1956_v38  ;;  %v1429_v9 = vsub.f32 1.0, %v3453_v35 }
 0x255   : > { %2021 = vmatprep.subr.bf16.mxu1 %v1635_v60  ;;  %v1058_v29 = vadd.f32 %v1054_v42, %v1046_v33  ;;  %v1254_v30 = vmul.f32 %v1250_v61, %v3462_v50  ;;  %v1430_v25 = vsub.f32 1.0, %v3455_v5  ;;  %v2000_v1 = vcombine.high %v1625_v26, %v1625_v26 }
 0x256   : > { %v1245_v23 = vmul.f32 %v1205_v12, %v1057_v45  ;;  %v747_v59 = vsub.f32 0.0, %v3738_v2  ;;  %v748_v28 = vsub.f32 0.0, %v3739_v8  ;;  %v745_v56 = vsub.f32 0.0, %v3756_v48 }
 0x257   : > { %v1246_v46 = vmul.f32 %v1206_v51, %v1058_v29  ;;  %v1433_v52 = vmul.f32 %v1429_v9, %v3479_v27  ;;  %v1434_v58 = vmul.f32 %v1430_v25, %v3484_v41  ;;  %1691 = vmatprep.mubr.bf16.mxu1 %v2000_v1  ;;  %v746_v11 = vsub.f32 0.0, %v3757_v57 }
 0x258   : > { %v1257_v36 = vadd.f32 %v1253_v31, %v1245_v23  ;;  %v753_v50 = vmul.f32 1.442695, %v747_v59  ;;  %v755_v5 = vmul.f32 1.442695, %v748_v28  ;;  %v749_v21 = vmul.f32 1.442695, %v745_v56 }
 0x259   : > { %v1258_v35 = vadd.f32 %v1254_v30, %v1246_v46  ;;  %v751_v6 = vmul.f32 1.442695, %v746_v11  ;;  %v1999_v27 = vcombine.low %v1625_v26, %v1625_v26  ;;  %vm2304_vm9 = vmmov 0  }
 0x25a   : > { %v1425_v44 = vmul.f32 %v1389_v54, %v1257_v36  ;;  %2130 = vpow2.f32 %v753_v50  ;;  %vm1655_vm10 = vcmask 261120  }
 0x25b   : > { %v1426_v32 = vmul.f32 %v1390_v14, %v1258_v35  ;;  %2132 = vpow2.f32 %v755_v5 }
 0x25c   : > { %2134 = vpow2.f32 %v749_v21  ;;  %v1437_v18 = vadd.f32 %v1433_v52, %v1425_v44 }
 0x25d   : > { %v1438_v39 = vadd.f32 %v1434_v58, %v1426_v32  ;;  %2136 = vpow2.f32 %v751_v6 }
 0x25f   : > { %v1627_v53 = vpack.c.bf16 %v1438_v39, %v1437_v18 }
 0x261   : > { %2022 = vmatpush3.bf16.msra.mxu1 %v1627_v53 }
 0x262   : > { %2032 = vmatprep.subr.bf16.mxu1 %v3760_v0 }
 0x264   : > { %1692 = vmatmul.mubr.bf16.vlgmr.msra.gmra.mxu1 %v1999_v27 }
 0x265   : > { %2036 = vmatprep.mubr.msk.bf16.mxu1 %vm2304_vm9, %v3760_v0 }
 0x267   : > { %v2131_v41 = vpop.eup %2130 }
 0x268   : > { %v2133_v47 = vpop.eup %2132  ;;  %v759_v49 = vadd.f32 1.0, %v2131_v41 }
 0x269   : > { %v2135_v22 = vpop.eup %2134  ;;  %v760_v4 = vadd.f32 1.0, %v2133_v47 }
 0x26a   : > { %v2137_v20 = vpop.eup %2136  ;;  %2138 = vrcp.f32 %v759_v49  ;;  %v757_v13 = vadd.f32 1.0, %v2135_v22 }
 0x26b   : > { %2140 = vrcp.f32 %v760_v4  ;;  %v758_v24 = vadd.f32 1.0, %v2137_v20 }
 0x26c   : > { %2142 = vrcp.f32 %v757_v13 }
 0x26d   : > { %2144 = vrcp.f32 %v758_v24 }
 0x277   : > { %v2139_v7 = vpop.eup %2138 }
 0x278   : > { %v2141_v3 = vpop.eup %2140  ;;  %v767_v38 = vmul.f32 %v2139_v7, %v3738_v2 }
 0x279   : > { %v2143_v34 = vpop.eup %2142  ;;  %v768_v10 = vmul.f32 %v2141_v3, %v3739_v8 }
 0x27a   : > { %v2145_v16 = vpop.eup %2144  ;;  %v765_v37 = vmul.f32 %v2143_v34, %v3756_v48 }
 0x27b   : > { %v1644_v15 = vpack.c.bf16 %v768_v10, %v767_v38  ;;  %v766_v17 = vmul.f32 %v2145_v16, %v3757_v57 }
 0x27d   : > { %2033 = vmatpush3.bf16.msra.mxu1 %v1644_v15  ;;  %v1643_v63 = vpack.c.bf16 %v766_v17, %v765_v37 }
 0x27e   : > { %2034 = vmatprep.subr.bf16.mxu1 %v3760_v0 }
 0x281   : > { %2035 = vmatpush3.bf16.msra.mxu1 %v1643_v63 }
 0x284   : > { %2037 = vmatmul.mubr.msk.bf16.vlgmr.msra.gmra.mxu1 %vm1655_vm10, %v2121_v43 }
 0x324   : > { %v2023_v55 = vpop.f32.mrf.mxu1 }
 0x326   : > { %v2024_v2 = vpop.f32.mrf.mxu1 }
 0x327   : > { %v2025_v57 = vadd.f32 %v2024_v2, %v2023_v55 }
 0x328   : > { %v2026_v8 = vpop.f32.mrf.mxu1 }
 0x32a   : > { %v2027_v62 = vpop.f32.mrf.mxu1 }
 0x344   : > { %v1733_v19 = vpop.f32.mrf.mxu1 }
 0x345   : > { %v1734_v48 = vadd.f32 %v2025_v57, %v1733_v19 }
 0x346   : > { %v2038_v0 = vpop.f32.mrf.mxu1 }
 0x347   : > { %1739 = vst [vmem:[%s214_s6] sm:$0xff] %v1734_v48 }
 0x348   : > { %v1736_v42 = vpop.f32.mrf.mxu1 }
 0x349   : > { %2239 = shalt.err (!%p2236_p1)
}
 0x34a   : > { %s2240_s30 = scalar_lea.hbm %s3551_s29, 128  ;;  %s2244_s4 = scalar_lea.hbm %s3597_s3, 256 }
 0x34b   : > { %p2241_p5 = scmp.ne.s32.totalorder %s3551_s29, %s2240_s30  ;;  %p2245_p6 = scmp.lt.s32.totalorder %s3551_s29, %s3597_s3 }
 0x34c   : > { %p2246_p13 = scmp.lt.s32.totalorder %s2244_s4, %s2240_s30 }
 0x34d   : > { %p2242_p0 = pnand %p2241_p5, %p3797_p7 }
 0x34e   : > { %p2247_p8 = por %p2246_p13, %p2245_p6 }
 0x34f   : > { %p2243_p2 = pneg %p2242_p0 }
 0x351   : > { %p2248_p3 = pnand %p2247_p8, %p2243_p2 }
 0x353   : > { %2251 = shalt.err (!%p2248_p3)
}
 0x354   : > { %2050 = dma.vmem_to_hbm [thread:$0]  (%p3797_p7), %s3553_s7, 128, %s3551_s29, %s1741_s9   ;;  %v2039_v12 = vpop.f32.mrf.mxu1 }
 0x355 PF: > { %s1766_s27 = sand.u32 1, %s2282_s12   ;;  %p3798_p4 = scmp.ne.s32.totalorder %s3665_s25, 0 }
 0x356   : > { %p3799_p11 = scmp.ge.s32.totalorder %s2294_s15, 2  ;;  %s1767_s23 = scalar_lea.sflag [#allocation5], %s1766_s27 }
 0x358   : > { %p2064_p12 = pnand %p3799_p11, %p3798_p4 }
 0x35a   : > { %p2065_p9 = pneg %p2064_p12 }
 0x35c   : > { %2277 = dma.done.wait (%p2065_p9), %s1767_s23, 128  }
 0x35d   : > { %2279 = vsyncadd (%p2065_p9), %s1767_s23, 4294967168  ;;  %p17_p10 = scmp.ge.s32.totalorder %s2351_s18, 4   ;;  %s3800_s12 = smov %s2286_s13 }
 0x35e   : > { %s3801_s13 = smov %s2290_s14  ;;  %s3802_s14 = smov %s2363_s21 }
 0x35f   : > { %s3803_s15 = smov %s2351_s18  ;;  %19 = sbr.rel (!%p17_p10) target bundleno = 6 (0x6), region = 85 }
 0x364   :  { %1772 = vsyncpa [#allocation4], 1 }
 0x365   :  { %1774 = vsyncpa [#allocation4 + $0x1], 1 }
 0x366   :  { %1775 = vsyncpa [#allocation7], 1 }
 0x367   :  { %1776 = vsyncpa [#allocation5], 1 }
 0x368   :  { %1778 = vsyncpa [#allocation5 + $0x1], 1 }

</bundles_post_ra>
